<compile_context>
chip_gen: v7x
topology: tpu7x:2x2x1
jax: 0.10.0
libtpu: 0.0.40
codegen_flags: <defaults>
</compile_context>

<pallas_src>
import jax
import jax.numpy as jnp
from jax.experimental import pallas as pl
from jax.experimental.pallas import tpu as pltpu

NUM_MODELS = 3

_VMEM = pl.BlockSpec(memory_space=pltpu.MemorySpace.VMEM)


# -----------------------------------------------------------------------------
# Pallas kernels
# -----------------------------------------------------------------------------
def _conv_relu_pool_kernel(p00_ref, p01_ref, p10_ref, p11_ref, w_ref, b_ref, o_ref):
    """Fused conv (im2col matmul) + bias + ReLU + 2x2 max-pool.

    p??_ref: (M, K) im2col patches for each of the four 2x2-pool positions.
    w_ref:   (K, N) packed ensemble weights.   b_ref: (1, N).
    o_ref:   (M, N) = relu(max_i(p_i @ W) + b)  — i.e. maxpool(relu(conv + b)).
    """
    w = w_ref[...]
    y = jnp.dot(p00_ref[...], w, preferred_element_type=jnp.float32)
    y = jnp.maximum(y, jnp.dot(p01_ref[...], w, preferred_element_type=jnp.float32))
    y = jnp.maximum(y, jnp.dot(p10_ref[...], w, preferred_element_type=jnp.float32))
    y = jnp.maximum(y, jnp.dot(p11_ref[...], w, preferred_element_type=jnp.float32))
    y = y + b_ref[...]
    o_ref[...] = jnp.maximum(y, 0.0).astype(o_ref.dtype)


def _fc_head_kernel(x_ref, w1_ref, b1_ref, w2_ref, b2_ref, w3_ref, b3_ref, o_ref):
    """Fused FC head for the whole ensemble.

    x_ref: (E, B, 400) per-model flattened conv features.
    w*/b*: stacked per-model FC params (E, K, N) / (E, 1, N).
    o_ref: (B, 10) = mean_e softmax(fc3(relu(fc2(relu(fc1(x_e)))))).
    All intermediates stay in registers/VMEM; the ensemble loop is statically
    unrolled (E is tiny) so only 2D MXU matmuls are emitted.
    """
    num_models = x_ref.shape[0]
    acc = jnp.zeros(o_ref.shape, jnp.float32)
    for e in range(num_models):
        h = jnp.dot(x_ref[e], w1_ref[e], preferred_element_type=jnp.float32) + b1_ref[e]
        h = jnp.maximum(h, 0.0)
        h = jnp.dot(h, w2_ref[e], preferred_element_type=jnp.float32) + b2_ref[e]
        h = jnp.maximum(h, 0.0)
        z = jnp.dot(h, w3_ref[e], preferred_element_type=jnp.float32) + b3_ref[e]
        m = jnp.max(z, axis=-1, keepdims=True)
        ez = jnp.exp(z - m)
        acc = acc + ez / jnp.sum(ez, axis=-1, keepdims=True)
    o_ref[...] = (acc / num_models).astype(o_ref.dtype)


# -----------------------------------------------------------------------------
# Pallas wrappers (everything fits comfortably in VMEM -> full-array blocks)
# -----------------------------------------------------------------------------
def conv_relu_pool(patches4, w, b):
    m = patches4[0].shape[0]
    n = w.shape[1]
    return pl.pallas_call(
        _conv_relu_pool_kernel,
        out_shape=jax.ShapeDtypeStruct((m, n), jnp.float32),
        in_specs=[_VMEM] * 6,
        out_specs=_VMEM,
    )(*patches4, w, b)


def fc_head(xf, w1, b1, w2, b2, w3, b3):
    batch = xf.shape[1]
    n_cls = w3.shape[-1]
    return pl.pallas_call(
        _fc_head_kernel,
        out_shape=jax.ShapeDtypeStruct((batch, n_cls), jnp.float32),
        in_specs=[_VMEM] * 7,
        out_specs=_VMEM,
    )(xf, w1, b1, w2, b2, w3, b3)


# -----------------------------------------------------------------------------
# XLA glue: im2col split by 2x2-pool position (tiny, sub-MB tensors)
# -----------------------------------------------------------------------------
def _im2col_pool_split(x, kh, kw):
    """x: (B,H,W,C) NHWC, valid conv kh x kw, stride 1, followed by 2x2 pool.

    Returns four (B*Hp*Wp, kh*kw*C) patch matrices, one per pool position.
    Row order (b, hp, wp); feature order (kh, kw, c).
    """
    B, H, W, C = x.shape
    Ho, Wo = H - kh + 1, W - kw + 1
    Hp, Wp = Ho // 2, Wo // 2
    patches = jnp.concatenate(
        [x[:, i:i + Ho, j:j + Wo, :] for i in range(kh) for j in range(kw)],
        axis=-1)                                           # (B, Ho, Wo, kh*kw*C)
    out = []
    for ph in (0, 1):
        for pw in (0, 1):
            v = patches[:, ph::2, pw::2, :]                # (B, Hp, Wp, kh*kw*C)
            out.append(v.reshape(B * Hp * Wp, kh * kw * C))
    return out


# -----------------------------------------------------------------------------
# Parameters: per-model init (PyTorch-equivalent layouts) + ensemble packing
# -----------------------------------------------------------------------------
def init_model_params(key):
    ks = jax.random.split(key, 10)
    s = 0.1
    return {
        "conv1_w": s * jax.random.normal(ks[0], (5, 5, 3, 6), jnp.float32),     # HWIO
        "conv1_b": s * jax.random.normal(ks[1], (6,), jnp.float32),
        "conv2_w": s * jax.random.normal(ks[2], (5, 5, 6, 16), jnp.float32),    # HWIO
        "conv2_b": s * jax.random.normal(ks[3], (16,), jnp.float32),
        "fc1_w": s * jax.random.normal(ks[4], (16 * 5 * 5, 120), jnp.float32),  # rows=(c,h,w)
        "fc1_b": s * jax.random.normal(ks[5], (120,), jnp.float32),
        "fc2_w": s * jax.random.normal(ks[6], (120, 84), jnp.float32),
        "fc2_b": s * jax.random.normal(ks[7], (84,), jnp.float32),
        "fc3_w": s * jax.random.normal(ks[8], (84, 10), jnp.float32),
        "fc3_b": s * jax.random.normal(ks[9], (10,), jnp.float32),
    }


def pack_ensemble_params(params_list):
    """Pack E models' params into the fused-kernel layouts (tiny XLA ops)."""
    E = len(params_list)
    # conv1: shared patches -> stack weights along the output-channel axis.
    w1 = jnp.stack([p["conv1_w"] for p in params_list], axis=3)       # (5,5,3,E,6)
    w1 = w1.reshape(5 * 5 * 3, E * 6)
    b1 = jnp.stack([p["conv1_b"] for p in params_list], 0).reshape(1, E * 6)
    # conv2: per-model inputs -> block-diagonal packed weight (cross terms = 0).
    w2_all = jnp.stack([p["conv2_w"] for p in params_list], 0)        # (E,5,5,6,16)
    eye = jnp.eye(E, dtype=w2_all.dtype)
    w2 = jnp.einsum('eklcn,ef->klecfn', w2_all, eye)                  # (5,5,E,6,E,16)
    w2 = w2.reshape(5 * 5 * E * 6, E * 16)
    b2 = jnp.stack([p["conv2_b"] for p in params_list], 0).reshape(1, E * 16)

    # fc1: pre-permute rows from PyTorch's (c,h,w) flatten order to the NHWC
    # (h,w,c) order produced by the conv path, so no runtime transpose-matmul.
    def _permute_fc1(w):
        return w.reshape(16, 5, 5, 120).transpose(1, 2, 0, 3).reshape(400, 120)

    fw1 = jnp.stack([_permute_fc1(p["fc1_w"]) for p in params_list], 0)   # (E,400,120)
    fb1 = jnp.stack([p["fc1_b"] for p in params_list], 0)[:, None, :]     # (E,1,120)
    fw2 = jnp.stack([p["fc2_w"] for p in params_list], 0)                 # (E,120,84)
    fb2 = jnp.stack([p["fc2_b"] for p in params_list], 0)[:, None, :]
    fw3 = jnp.stack([p["fc3_w"] for p in params_list], 0)                 # (E,84,10)
    fb3 = jnp.stack([p["fc3_b"] for p in params_list], 0)[:, None, :]
    return dict(conv1_w=w1, conv1_b=b1, conv2_w=w2, conv2_b=b2,
                fc1_w=fw1, fc1_b=fb1, fc2_w=fw2, fc2_b=fb2,
                fc3_w=fw3, fc3_b=fb3)


# -----------------------------------------------------------------------------
# Ensemble forward: 3 pallas_calls total
# -----------------------------------------------------------------------------
def ensemble_forward(params_list, x_nchw):
    E = len(params_list)
    B = x_nchw.shape[0]
    packed = pack_ensemble_params(params_list)                     # tiny, in-jit
    x = jnp.transpose(x_nchw, (0, 2, 3, 1))                        # (B,32,32,3) NHWC

    # conv1 + ReLU + maxpool for all E models in ONE kernel.
    p1 = _im2col_pool_split(x, 5, 5)                               # 4 x (B*196, 75)
    y1 = conv_relu_pool(p1, packed["conv1_w"], packed["conv1_b"])  # (B*196, E*6)
    y1 = y1.reshape(B, 14, 14, E * 6)

    # conv2 (block-diagonal over the ensemble) + ReLU + maxpool in ONE kernel.
    p2 = _im2col_pool_split(y1, 5, 5)                              # 4 x (B*25, E*150)
    y2 = conv_relu_pool(p2, packed["conv2_w"], packed["conv2_b"])  # (B*25, E*16)

    # Regroup to per-model (h,w,c) flatten, then fused FC head + softmax + mean.
    xf = (y2.reshape(B, 5, 5, E, 16)
             .transpose(3, 0, 1, 2, 4)
             .reshape(E, B, 16 * 5 * 5))                           # (E, B, 400)
    return fc_head(xf, packed["fc1_w"], packed["fc1_b"],
                   packed["fc2_w"], packed["fc2_b"],
                   packed["fc3_w"], packed["fc3_b"])               # (B, 10)


# -----------------------------------------------------------------------------
# Independent pure-JAX reference (semantics of the PyTorch module)
# -----------------------------------------------------------------------------
def _reference_forward(params_list, x_nchw):
    outs = []
    for p in params_list:
        x = x_nchw
        w = jnp.transpose(p["conv1_w"], (3, 2, 0, 1))              # HWIO -> OIHW
        x = jax.lax.conv_general_dilated(
            x, w, (1, 1), 'VALID', dimension_numbers=('NCHW', 'OIHW', 'NCHW'))
        x = jnp.maximum(x + p["conv1_b"][None, :, None, None], 0.0)
        x = jax.lax.reduce_window(x, -jnp.inf, jax.lax.max,
                                  (1, 1, 2, 2), (1, 1, 2, 2), 'VALID')
        w = jnp.transpose(p["conv2_w"], (3, 2, 0, 1))
        x = jax.lax.conv_general_dilated(
            x, w, (1, 1), 'VALID', dimension_numbers=('NCHW', 'OIHW', 'NCHW'))
        x = jnp.maximum(x + p["conv2_b"][None, :, None, None], 0.0)
        x = jax.lax.reduce_window(x, -jnp.inf, jax.lax.max,
                                  (1, 1, 2, 2), (1, 1, 2, 2), 'VALID')
        x = x.reshape(x.shape[0], -1)                              # b (c h w)
        x = jnp.maximum(x @ p["fc1_w"] + p["fc1_b"], 0.0)
        x = jnp.maximum(x @ p["fc2_w"] + p["fc2_b"], 0.0)
        x = x @ p["fc3_w"] + p["fc3_b"]
        outs.append(jax.nn.softmax(x, axis=1))
    return jnp.mean(jnp.stack(outs, axis=0), axis=0)


if __name__ == "__main__":
    key = jax.random.PRNGKey(0)
    k_x, *k_models = jax.random.split(key, 1 + NUM_MODELS)

    # Spatial size must be 32x32 (LeNet topology: 16*5*5 flatten). batch=2.
    x = jax.random.normal(k_x, (2, 3, 32, 32), jnp.float32)
    params = [init_model_params(k) for k in k_models]

    fwd = jax.jit(ensemble_forward)
    out = jax.block_until_ready(fwd(params, x))

    assert out.shape == (2, 10)
    # Averaged softmax outputs sum to 1 per row.
    assert jnp.allclose(jnp.sum(out, axis=-1), 1.0, atol=1e-5)
    # Matches the pure-JAX reference of the PyTorch module (MXU default precision).
    ref = _reference_forward(params, x)
    assert jnp.allclose(out, ref, atol=2e-2), float(jnp.max(jnp.abs(out - ref)))
    print("KERNEL_OK")
</pallas_src>

<mosaic_0001>
module attributes {stable_mosaic.version = 11 : i64} {
  func.func @_conv_relu_pool_kernel(%arg0: memref<392x75xf32, #tpu.memory_space<vmem>>, %arg1: memref<392x75xf32, #tpu.memory_space<vmem>>, %arg2: memref<392x75xf32, #tpu.memory_space<vmem>>, %arg3: memref<392x75xf32, #tpu.memory_space<vmem>>, %arg4: memref<75x18xf32, #tpu.memory_space<vmem>>, %arg5: memref<1x18xf32, #tpu.memory_space<vmem>>, %arg6: memref<392x18xf32, #tpu.memory_space<vmem>>) attributes {dimension_semantics = [], scalar_prefetch = 0 : i64, scratch_operands = 0 : i64, tpu.core_type = #tpu.core_type<tc>} {
    %c0 = arith.constant 0 : index
    %c0_0 = arith.constant 0 : index
    %0 = vector.load %arg4[%c0, %c0_0] : memref<75x18xf32, #tpu.memory_space<vmem>>, vector<75x18xf32>
    %c0_1 = arith.constant 0 : index
    %c0_2 = arith.constant 0 : index
    %1 = vector.load %arg0[%c0_1, %c0_2] : memref<392x75xf32, #tpu.memory_space<vmem>>, vector<392x75xf32>
    %cst = arith.constant dense<0.000000e+00> : vector<392x18xf32>
    %2 = tpu.matmul %1, %0, %cst {dimension_numbers = #tpu.dot_dimension_numbers<[1], [0], [0], [1], [0, 0, 1, 1], [], []>} : vector<392x75xf32>, vector<75x18xf32>, vector<392x18xf32> -> vector<392x18xf32>
    %c0_3 = arith.constant 0 : index
    %c0_4 = arith.constant 0 : index
    %3 = vector.load %arg1[%c0_3, %c0_4] : memref<392x75xf32, #tpu.memory_space<vmem>>, vector<392x75xf32>
    %cst_5 = arith.constant dense<0.000000e+00> : vector<392x18xf32>
    %4 = tpu.matmul %3, %0, %cst_5 {dimension_numbers = #tpu.dot_dimension_numbers<[1], [0], [0], [1], [0, 0, 1, 1], [], []>} : vector<392x75xf32>, vector<75x18xf32>, vector<392x18xf32> -> vector<392x18xf32>
    %5 = arith.maximumf %2, %4 : vector<392x18xf32>
    %c0_6 = arith.constant 0 : index
    %c0_7 = arith.constant 0 : index
    %6 = vector.load %arg2[%c0_6, %c0_7] : memref<392x75xf32, #tpu.memory_space<vmem>>, vector<392x75xf32>
    %cst_8 = arith.constant dense<0.000000e+00> : vector<392x18xf32>
    %7 = tpu.matmul %6, %0, %cst_8 {dimension_numbers = #tpu.dot_dimension_numbers<[1], [0], [0], [1], [0, 0, 1, 1], [], []>} : vector<392x75xf32>, vector<75x18xf32>, vector<392x18xf32> -> vector<392x18xf32>
    %8 = arith.maximumf %5, %7 : vector<392x18xf32>
    %c0_9 = arith.constant 0 : index
    %c0_10 = arith.constant 0 : index
    %9 = vector.load %arg3[%c0_9, %c0_10] : memref<392x75xf32, #tpu.memory_space<vmem>>, vector<392x75xf32>
    %cst_11 = arith.constant dense<0.000000e+00> : vector<392x18xf32>
    %10 = tpu.matmul %9, %0, %cst_11 {dimension_numbers = #tpu.dot_dimension_numbers<[1], [0], [0], [1], [0, 0, 1, 1], [], []>} : vector<392x75xf32>, vector<75x18xf32>, vector<392x18xf32> -> vector<392x18xf32>
    %11 = arith.maximumf %8, %10 : vector<392x18xf32>
    %c0_12 = arith.constant 0 : index
    %c0_13 = arith.constant 0 : index
    %12 = vector.load %arg5[%c0_12, %c0_13] : memref<1x18xf32, #tpu.memory_space<vmem>>, vector<1x18xf32>
    %13 = vector.broadcast %12 : vector<1x18xf32> to vector<392x18xf32>
    %14 = arith.addf %11, %13 : vector<392x18xf32>
    %cst_14 = arith.constant 0.000000e+00 : f32
    %15 = vector.broadcast %cst_14 : f32 to vector<392x18xf32>
    %16 = arith.maximumf %14, %15 : vector<392x18xf32>
    %c0_15 = arith.constant 0 : index
    %c0_16 = arith.constant 0 : index
    %17 = vector.load %arg6[%c0_15, %c0_16] : memref<392x18xf32, #tpu.memory_space<vmem>>, vector<392x18xf32>
    tpu.vector_store %arg6[%c0_15, %c0_16], %16 {strides = array<i32>} : memref<392x18xf32, #tpu.memory_space<vmem>>, vector<392x18xf32>,
    return
  }
}

module attributes {stable_mosaic.version = 11 : i64} {
  func.func @_conv_relu_pool_kernel(%arg0: memref<50x450xf32, #tpu.memory_space<vmem>>, %arg1: memref<50x450xf32, #tpu.memory_space<vmem>>, %arg2: memref<50x450xf32, #tpu.memory_space<vmem>>, %arg3: memref<50x450xf32, #tpu.memory_space<vmem>>, %arg4: memref<450x48xf32, #tpu.memory_space<vmem>>, %arg5: memref<1x48xf32, #tpu.memory_space<vmem>>, %arg6: memref<50x48xf32, #tpu.memory_space<vmem>>) attributes {dimension_semantics = [], scalar_prefetch = 0 : i64, scratch_operands = 0 : i64, tpu.core_type = #tpu.core_type<tc>} {
    %c0 = arith.constant 0 : index
    %c0_0 = arith.constant 0 : index
    %0 = vector.load %arg4[%c0, %c0_0] : memref<450x48xf32, #tpu.memory_space<vmem>>, vector<450x48xf32>
    %c0_1 = arith.constant 0 : index
    %c0_2 = arith.constant 0 : index
    %1 = vector.load %arg0[%c0_1, %c0_2] : memref<50x450xf32, #tpu.memory_space<vmem>>, vector<50x450xf32>
    %cst = arith.constant dense<0.000000e+00> : vector<50x48xf32>
    %2 = tpu.matmul %1, %0, %cst {dimension_numbers = #tpu.dot_dimension_numbers<[1], [0], [0], [1], [0, 0, 1, 1], [], []>} : vector<50x450xf32>, vector<450x48xf32>, vector<50x48xf32> -> vector<50x48xf32>
    %c0_3 = arith.constant 0 : index
    %c0_4 = arith.constant 0 : index
    %3 = vector.load %arg1[%c0_3, %c0_4] : memref<50x450xf32, #tpu.memory_space<vmem>>, vector<50x450xf32>
    %cst_5 = arith.constant dense<0.000000e+00> : vector<50x48xf32>
    %4 = tpu.matmul %3, %0, %cst_5 {dimension_numbers = #tpu.dot_dimension_numbers<[1], [0], [0], [1], [0, 0, 1, 1], [], []>} : vector<50x450xf32>, vector<450x48xf32>, vector<50x48xf32> -> vector<50x48xf32>
    %5 = arith.maximumf %2, %4 : vector<50x48xf32>
    %c0_6 = arith.constant 0 : index
    %c0_7 = arith.constant 0 : index
    %6 = vector.load %arg2[%c0_6, %c0_7] : memref<50x450xf32, #tpu.memory_space<vmem>>, vector<50x450xf32>
    %cst_8 = arith.constant dense<0.000000e+00> : vector<50x48xf32>
    %7 = tpu.matmul %6, %0, %cst_8 {dimension_numbers = #tpu.dot_dimension_numbers<[1], [0], [0], [1], [0, 0, 1, 1], [], []>} : vector<50x450xf32>, vector<450x48xf32>, vector<50x48xf32> -> vector<50x48xf32>
    %8 = arith.maximumf %5, %7 : vector<50x48xf32>
    %c0_9 = arith.constant 0 : index
    %c0_10 = arith.constant 0 : index
    %9 = vector.load %arg3[%c0_9, %c0_10] : memref<50x450xf32, #tpu.memory_space<vmem>>, vector<50x450xf32>
    %cst_11 = arith.constant dense<0.000000e+00> : vector<50x48xf32>
    %10 = tpu.matmul %9, %0, %cst_11 {dimension_numbers = #tpu.dot_dimension_numbers<[1], [0], [0], [1], [0, 0, 1, 1], [], []>} : vector<50x450xf32>, vector<450x48xf32>, vector<50x48xf32> -> vector<50x48xf32>
    %11 = arith.maximumf %8, %10 : vector<50x48xf32>
    %c0_12 = arith.constant 0 : index
    %c0_13 = arith.constant 0 : index
    %12 = vector.load %arg5[%c0_12, %c0_13] : memref<1x48xf32, #tpu.memory_space<vmem>>, vector<1x48xf32>
    %13 = vector.broadcast %12 : vector<1x48xf32> to vector<50x48xf32>
    %14 = arith.addf %11, %13 : vector<50x48xf32>
    %cst_14 = arith.constant 0.000000e+00 : f32
    %15 = vector.broadcast %cst_14 : f32 to vector<50x48xf32>
    %16 = arith.maximumf %14, %15 : vector<50x48xf32>
    %c0_15 = arith.constant 0 : index
    %c0_16 = arith.constant 0 : index
    %17 = vector.load %arg6[%c0_15, %c0_16] : memref<50x48xf32, #tpu.memory_space<vmem>>, vector<50x48xf32>
    tpu.vector_store %arg6[%c0_15, %c0_16], %16 {strides = array<i32>} : memref<50x48xf32, #tpu.memory_space<vmem>>, vector<50x48xf32>,
    return
  }
}

module attributes {stable_mosaic.version = 11 : i64} {
  func.func @_fc_head_kernel(%arg0: memref<3x2x400xf32, #tpu.memory_space<vmem>>, %arg1: memref<3x400x120xf32, #tpu.memory_space<vmem>>, %arg2: memref<3x1x120xf32, #tpu.memory_space<vmem>>, %arg3: memref<3x120x84xf32, #tpu.memory_space<vmem>>, %arg4: memref<3x1x84xf32, #tpu.memory_space<vmem>>, %arg5: memref<3x84x10xf32, #tpu.memory_space<vmem>>, %arg6: memref<3x1x10xf32, #tpu.memory_space<vmem>>, %arg7: memref<2x10xf32, #tpu.memory_space<vmem>>) attributes {dimension_semantics = [], scalar_prefetch = 0 : i64, scratch_operands = 0 : i64, tpu.core_type = #tpu.core_type<tc>} {
    %cst = arith.constant 0.000000e+00 : f32
    %0 = vector.broadcast %cst : f32 to vector<2x10xf32>
    %c0 = arith.constant 0 : index
    %c0_0 = arith.constant 0 : index
    %c0_1 = arith.constant 0 : index
    %1 = vector.load %arg0[%c0, %c0_0, %c0_1] : memref<3x2x400xf32, #tpu.memory_space<vmem>>, vector<1x2x400xf32>
    %2 = vector.shape_cast %1 : vector<1x2x400xf32> to vector<2x400xf32>
    %c0_2 = arith.constant 0 : index
    %c0_3 = arith.constant 0 : index
    %c0_4 = arith.constant 0 : index
    %3 = vector.load %arg1[%c0_2, %c0_3, %c0_4] : memref<3x400x120xf32, #tpu.memory_space<vmem>>, vector<1x400x120xf32>
    %4 = vector.shape_cast %3 : vector<1x400x120xf32> to vector<400x120xf32>
    %cst_5 = arith.constant dense<0.000000e+00> : vector<2x120xf32>
    %5 = tpu.matmul %2, %4, %cst_5 {dimension_numbers = #tpu.dot_dimension_numbers<[1], [0], [0], [1], [0, 0, 1, 1], [], []>} : vector<2x400xf32>, vector<400x120xf32>, vector<2x120xf32> -> vector<2x120xf32>
    %c0_6 = arith.constant 0 : index
    %c0_7 = arith.constant 0 : index
    %c0_8 = arith.constant 0 : index
    %6 = vector.load %arg2[%c0_6, %c0_7, %c0_8] : memref<3x1x120xf32, #tpu.memory_space<vmem>>, vector<1x1x120xf32>
    %7 = vector.shape_cast %6 : vector<1x1x120xf32> to vector<1x120xf32>
    %8 = vector.broadcast %7 : vector<1x120xf32> to vector<2x120xf32>
    %9 = arith.addf %5, %8 : vector<2x120xf32>
    %cst_9 = arith.constant 0.000000e+00 : f32
    %10 = vector.broadcast %cst_9 : f32 to vector<2x120xf32>
    %11 = arith.maximumf %9, %10 : vector<2x120xf32>
    %c0_10 = arith.constant 0 : index
    %c0_11 = arith.constant 0 : index
    %c0_12 = arith.constant 0 : index
    %12 = vector.load %arg3[%c0_10, %c0_11, %c0_12] : memref<3x120x84xf32, #tpu.memory_space<vmem>>, vector<1x120x84xf32>
    %13 = vector.shape_cast %12 : vector<1x120x84xf32> to vector<120x84xf32>
    %cst_13 = arith.constant dense<0.000000e+00> : vector<2x84xf32>
    %14 = tpu.matmul %11, %13, %cst_13 {dimension_numbers = #tpu.dot_dimension_numbers<[1], [0], [0], [1], [0, 0, 1, 1], [], []>} : vector<2x120xf32>, vector<120x84xf32>, vector<2x84xf32> -> vector<2x84xf32>
    %c0_14 = arith.constant 0 : index
    %c0_15 = arith.constant 0 : index
    %c0_16 = arith.constant 0 : index
    %15 = vector.load %arg4[%c0_14, %c0_15, %c0_16] : memref<3x1x84xf32, #tpu.memory_space<vmem>>, vector<1x1x84xf32>
    %16 = vector.shape_cast %15 : vector<1x1x84xf32> to vector<1x84xf32>
    %17 = vector.broadcast %16 : vector<1x84xf32> to vector<2x84xf32>
    %18 = arith.addf %14, %17 : vector<2x84xf32>
    %cst_17 = arith.constant 0.000000e+00 : f32
    %19 = vector.broadcast %cst_17 : f32 to vector<2x84xf32>
    %20 = arith.maximumf %18, %19 : vector<2x84xf32>
    %c0_18 = arith.constant 0 : index
    %c0_19 = arith.constant 0 : index
    %c0_20 = arith.constant 0 : index
    %21 = vector.load %arg5[%c0_18, %c0_19, %c0_20] : memref<3x84x10xf32, #tpu.memory_space<vmem>>, vector<1x84x10xf32>
    %22 = vector.shape_cast %21 : vector<1x84x10xf32> to vector<84x10xf32>
    %cst_21 = arith.constant dense<0.000000e+00> : vector<2x10xf32>
    %23 = tpu.matmul %20, %22, %cst_21 {dimension_numbers = #tpu.dot_dimension_numbers<[1], [0], [0], [1], [0, 0, 1, 1], [], []>} : vector<2x84xf32>, vector<84x10xf32>, vector<2x10xf32> -> vector<2x10xf32>
    %c0_22 = arith.constant 0 : index
    %c0_23 = arith.constant 0 : index
    %c0_24 = arith.constant 0 : index
    %24 = vector.load %arg6[%c0_22, %c0_23, %c0_24] : memref<3x1x10xf32, #tpu.memory_space<vmem>>, vector<1x1x10xf32>
    %25 = vector.shape_cast %24 : vector<1x1x10xf32> to vector<1x10xf32>
    %26 = vector.broadcast %25 : vector<1x10xf32> to vector<2x10xf32>
    %27 = arith.addf %23, %26 : vector<2x10xf32>
    %cst_25 = arith.constant dense<0xFF800000> : vector<2xf32>
    %28 = vector.multi_reduction <maximumf>, %27, %cst_25 [1] : vector<2x10xf32> to vector<2xf32>
    %29 = vector.shape_cast %28 : vector<2xf32> to vector<2x1xf32>
    %30 = vector.broadcast %29 : vector<2x1xf32> to vector<2x10xf32>
    %31 = arith.subf %27, %30 : vector<2x10xf32>
    %32 = math.exp %31 : vector<2x10xf32>
    %cst_26 = arith.constant dense<0.000000e+00> : vector<2xf32>
    %33 = vector.multi_reduction <add>, %32, %cst_26 [1] : vector<2x10xf32> to vector<2xf32>
    %34 = vector.shape_cast %33 : vector<2xf32> to vector<2x1xf32>
    %35 = vector.broadcast %34 : vector<2x1xf32> to vector<2x10xf32>
    %36 = arith.divf %32, %35 : vector<2x10xf32>
    %37 = arith.addf %0, %36 : vector<2x10xf32>
    %c1 = arith.constant 1 : index
    %c0_27 = arith.constant 0 : index
    %c0_28 = arith.constant 0 : index
    %38 = vector.load %arg0[%c1, %c0_27, %c0_28] : memref<3x2x400xf32, #tpu.memory_space<vmem>>, vector<1x2x400xf32>
    %39 = vector.shape_cast %38 : vector<1x2x400xf32> to vector<2x400xf32>
    %c1_29 = arith.constant 1 : index
    %c0_30 = arith.constant 0 : index
    %c0_31 = arith.constant 0 : index
    %40 = vector.load %arg1[%c1_29, %c0_30, %c0_31] : memref<3x400x120xf32, #tpu.memory_space<vmem>>, vector<1x400x120xf32>
    %41 = vector.shape_cast %40 : vector<1x400x120xf32> to vector<400x120xf32>
    %cst_32 = arith.constant dense<0.000000e+00> : vector<2x120xf32>
    %42 = tpu.matmul %39, %41, %cst_32 {dimension_numbers = #tpu.dot_dimension_numbers<[1], [0], [0], [1], [0, 0, 1, 1], [], []>} : vector<2x400xf32>, vector<400x120xf32>, vector<2x120xf32> -> vector<2x120xf32>
    %c1_33 = arith.constant 1 : index
    %c0_34 = arith.constant 0 : index
    %c0_35 = arith.constant 0 : index
    %43 = vector.load %arg2[%c1_33, %c0_34, %c0_35] : memref<3x1x120xf32, #tpu.memory_space<vmem>>, vector<1x1x120xf32>
    %44 = vector.shape_cast %43 : vector<1x1x120xf32> to vector<1x120xf32>
    %45 = vector.broadcast %44 : vector<1x120xf32> to vector<2x120xf32>
    %46 = arith.addf %42, %45 : vector<2x120xf32>
    %cst_36 = arith.constant 0.000000e+00 : f32
    %47 = vector.broadcast %cst_36 : f32 to vector<2x120xf32>
    %48 = arith.maximumf %46, %47 : vector<2x120xf32>
    %c1_37 = arith.constant 1 : index
    %c0_38 = arith.constant 0 : index
    %c0_39 = arith.constant 0 : index
    %49 = vector.load %arg3[%c1_37, %c0_38, %c0_39] : memref<3x120x84xf32, #tpu.memory_space<vmem>>, vector<1x120x84xf32>
    %50 = vector.shape_cast %49 : vector<1x120x84xf32> to vector<120x84xf32>
    %cst_40 = arith.constant dense<0.000000e+00> : vector<2x84xf32>
    %51 = tpu.matmul %48, %50, %cst_40 {dimension_numbers = #tpu.dot_dimension_numbers<[1], [0], [0], [1], [0, 0, 1, 1], [], []>} : vector<2x120xf32>, vector<120x84xf32>, vector<2x84xf32> -> vector<2x84xf32>
    %c1_41 = arith.constant 1 : index
    %c0_42 = arith.constant 0 : index
    %c0_43 = arith.constant 0 : index
    %52 = vector.load %arg4[%c1_41, %c0_42, %c0_43] : memref<3x1x84xf32, #tpu.memory_space<vmem>>, vector<1x1x84xf32>
    %53 = vector.shape_cast %52 : vector<1x1x84xf32> to vector<1x84xf32>
    %54 = vector.broadcast %53 : vector<1x84xf32> to vector<2x84xf32>
    %55 = arith.addf %51, %54 : vector<2x84xf32>
    %cst_44 = arith.constant 0.000000e+00 : f32
    %56 = vector.broadcast %cst_44 : f32 to vector<2x84xf32>
    %57 = arith.maximumf %55, %56 : vector<2x84xf32>
    %c1_45 = arith.constant 1 : index
    %c0_46 = arith.constant 0 : index
    %c0_47 = arith.constant 0 : index
    %58 = vector.load %arg5[%c1_45, %c0_46, %c0_47] : memref<3x84x10xf32, #tpu.memory_space<vmem>>, vector<1x84x10xf32>
    %59 = vector.shape_cast %58 : vector<1x84x10xf32> to vector<84x10xf32>
    %cst_48 = arith.constant dense<0.000000e+00> : vector<2x10xf32>
    %60 = tpu.matmul %57, %59, %cst_48 {dimension_numbers = #tpu.dot_dimension_numbers<[1], [0], [0], [1], [0, 0, 1, 1], [], []>} : vector<2x84xf32>, vector<84x10xf32>, vector<2x10xf32> -> vector<2x10xf32>
    %c1_49 = arith.constant 1 : index
    %c0_50 = arith.constant 0 : index
    %c0_51 = arith.constant 0 : index
    %61 = vector.load %arg6[%c1_49, %c0_50, %c0_51] : memref<3x1x10xf32, #tpu.memory_space<vmem>>, vector<1x1x10xf32>
    %62 = vector.shape_cast %61 : vector<1x1x10xf32> to vector<1x10xf32>
    %63 = vector.broadcast %62 : vector<1x10xf32> to vector<2x10xf32>
    %64 = arith.addf %60, %63 : vector<2x10xf32>
    %cst_52 = arith.constant dense<0xFF800000> : vector<2xf32>
    %65 = vector.multi_reduction <maximumf>, %64, %cst_52 [1] : vector<2x10xf32> to vector<2xf32>
    %66 = vector.shape_cast %65 : vector<2xf32> to vector<2x1xf32>
    %67 = vector.broadcast %66 : vector<2x1xf32> to vector<2x10xf32>
    %68 = arith.subf %64, %67 : vector<2x10xf32>
    %69 = math.exp %68 : vector<2x10xf32>
    %cst_53 = arith.constant dense<0.000000e+00> : vector<2xf32>
    %70 = vector.multi_reduction <add>, %69, %cst_53 [1] : vector<2x10xf32> to vector<2xf32>
    %71 = vector.shape_cast %70 : vector<2xf32> to vector<2x1xf32>
    %72 = vector.broadcast %71 : vector<2x1xf32> to vector<2x10xf32>
    %73 = arith.divf %69, %72 : vector<2x10xf32>
    %74 = arith.addf %37, %73 : vector<2x10xf32>
    %c2 = arith.constant 2 : index
    %c0_54 = arith.constant 0 : index
    %c0_55 = arith.constant 0 : index
    %75 = vector.load %arg0[%c2, %c0_54, %c0_55] : memref<3x2x400xf32, #tpu.memory_space<vmem>>, vector<1x2x400xf32>
    %76 = vector.shape_cast %75 : vector<1x2x400xf32> to vector<2x400xf32>
    %c2_56 = arith.constant 2 : index
    %c0_57 = arith.constant 0 : index
    %c0_58 = arith.constant 0 : index
    %77 = vector.load %arg1[%c2_56, %c0_57, %c0_58] : memref<3x400x120xf32, #tpu.memory_space<vmem>>, vector<1x400x120xf32>
    %78 = vector.shape_cast %77 : vector<1x400x120xf32> to vector<400x120xf32>
    %cst_59 = arith.constant dense<0.000000e+00> : vector<2x120xf32>
    %79 = tpu.matmul %76, %78, %cst_59 {dimension_numbers = #tpu.dot_dimension_numbers<[1], [0], [0], [1], [0, 0, 1, 1], [], []>} : vector<2x400xf32>, vector<400x120xf32>, vector<2x120xf32> -> vector<2x120xf32>
    %c2_60 = arith.constant 2 : index
    %c0_61 = arith.constant 0 : index
    %c0_62 = arith.constant 0 : index
    %80 = vector.load %arg2[%c2_60, %c0_61, %c0_62] : memref<3x1x120xf32, #tpu.memory_space<vmem>>, vector<1x1x120xf32>
    %81 = vector.shape_cast %80 : vector<1x1x120xf32> to vector<1x120xf32>
    %82 = vector.broadcast %81 : vector<1x120xf32> to vector<2x120xf32>
    %83 = arith.addf %79, %82 : vector<2x120xf32>
    %cst_63 = arith.constant 0.000000e+00 : f32
    %84 = vector.broadcast %cst_63 : f32 to vector<2x120xf32>
    %85 = arith.maximumf %83, %84 : vector<2x120xf32>
    %c2_64 = arith.constant 2 : index
    %c0_65 = arith.constant 0 : index
    %c0_66 = arith.constant 0 : index
    %86 = vector.load %arg3[%c2_64, %c0_65, %c0_66] : memref<3x120x84xf32, #tpu.memory_space<vmem>>, vector<1x120x84xf32>
    %87 = vector.shape_cast %86 : vector<1x120x84xf32> to vector<120x84xf32>
    %cst_67 = arith.constant dense<0.000000e+00> : vector<2x84xf32>
    %88 = tpu.matmul %85, %87, %cst_67 {dimension_numbers = #tpu.dot_dimension_numbers<[1], [0], [0], [1], [0, 0, 1, 1], [], []>} : vector<2x120xf32>, vector<120x84xf32>, vector<2x84xf32> -> vector<2x84xf32>
    %c2_68 = arith.constant 2 : index
    %c0_69 = arith.constant 0 : index
    %c0_70 = arith.constant 0 : index
    %89 = vector.load %arg4[%c2_68, %c0_69, %c0_70] : memref<3x1x84xf32, #tpu.memory_space<vmem>>, vector<1x1x84xf32>
    %90 = vector.shape_cast %89 : vector<1x1x84xf32> to vector<1x84xf32>
    %91 = vector.broadcast %90 : vector<1x84xf32> to vector<2x84xf32>
    %92 = arith.addf %88, %91 : vector<2x84xf32>
    %cst_71 = arith.constant 0.000000e+00 : f32
    %93 = vector.broadcast %cst_71 : f32 to vector<2x84xf32>
    %94 = arith.maximumf %92, %93 : vector<2x84xf32>
    %c2_72 = arith.constant 2 : index
    %c0_73 = arith.constant 0 : index
    %c0_74 = arith.constant 0 : index
    %95 = vector.load %arg5[%c2_72, %c0_73, %c0_74] : memref<3x84x10xf32, #tpu.memory_space<vmem>>, vector<1x84x10xf32>
    %96 = vector.shape_cast %95 : vector<1x84x10xf32> to vector<84x10xf32>
    %cst_75 = arith.constant dense<0.000000e+00> : vector<2x10xf32>
    %97 = tpu.matmul %94, %96, %cst_75 {dimension_numbers = #tpu.dot_dimension_numbers<[1], [0], [0], [1], [0, 0, 1, 1], [], []>} : vector<2x84xf32>, vector<84x10xf32>, vector<2x10xf32> -> vector<2x10xf32>
    %c2_76 = arith.constant 2 : index
    %c0_77 = arith.constant 0 : index
    %c0_78 = arith.constant 0 : index
    %98 = vector.load %arg6[%c2_76, %c0_77, %c0_78] : memref<3x1x10xf32, #tpu.memory_space<vmem>>, vector<1x1x10xf32>
    %99 = vector.shape_cast %98 : vector<1x1x10xf32> to vector<1x10xf32>
    %100 = vector.broadcast %99 : vector<1x10xf32> to vector<2x10xf32>
    %101 = arith.addf %97, %100 : vector<2x10xf32>
    %cst_79 = arith.constant dense<0xFF800000> : vector<2xf32>
    %102 = vector.multi_reduction <maximumf>, %101, %cst_79 [1] : vector<2x10xf32> to vector<2xf32>
    %103 = vector.shape_cast %102 : vector<2xf32> to vector<2x1xf32>
    %104 = vector.broadcast %103 : vector<2x1xf32> to vector<2x10xf32>
    %105 = arith.subf %101, %104 : vector<2x10xf32>
    %106 = math.exp %105 : vector<2x10xf32>
    %cst_80 = arith.constant dense<0.000000e+00> : vector<2xf32>
    %107 = vector.multi_reduction <add>, %106, %cst_80 [1] : vector<2x10xf32> to vector<2xf32>
    %108 = vector.shape_cast %107 : vector<2xf32> to vector<2x1xf32>
    %109 = vector.broadcast %108 : vector<2x1xf32> to vector<2x10xf32>
    %110 = arith.divf %106, %109 : vector<2x10xf32>
    %111 = arith.addf %74, %110 : vector<2x10xf32>
    %cst_81 = arith.constant 3.000000e+00 : f32
    %112 = vector.broadcast %cst_81 : f32 to vector<2x10xf32>
    %113 = arith.divf %111, %112 : vector<2x10xf32>
    %c0_82 = arith.constant 0 : index
    %c0_83 = arith.constant 0 : index
    %114 = vector.load %arg7[%c0_82, %c0_83] : memref<2x10xf32, #tpu.memory_space<vmem>>, vector<2x10xf32>
    tpu.vector_store %arg7[%c0_82, %c0_83], %113 {strides = array<i32>} : memref<2x10xf32, #tpu.memory_space<vmem>>, vector<2x10xf32>,
    return
  }
}

</mosaic_0001>

<bundles_post_ra>
// kernel: ensemble_forward.3
= control target key start
LH: loop header
LB: loop body
LE: loop exit
PB: predicated region body
PF: predicated region fallthrough
CT: control target
= control target key end

     0   :  { %v3541_v0 = vmov 0.0|0.0   ;;  %vm3542_vm0 = vmmov 0   ;;  %v3543_v6 = vmov 0.0   ;;  %vm230_vm1 = vcmask 1042432   ;;  %s5509_s4 = inlined_call_operand.vmem [shape: f32[75,18], index: 4, kind: input, shape index: {}]   ;;  %s5510_s0 = inlined_call_operand.vmem [shape: f32[392,75], index: 0, kind: input, shape index: {}]   ;;  %s5511_s1 = inlined_call_operand.vmem [shape: f32[392,75], index: 1, kind: input, shape index: {}]   ;;  %s5512_s2 = inlined_call_operand.vmem [shape: f32[392,75], index: 2, kind: input, shape index: {}]   ;;  %s5513_s3 = inlined_call_operand.vmem [shape: f32[392,75], index: 3, kind: input, shape index: {}]   ;;  %s5514_s5 = inlined_call_operand.vmem [shape: f32[1,18], index: 5, kind: input, shape index: {}]   ;;  %s5515_s6 = inlined_call_operand.vmem [shape: f32[392,18], index: 6, kind: output, shape index: {}]  }
   0x1   :  { %3473 = vmatprep.subr.bf16.mxu0 %v3541_v0  ;;  %v23_v1 = vld [vmem:[%s5509_s4] sm:$0xff]  ;;  %v24_v2 = vld [vmem:[%s5509_s4 + $0x8] sm:$0xff]  ;;  %3489 = vmatprep.subr.bf16.mxu1 %v3541_v0  ;;  %v25_v3 = vld [vmem:[%s5509_s4 + $0x10] sm:$0xff]  ;;  %vm3544_vm2 = vmmov 1   ;;  %vm82_vm4 = vcmask 613376   ;;  %vm2314_vm5 = vcmask 146432  }
   0x2   :  { %v3474_v4 = vpack.c.bf16 %v24_v2, %v23_v1  ;;  %v26_v5 = vld [vmem:[%s5509_s4 + $0x18] sm:$0xff]  ;;  %2825 = vmatprep.mubr.msk.f32.mxu0 %vm3542_vm0, %v3543_v6  ;;  %2992 = vmatprep.mubr.msk.f32.mxu1 %vm3542_vm0, %v3543_v6  ;;  %v27_v8 = vld [vmem:[%s5509_s4 + $0x20] sm:$0xff]  ;;  %v28_v9 = vld [vmem:[%s5509_s4 + $0x28] sm:$0xff] }
   0x3   :  { %v3477_v7 = vpack.c.bf16 %v26_v5, %v25_v3  ;;  %v3480_v10 = vpack.c.bf16 %v28_v9, %v27_v8  ;;  %v29_v11 = vld [vmem:[%s5509_s4 + $0x30] sm:$0xff]  ;;  %v30_v12 = vld [vmem:[%s5509_s4 + $0x38] sm:$0xff]  ;;  %v31_v14 = vld [vmem:[%s5509_s4 + $0x40] sm:$0xff] }
   0x4   :  { %3475 = vmatpush3.bf16.msra.mxu0 %v3474_v4  ;;  %3491 = vmatpush3.bf16.msra.mxu1 %v3474_v4  ;;  %v3483_v13 = vpack.c.bf16 %v30_v12, %v29_v11  ;;  %v32_v15 = vld [vmem:[%s5509_s4 + $0x48] sm:$0x7]  ;;  %vm3623_vm3 = vmpackc.low %vm230_vm1, %vm3544_vm2  ;;  %v33_v18 = vld [vmem:[%s5510_s0] sm:$0xff] }
   0x5   :  { %3476 = vmatprep.subr.bf16.mxu0 %v3541_v0  ;;  %3492 = vmatprep.subr.bf16.mxu1 %v3541_v0  ;;  %v3486_v16 = vpack.c.bf16 %v32_v15, %v31_v14  ;;  %v544_v19 = vld [vmem:[%s5511_s1] sm:$0xff]  ;;  %v34_v20 = vld [vmem:[%s5510_s0 + $0x8] sm:$0xff]  ;;  %v35_v22 = vld [vmem:[%s5510_s0 + $0x10] sm:$0xff] }
   0x6   :  { %v545_v21 = vld [vmem:[%s5511_s1 + $0x8] sm:$0xff]  ;;  %v546_v23 = vld [vmem:[%s5511_s1 + $0x10] sm:$0xff]  ;;  %v36_v24 = vld [vmem:[%s5510_s0 + $0x18] sm:$0xff] }
   0x7   :  { %v547_v25 = vld [vmem:[%s5511_s1 + $0x18] sm:$0xff]  ;;  %v37_v26 = vld [vmem:[%s5510_s0 + $0x20] sm:$0xff]  ;;  %v38_v28 = vld [vmem:[%s5510_s0 + $0x28] sm:$0xff] }
   0x8   :  { %3478 = vmatpush3.bf16.msra.mxu0 %v3477_v7  ;;  %3494 = vmatpush3.bf16.msra.mxu1 %v3477_v7  ;;  %v548_v27 = vld [vmem:[%s5511_s1 + $0x20] sm:$0xff]  ;;  %v549_v29 = vld [vmem:[%s5511_s1 + $0x28] sm:$0xff]  ;;  %v39_v30 = vld [vmem:[%s5510_s0 + $0x30] sm:$0xff] }
   0x9   :  { %3479 = vmatprep.subr.bf16.mxu0 %v3541_v0  ;;  %3495 = vmatprep.subr.bf16.mxu1 %v3541_v0  ;;  %v550_v31 = vld [vmem:[%s5511_s1 + $0x30] sm:$0xff]  ;;  %v40_v32 = vld [vmem:[%s5510_s0 + $0x38] sm:$0xff]  ;;  %v41_v34 = vld [vmem:[%s5510_s0 + $0x40] sm:$0xff] }
   0xa   :  { %v551_v33 = vld [vmem:[%s5511_s1 + $0x38] sm:$0xff]  ;;  %v552_v35 = vld [vmem:[%s5511_s1 + $0x40] sm:$0xff]  ;;  %v42_v36 = vld [vmem:[%s5510_s0 + $0x48] sm:$0xff] }
   0xb   :  { %v553_v37 = vld [vmem:[%s5511_s1 + $0x48] sm:$0xff]  ;;  %v43_v38 = vld [vmem:[%s5510_s0 + $0x50] sm:$0xff]  ;;  %v44_v40 = vld [vmem:[%s5510_s0 + $0x58] sm:$0xff] }
   0xc   :  { %3481 = vmatpush3.bf16.msra.mxu0 %v3480_v10  ;;  %3497 = vmatpush3.bf16.msra.mxu1 %v3480_v10  ;;  %v554_v39 = vld [vmem:[%s5511_s1 + $0x50] sm:$0xff]  ;;  %v555_v41 = vld [vmem:[%s5511_s1 + $0x58] sm:$0xff]  ;;  %v45_v42 = vld [vmem:[%s5510_s0 + $0x60] sm:$0xff] }
   0xd   :  { %3482 = vmatprep.subr.bf16.mxu0 %v3541_v0  ;;  %3498 = vmatprep.subr.bf16.mxu1 %v3541_v0  ;;  %v556_v43 = vld [vmem:[%s5511_s1 + $0x60] sm:$0xff]  ;;  %v46_v44 = vld [vmem:[%s5510_s0 + $0x68] sm:$0xff]  ;;  %v47_v46 = vld [vmem:[%s5510_s0 + $0x70] sm:$0xff] }
   0xe   :  { %v557_v45 = vld [vmem:[%s5511_s1 + $0x68] sm:$0xff]  ;;  %v558_v47 = vld [vmem:[%s5511_s1 + $0x70] sm:$0xff]  ;;  %v48_v48 = vld [vmem:[%s5510_s0 + $0x78] sm:$0xff] }
   0xf   :  { %v559_v49 = vld [vmem:[%s5511_s1 + $0x78] sm:$0xff]  ;;  %v49_v50 = vld [vmem:[%s5510_s0 + $0x80] sm:$0xff]  ;;  %v50_v52 = vld [vmem:[%s5510_s0 + $0x88] sm:$0xff] }
  0x10   :  { %3484 = vmatpush3.bf16.msra.mxu0 %v3483_v13  ;;  %3500 = vmatpush3.bf16.msra.mxu1 %v3483_v13  ;;  %v560_v51 = vld [vmem:[%s5511_s1 + $0x80] sm:$0xff]  ;;  %v561_v53 = vld [vmem:[%s5511_s1 + $0x88] sm:$0xff]  ;;  %v51_v54 = vld [vmem:[%s5510_s0 + $0x90] sm:$0xff] }
  0x11   :  { %3485 = vmatprep.subr.bf16.mxu0 %v3541_v0  ;;  %3501 = vmatprep.subr.bf16.mxu1 %v3541_v0  ;;  %v562_v55 = vld [vmem:[%s5511_s1 + $0x90] sm:$0xff]  ;;  %v52_v56 = vld [vmem:[%s5510_s0 + $0x98] sm:$0xff]  ;;  %v53_v58 = vld [vmem:[%s5510_s0 + $0xa0] sm:$0xff] }
  0x12   :  { %v563_v57 = vld [vmem:[%s5511_s1 + $0x98] sm:$0xff]  ;;  %v564_v59 = vld [vmem:[%s5511_s1 + $0xa0] sm:$0xff]  ;;  %v54_v60 = vld [vmem:[%s5510_s0 + $0xa8] sm:$0xff] }
  0x13   :  { %v565_v61 = vld [vmem:[%s5511_s1 + $0xa8] sm:$0xff]  ;;  %v55_v62 = vld [vmem:[%s5510_s0 + $0xb0] sm:$0xff]  ;;  %v567_v1 = vld [vmem:[%s5511_s1 + $0xb8] sm:$0xff] }
  0x14   :  { %3488 = vmatpush3.bf16.msk.msra.mxu0 %vm3623_vm3, %v3486_v16  ;;  %3504 = vmatpush3.bf16.msk.msra.mxu1 %vm3623_vm3, %v3486_v16  ;;  %v566_v63 = vld [vmem:[%s5511_s1 + $0xb0] sm:$0xff]  ;;  %v57_v2 = vld [vmem:[%s5510_s0 + $0xc0] sm:$0xff]  ;;  %v569_v5 = vld [vmem:[%s5511_s1 + $0xc8] sm:$0xff] }
  0x15   :  { %3505 = vmatprep.subr.bf16.mxu0 %v3541_v0  ;;  %3521 = vmatprep.subr.bf16.mxu1 %v3541_v0  ;;  %v568_v3 = vld [vmem:[%s5511_s1 + $0xc0] sm:$0xff]  ;;  %v570_v8 = vld [vmem:[%s5511_s1 + $0xd0] sm:$0xff]  ;;  %v60_v9 = vld [vmem:[%s5510_s0 + $0xd8] sm:$0xff] }
  0x16   :  { %v61_v11 = vld [vmem:[%s5510_s0 + $0xe0] sm:$0xff]  ;;  %v573_v14 = vld [vmem:[%s5511_s1 + $0xe8] sm:$0xff]  ;;  %v63_v15 = vld [vmem:[%s5510_s0 + $0xf0] sm:$0xff] }
  0x17   :  { %2826 = vmatmul.mubr.msk.f32.vlgmr.msra.gmra.mrb[0].mxu0 %vm82_vm4, %v33_v18  ;;  %2993 = vmatmul.mubr.msk.f32.vlgmr.msra.gmra.mrb[0].mxu1 %vm82_vm4, %v544_v19  ;;  %v572_v12 = vld [vmem:[%s5511_s1 + $0xe0] sm:$0xff]  ;;  %v64_v17 = vld [vmem:[%s5510_s0 + $0xf8] sm:$0xff] }
  0x18   :  { %3507 = vmatpush3.bf16.msra.mxu0 %v3474_v4  ;;  %2828 = vmatprep.mubr.msk.f32.mxu0 %vm3542_vm0, %v3543_v6  ;;  %v575_v18 = vld [vmem:[%s5511_s1 + $0xf8] sm:$0xff]  ;;  %v65_v19 = vld [vmem:[%s5510_s0 + $0x100] sm:$0xff] }
  0x19   :  { %3523 = vmatpush3.bf16.msra.mxu1 %v3474_v4  ;;  %2995 = vmatprep.mubr.msk.f32.mxu1 %vm3542_vm0, %v3543_v6  ;;  %v58_v4 = vld [vmem:[%s5510_s0 + $0xc8] sm:$0xff] }
  0x1a   :  { %3508 = vmatprep.subr.bf16.mxu0 %v3541_v0  ;;  %3524 = vmatprep.subr.bf16.mxu1 %v3541_v0 }
  0x1b   :  { %2829 = vmatmul.mubr.msk.f32.gmra.mrb[2].mxu0 %vm82_vm4, %v34_v20  ;;  %2996 = vmatmul.mubr.msk.f32.gmra.mrb[2].mxu1 %vm82_vm4, %v545_v21  ;;  %v576_v20 = vld [vmem:[%s5511_s1 + $0x100] sm:$0xff]  ;;  %v66_v21 = vld [vmem:[%s5510_s0 + $0x108] sm:$0xff] }
  0x1c   :  { %2831 = vmatprep.mubr.msk.f32.mxu0 %vm3542_vm0, %v3543_v6  ;;  %2998 = vmatprep.mubr.msk.f32.mxu1 %vm3542_vm0, %v3543_v6 }
  0x1d   :  { %3510 = vmatpush3.bf16.msra.mxu0 %v3477_v7  ;;  %3526 = vmatpush3.bf16.msra.mxu1 %v3477_v7  ;;  %v59_v7 = vld [vmem:[%s5510_s0 + $0xd0] sm:$0xff] }
  0x1e   :  { %3511 = vmatprep.subr.bf16.mxu0 %v3541_v0  ;;  %3527 = vmatprep.subr.bf16.mxu1 %v3541_v0 }
  0x1f   :  { %2832 = vmatmul.mubr.msk.f32.gmra.mrb[4].mxu0 %vm82_vm4, %v35_v22  ;;  %2999 = vmatmul.mubr.msk.f32.gmra.mrb[4].mxu1 %vm82_vm4, %v546_v23  ;;  %v577_v22 = vld [vmem:[%s5511_s1 + $0x108] sm:$0xff]  ;;  %v67_v23 = vld [vmem:[%s5510_s0 + $0x110] sm:$0xff] }
  0x20   :  { %2834 = vmatprep.mubr.msk.f32.mxu0 %vm3542_vm0, %v3543_v6  ;;  %3001 = vmatprep.mubr.msk.f32.mxu1 %vm3542_vm0, %v3543_v6 }
  0x21   :  { %3513 = vmatpush3.bf16.msra.mxu0 %v3480_v10  ;;  %3529 = vmatpush3.bf16.msra.mxu1 %v3480_v10  ;;  %v571_v10 = vld [vmem:[%s5511_s1 + $0xd8] sm:$0xff] }
  0x22   :  { %3514 = vmatprep.subr.bf16.mxu0 %v3541_v0  ;;  %3530 = vmatprep.subr.bf16.mxu1 %v3541_v0 }
  0x23   :  { %2835 = vmatmul.mubr.msk.f32.gmra.mrb[6].mxu0 %vm82_vm4, %v36_v24  ;;  %3002 = vmatmul.mubr.msk.f32.gmra.mrb[6].mxu1 %vm82_vm4, %v547_v25  ;;  %v578_v24 = vld [vmem:[%s5511_s1 + $0x110] sm:$0xff]  ;;  %v68_v25 = vld [vmem:[%s5510_s0 + $0x118] sm:$0xff] }
  0x24   :  { %2837 = vmatprep.mubr.msk.f32.mxu0 %vm3542_vm0, %v3543_v6  ;;  %3004 = vmatprep.mubr.msk.f32.mxu1 %vm3542_vm0, %v3543_v6 }
  0x25   :  { %3516 = vmatpush3.bf16.msra.mxu0 %v3483_v13  ;;  %3532 = vmatpush3.bf16.msra.mxu1 %v3483_v13  ;;  %v62_v13 = vld [vmem:[%s5510_s0 + $0xe8] sm:$0xff] }
  0x26   :  { %3517 = vmatprep.subr.bf16.mxu0 %v3541_v0  ;;  %3533 = vmatprep.subr.bf16.mxu1 %v3541_v0  ;;  %v56_v0 = vld [vmem:[%s5510_s0 + $0xb8] sm:$0xff] }
  0x27   :  { %2838 = vmatmul.mubr.msk.f32.gmra.mrb[8].mxu0 %vm82_vm4, %v37_v26  ;;  %3005 = vmatmul.mubr.msk.f32.gmra.mrb[8].mxu1 %vm82_vm4, %v548_v27  ;;  %v579_v26 = vld [vmem:[%s5511_s1 + $0x118] sm:$0xff]  ;;  %v69_v27 = vld [vmem:[%s5510_s0 + $0x120] sm:$0xff] }
  0x28   :  { %2840 = vmatprep.mubr.msk.f32.mxu0 %vm3542_vm0, %v3543_v6  ;;  %3007 = vmatprep.mubr.msk.f32.mxu1 %vm3542_vm0, %v3543_v6 }
  0x29   :  { %3520 = vmatpush3.bf16.msk.msra.mxu0 %vm3623_vm3, %v3486_v16  ;;  %3536 = vmatpush3.bf16.msk.msra.mxu1 %vm3623_vm3, %v3486_v16  ;;  %v574_v16 = vld [vmem:[%s5511_s1 + $0xf0] sm:$0xff] }
  0x2b   :  { %2841 = vmatmul.mubr.msk.f32.gmra.mrb[10].mxu0 %vm82_vm4, %v38_v28  ;;  %3008 = vmatmul.mubr.msk.f32.gmra.mrb[10].mxu1 %vm82_vm4, %v549_v29  ;;  %v580_v28 = vld [vmem:[%s5511_s1 + $0x120] sm:$0xff]  ;;  %v70_v29 = vld [vmem:[%s5510_s0 + $0x128] sm:$0xff] }
  0x2c   :  { %2843 = vmatprep.mubr.msk.f32.mxu0 %vm3542_vm0, %v3543_v6  ;;  %3010 = vmatprep.mubr.msk.f32.mxu1 %vm3542_vm0, %v3543_v6 }
  0x2f   :  { %2844 = vmatmul.mubr.msk.f32.gmra.mrb[12].mxu0 %vm82_vm4, %v39_v30  ;;  %3011 = vmatmul.mubr.msk.f32.gmra.mrb[12].mxu1 %vm82_vm4, %v550_v31  ;;  %v581_v30 = vld [vmem:[%s5511_s1 + $0x128] sm:$0xff]  ;;  %v71_v31 = vld [vmem:[%s5510_s0 + $0x130] sm:$0xff] }
  0x30   :  { %2846 = vmatprep.mubr.msk.f32.mxu0 %vm3542_vm0, %v3543_v6  ;;  %3013 = vmatprep.mubr.msk.f32.mxu1 %vm3542_vm0, %v3543_v6 }
  0x33   :  { %2847 = vmatmul.mubr.msk.f32.gmra.mrb[14].mxu0 %vm82_vm4, %v40_v32  ;;  %3014 = vmatmul.mubr.msk.f32.gmra.mrb[14].mxu1 %vm82_vm4, %v551_v33  ;;  %v582_v32 = vld [vmem:[%s5511_s1 + $0x130] sm:$0xff]  ;;  %v72_v33 = vld [vmem:[%s5510_s0 + $0x138] sm:$0xff] }
  0x34   :  { %2849 = vmatprep.mubr.msk.f32.mxu0 %vm3542_vm0, %v3543_v6  ;;  %3016 = vmatprep.mubr.msk.f32.mxu1 %vm3542_vm0, %v3543_v6 }
  0x37   :  { %2850 = vmatmul.mubr.msk.f32.gmra.mrb[16].mxu0 %vm82_vm4, %v41_v34  ;;  %3017 = vmatmul.mubr.msk.f32.gmra.mrb[16].mxu1 %vm82_vm4, %v552_v35  ;;  %v583_v34 = vld [vmem:[%s5511_s1 + $0x138] sm:$0xff]  ;;  %v73_v35 = vld [vmem:[%s5510_s0 + $0x140] sm:$0xff] }
  0x38   :  { %2852 = vmatprep.mubr.msk.f32.mxu0 %vm3542_vm0, %v3543_v6  ;;  %3019 = vmatprep.mubr.msk.f32.mxu1 %vm3542_vm0, %v3543_v6 }
  0x3b   :  { %2853 = vmatmul.mubr.msk.f32.gmra.mrb[18].mxu0 %vm82_vm4, %v42_v36  ;;  %3020 = vmatmul.mubr.msk.f32.gmra.mrb[18].mxu1 %vm82_vm4, %v553_v37  ;;  %v584_v36 = vld [vmem:[%s5511_s1 + $0x140] sm:$0xff]  ;;  %v74_v37 = vld [vmem:[%s5510_s0 + $0x148] sm:$0xff] }
  0x3c   :  { %2855 = vmatprep.mubr.msk.f32.mxu0 %vm3542_vm0, %v3543_v6  ;;  %3022 = vmatprep.mubr.msk.f32.mxu1 %vm3542_vm0, %v3543_v6 }
  0x3f   :  { %2856 = vmatmul.mubr.msk.f32.gmra.mrb[20].mxu0 %vm82_vm4, %v43_v38  ;;  %3023 = vmatmul.mubr.msk.f32.gmra.mrb[20].mxu1 %vm82_vm4, %v554_v39  ;;  %v585_v38 = vld [vmem:[%s5511_s1 + $0x148] sm:$0xff]  ;;  %v75_v39 = vld [vmem:[%s5510_s0 + $0x150] sm:$0xff] }
  0x40   :  { %2858 = vmatprep.mubr.msk.f32.mxu0 %vm3542_vm0, %v3543_v6  ;;  %3025 = vmatprep.mubr.msk.f32.mxu1 %vm3542_vm0, %v3543_v6 }
  0x43   :  { %2859 = vmatmul.mubr.msk.f32.gmra.mrb[22].mxu0 %vm82_vm4, %v44_v40  ;;  %3026 = vmatmul.mubr.msk.f32.gmra.mrb[22].mxu1 %vm82_vm4, %v555_v41  ;;  %v586_v40 = vld [vmem:[%s5511_s1 + $0x150] sm:$0xff]  ;;  %v76_v41 = vld [vmem:[%s5510_s0 + $0x158] sm:$0xff] }
  0x44   :  { %2861 = vmatprep.mubr.msk.f32.mxu0 %vm3542_vm0, %v3543_v6  ;;  %3028 = vmatprep.mubr.msk.f32.mxu1 %vm3542_vm0, %v3543_v6 }
  0x47   :  { %2862 = vmatmul.mubr.msk.f32.gmra.mrb[24].mxu0 %vm82_vm4, %v45_v42  ;;  %3029 = vmatmul.mubr.msk.f32.gmra.mrb[24].mxu1 %vm82_vm4, %v556_v43  ;;  %v587_v42 = vld [vmem:[%s5511_s1 + $0x158] sm:$0xff]  ;;  %v77_v43 = vld [vmem:[%s5510_s0 + $0x160] sm:$0xff] }
  0x48   :  { %2864 = vmatprep.mubr.msk.f32.mxu0 %vm3542_vm0, %v3543_v6  ;;  %3031 = vmatprep.mubr.msk.f32.mxu1 %vm3542_vm0, %v3543_v6 }
  0x4b   :  { %2865 = vmatmul.mubr.msk.f32.gmra.mrb[26].mxu0 %vm82_vm4, %v46_v44  ;;  %3032 = vmatmul.mubr.msk.f32.gmra.mrb[26].mxu1 %vm82_vm4, %v557_v45  ;;  %v588_v44 = vld [vmem:[%s5511_s1 + $0x160] sm:$0xff]  ;;  %v78_v45 = vld [vmem:[%s5510_s0 + $0x168] sm:$0xff] }
  0x4c   :  { %2867 = vmatprep.mubr.msk.f32.mxu0 %vm3542_vm0, %v3543_v6  ;;  %3034 = vmatprep.mubr.msk.f32.mxu1 %vm3542_vm0, %v3543_v6 }
  0x4f   :  { %2868 = vmatmul.mubr.msk.f32.gmra.mrb[28].mxu0 %vm82_vm4, %v47_v46  ;;  %3035 = vmatmul.mubr.msk.f32.gmra.mrb[28].mxu1 %vm82_vm4, %v558_v47  ;;  %v589_v46 = vld [vmem:[%s5511_s1 + $0x168] sm:$0xff]  ;;  %v79_v47 = vld [vmem:[%s5510_s0 + $0x170] sm:$0xff] }
  0x50   :  { %2870 = vmatprep.mubr.msk.f32.mxu0 %vm3542_vm0, %v3543_v6  ;;  %3037 = vmatprep.mubr.msk.f32.mxu1 %vm3542_vm0, %v3543_v6 }
  0x53   :  { %2871 = vmatmul.mubr.msk.f32.gmra.mrb[30].mxu0 %vm82_vm4, %v48_v48  ;;  %3038 = vmatmul.mubr.msk.f32.gmra.mrb[30].mxu1 %vm82_vm4, %v559_v49  ;;  %v590_v48 = vld [vmem:[%s5511_s1 + $0x170] sm:$0xff]  ;;  %v80_v49 = vld [vmem:[%s5510_s0 + $0x178] sm:$0xff] }
  0x54   :  { %2873 = vmatprep.mubr.msk.f32.mxu0 %vm3542_vm0, %v3543_v6  ;;  %3040 = vmatprep.mubr.msk.f32.mxu1 %vm3542_vm0, %v3543_v6 }
  0x57   :  { %2874 = vmatmul.mubr.msk.f32.gmra.mrb[32].mxu0 %vm82_vm4, %v49_v50  ;;  %3041 = vmatmul.mubr.msk.f32.gmra.mrb[32].mxu1 %vm82_vm4, %v560_v51  ;;  %v591_v50 = vld [vmem:[%s5511_s1 + $0x178] sm:$0xff]  ;;  %v81_v51 = vld [vmem:[%s5510_s0 + $0x180] sm:$0xff] }
  0x58   :  { %2876 = vmatprep.mubr.msk.f32.mxu0 %vm3542_vm0, %v3543_v6  ;;  %3043 = vmatprep.mubr.msk.f32.mxu1 %vm3542_vm0, %v3543_v6 }
  0x5b   :  { %2877 = vmatmul.mubr.msk.f32.gmra.mrb[34].mxu0 %vm82_vm4, %v50_v52  ;;  %3044 = vmatmul.mubr.msk.f32.gmra.mrb[34].mxu1 %vm82_vm4, %v561_v53  ;;  %v592_v52 = vld [vmem:[%s5511_s1 + $0x180] sm:$0xff] }
  0x5c   :  { %2879 = vmatprep.mubr.msk.f32.mxu0 %vm3542_vm0, %v3543_v6  ;;  %3046 = vmatprep.mubr.msk.f32.mxu1 %vm3542_vm0, %v3543_v6  ;;  %v1099_v53 = vld [vmem:[%s5512_s2] sm:$0xff] }
  0x5f   :  { %2880 = vmatmul.mubr.msk.f32.gmra.mrb[36].mxu0 %vm82_vm4, %v51_v54  ;;  %3047 = vmatmul.mubr.msk.f32.gmra.mrb[36].mxu1 %vm82_vm4, %v562_v55  ;;  %v1654_v54 = vld [vmem:[%s5513_s3] sm:$0xff]  ;;  %v1100_v55 = vld [vmem:[%s5512_s2 + $0x8] sm:$0xff] }
  0x60   :  { %2882 = vmatprep.mubr.msk.f32.mxu0 %vm3542_vm0, %v3543_v6  ;;  %3049 = vmatprep.mubr.msk.f32.mxu1 %vm3542_vm0, %v3543_v6 }
  0x63   :  { %2883 = vmatmul.mubr.msk.f32.gmra.mrb[38].mxu0 %vm82_vm4, %v52_v56  ;;  %3050 = vmatmul.mubr.msk.f32.gmra.mrb[38].mxu1 %vm82_vm4, %v563_v57  ;;  %v1655_v56 = vld [vmem:[%s5513_s3 + $0x8] sm:$0xff]  ;;  %v1101_v57 = vld [vmem:[%s5512_s2 + $0x10] sm:$0xff] }
  0x64   :  { %2885 = vmatprep.mubr.msk.f32.mxu0 %vm3542_vm0, %v3543_v6  ;;  %3052 = vmatprep.mubr.msk.f32.mxu1 %vm3542_vm0, %v3543_v6 }
  0x67   :  { %2886 = vmatmul.mubr.msk.f32.gmra.mrb[40].mxu0 %vm82_vm4, %v53_v58  ;;  %3053 = vmatmul.mubr.msk.f32.gmra.mrb[40].mxu1 %vm82_vm4, %v564_v59  ;;  %v1656_v58 = vld [vmem:[%s5513_s3 + $0x10] sm:$0xff]  ;;  %v1102_v59 = vld [vmem:[%s5512_s2 + $0x18] sm:$0xff] }
  0x68   :  { %2888 = vmatprep.mubr.msk.f32.mxu0 %vm3542_vm0, %v3543_v6  ;;  %3055 = vmatprep.mubr.msk.f32.mxu1 %vm3542_vm0, %v3543_v6 }
  0x6b   :  { %2889 = vmatmul.mubr.msk.f32.gmra.mrb[42].mxu0 %vm82_vm4, %v54_v60  ;;  %3056 = vmatmul.mubr.msk.f32.gmra.mrb[42].mxu1 %vm82_vm4, %v565_v61  ;;  %v1657_v60 = vld [vmem:[%s5513_s3 + $0x18] sm:$0xff]  ;;  %v1103_v61 = vld [vmem:[%s5512_s2 + $0x20] sm:$0xff] }
  0x6c   :  { %2891 = vmatprep.mubr.msk.f32.mxu0 %vm3542_vm0, %v3543_v6  ;;  %3058 = vmatprep.mubr.msk.f32.mxu1 %vm3542_vm0, %v3543_v6 }
  0x6f   :  { %2892 = vmatmul.mubr.msk.f32.gmra.mrb[44].mxu0 %vm82_vm4, %v55_v62  ;;  %3059 = vmatmul.mubr.msk.f32.gmra.mrb[44].mxu1 %vm82_vm4, %v566_v63  ;;  %v1658_v62 = vld [vmem:[%s5513_s3 + $0x20] sm:$0xff] }
  0x70   :  { %2894 = vmatprep.mubr.msk.f32.mxu0 %vm3542_vm0, %v3543_v6  ;;  %3061 = vmatprep.mubr.msk.f32.mxu1 %vm3542_vm0, %v3543_v6 }
  0x73   :  { %2895 = vmatmul.mubr.msk.f32.gmra.mrb[46].mxu0 %vm82_vm4, %v56_v0  ;;  %3062 = vmatmul.mubr.msk.f32.gmra.mrb[46].mxu1 %vm82_vm4, %v567_v1 }
  0x74   :  { %2897 = vmatprep.mubr.msk.f32.mxu0 %vm3542_vm0, %v3543_v6  ;;  %3064 = vmatprep.mubr.msk.f32.mxu1 %vm3542_vm0, %v3543_v6 }
  0x77   :  { %2898 = vmatmul.mubr.msk.f32.gmra.mrb[48].mxu0 %vm82_vm4, %v57_v2  ;;  %3065 = vmatmul.mubr.msk.f32.gmra.mrb[48].mxu1 %vm82_vm4, %v568_v3 }
  0x78   :  { %2900 = vmatprep.mubr.msk.f32.mxu0 %vm3542_vm0, %v3543_v6  ;;  %3067 = vmatprep.mubr.msk.f32.mxu1 %vm3542_vm0, %v3543_v6 }
  0x7b   :  { %2901 = vmatmul.mubr.msk.f32.gmra.mrb[50].mxu0 %vm82_vm4, %v58_v4  ;;  %3068 = vmatmul.mubr.msk.f32.gmra.mrb[50].mxu1 %vm82_vm4, %v569_v5  ;;  %v1104_v4 = vld [vmem:[%s5512_s2 + $0x28] sm:$0xff] }
  0x7c   :  { %2903 = vmatprep.mubr.msk.f32.mxu0 %vm3542_vm0, %v3543_v6  ;;  %3070 = vmatprep.mubr.msk.f32.mxu1 %vm3542_vm0, %v3543_v6  ;;  %v1659_v5 = vld [vmem:[%s5513_s3 + $0x28] sm:$0xff] }
  0x7f   :  { %2904 = vmatmul.mubr.msk.f32.gmra.mrb[52].mxu0 %vm82_vm4, %v59_v7  ;;  %3071 = vmatmul.mubr.msk.f32.gmra.mrb[52].mxu1 %vm82_vm4, %v570_v8 }
  0x80   :  { %2906 = vmatprep.mubr.msk.f32.mxu0 %vm3542_vm0, %v3543_v6  ;;  %3073 = vmatprep.mubr.msk.f32.mxu1 %vm3542_vm0, %v3543_v6 }
  0x83   :  { %2907 = vmatmul.mubr.msk.f32.gmra.mrb[54].mxu0 %vm82_vm4, %v60_v9  ;;  %3074 = vmatmul.mubr.msk.f32.gmra.mrb[54].mxu1 %vm82_vm4, %v571_v10  ;;  %v1131_v10 = vld [vmem:[%s5512_s2 + $0x100] sm:$0xff] }
  0x84   :  { %2909 = vmatprep.mubr.msk.f32.mxu0 %vm3542_vm0, %v3543_v6  ;;  %3076 = vmatprep.mubr.msk.f32.mxu1 %vm3542_vm0, %v3543_v6 }
  0x87   :  { %2910 = vmatmul.mubr.msk.f32.gmra.mrb[56].mxu0 %vm82_vm4, %v61_v11  ;;  %3077 = vmatmul.mubr.msk.f32.gmra.mrb[56].mxu1 %vm82_vm4, %v572_v12  ;;  %v1105_v12 = vld [vmem:[%s5512_s2 + $0x30] sm:$0xff] }
  0x88   :  { %2912 = vmatprep.mubr.msk.f32.mxu0 %vm3542_vm0, %v3543_v6  ;;  %3079 = vmatprep.mubr.msk.f32.mxu1 %vm3542_vm0, %v3543_v6 }
  0x8b   :  { %2913 = vmatmul.mubr.msk.f32.gmra.mrb[58].mxu0 %vm82_vm4, %v62_v13  ;;  %3080 = vmatmul.mubr.msk.f32.gmra.mrb[58].mxu1 %vm82_vm4, %v573_v14  ;;  %v1660_v13 = vld [vmem:[%s5513_s3 + $0x30] sm:$0xff] }
  0x8c   :  { %2915 = vmatprep.mubr.msk.f32.mxu0 %vm3542_vm0, %v3543_v6  ;;  %3082 = vmatprep.mubr.msk.f32.mxu1 %vm3542_vm0, %v3543_v6 }
  0x8f   :  { %2916 = vmatmul.mubr.msk.f32.gmra.mrb[60].mxu0 %vm82_vm4, %v63_v15  ;;  %3083 = vmatmul.mubr.msk.f32.gmra.mrb[60].mxu1 %vm82_vm4, %v574_v16 }
  0x90   :  { %2918 = vmatprep.mubr.msk.f32.mxu0 %vm3542_vm0, %v3543_v6  ;;  %3085 = vmatprep.mubr.msk.f32.mxu1 %vm3542_vm0, %v3543_v6 }
  0x93   :  { %2919 = vmatmul.mubr.msk.f32.gmra.mrb[62].mxu0 %vm82_vm4, %v64_v17  ;;  %3086 = vmatmul.mubr.msk.f32.gmra.mrb[62].mxu1 %vm82_vm4, %v575_v18 }
  0x94   :  { %2921 = vmatprep.mubr.msk.f32.mxu0 %vm3542_vm0, %v3543_v6  ;;  %3088 = vmatprep.mubr.msk.f32.mxu1 %vm3542_vm0, %v3543_v6 }
  0x97   :  { %2922 = vmatmul.mubr.msk.f32.gmra.mrb[64].mxu0 %vm82_vm4, %v65_v19  ;;  %3089 = vmatmul.mubr.msk.f32.gmra.mrb[64].mxu1 %vm82_vm4, %v576_v20  ;;  %v1106_v19 = vld [vmem:[%s5512_s2 + $0x38] sm:$0xff] }
  0x98   :  { %2924 = vmatprep.mubr.msk.f32.mxu0 %vm3542_vm0, %v3543_v6  ;;  %3091 = vmatprep.mubr.msk.f32.mxu1 %vm3542_vm0, %v3543_v6  ;;  %v1661_v20 = vld [vmem:[%s5513_s3 + $0x38] sm:$0xff] }
  0x9b   :  { %2925 = vmatmul.mubr.msk.f32.gmra.mrb[66].mxu0 %vm82_vm4, %v66_v21  ;;  %3092 = vmatmul.mubr.msk.f32.gmra.mrb[66].mxu1 %vm82_vm4, %v577_v22 }
  0x9c   :  { %2927 = vmatprep.mubr.msk.f32.mxu0 %vm3542_vm0, %v3543_v6  ;;  %3094 = vmatprep.mubr.msk.f32.mxu1 %vm3542_vm0, %v3543_v6 }
  0x9f   :  { %2928 = vmatmul.mubr.msk.f32.gmra.mrb[68].mxu0 %vm82_vm4, %v67_v23  ;;  %3095 = vmatmul.mubr.msk.f32.gmra.mrb[68].mxu1 %vm82_vm4, %v578_v24  ;;  %v1130_v24 = vld [vmem:[%s5512_s2 + $0xf8] sm:$0xff] }
  0xa0   :  { %2930 = vmatprep.mubr.msk.f32.mxu0 %vm3542_vm0, %v3543_v6  ;;  %3097 = vmatprep.mubr.msk.f32.mxu1 %vm3542_vm0, %v3543_v6 }
  0xa3   :  { %2931 = vmatmul.mubr.msk.f32.gmra.mrb[70].mxu0 %vm82_vm4, %v68_v25  ;;  %3098 = vmatmul.mubr.msk.f32.gmra.mrb[70].mxu1 %vm82_vm4, %v579_v26  ;;  %v1107_v26 = vld [vmem:[%s5512_s2 + $0x40] sm:$0xff] }
  0xa4   :  { %2933 = vmatprep.mubr.msk.f32.mxu0 %vm3542_vm0, %v3543_v6  ;;  %3100 = vmatprep.mubr.msk.f32.mxu1 %vm3542_vm0, %v3543_v6 }
  0xa7   :  { %2934 = vmatmul.mubr.msk.f32.gmra.mrb[72].mxu0 %vm82_vm4, %v69_v27  ;;  %3101 = vmatmul.mubr.msk.f32.gmra.mrb[72].mxu1 %vm82_vm4, %v580_v28  ;;  %v1662_v27 = vld [vmem:[%s5513_s3 + $0x40] sm:$0xff] }
  0xa8   :  { %2936 = vmatprep.mubr.msk.f32.mxu0 %vm3542_vm0, %v3543_v6  ;;  %3103 = vmatprep.mubr.msk.f32.mxu1 %vm3542_vm0, %v3543_v6 }
  0xab   :  { %2937 = vmatmul.mubr.msk.f32.gmra.mrb[74].mxu0 %vm82_vm4, %v70_v29  ;;  %3104 = vmatmul.mubr.msk.f32.gmra.mrb[74].mxu1 %vm82_vm4, %v581_v30 }
  0xac   :  { %2939 = vmatprep.mubr.msk.f32.mxu0 %vm3542_vm0, %v3543_v6  ;;  %3106 = vmatprep.mubr.msk.f32.mxu1 %vm3542_vm0, %v3543_v6 }
  0xaf   :  { %2940 = vmatmul.mubr.msk.f32.gmra.mrb[76].mxu0 %vm82_vm4, %v71_v31  ;;  %3107 = vmatmul.mubr.msk.f32.gmra.mrb[76].mxu1 %vm82_vm4, %v582_v32 }
  0xb0   :  { %2942 = vmatprep.mubr.msk.f32.mxu0 %vm3542_vm0, %v3543_v6  ;;  %3109 = vmatprep.mubr.msk.f32.mxu1 %vm3542_vm0, %v3543_v6 }
  0xb3   :  { %2943 = vmatmul.mubr.msk.f32.gmra.mrb[78].mxu0 %vm82_vm4, %v72_v33  ;;  %3110 = vmatmul.mubr.msk.f32.gmra.mrb[78].mxu1 %vm82_vm4, %v583_v34  ;;  %v1108_v33 = vld [vmem:[%s5512_s2 + $0x48] sm:$0xff] }
  0xb4   :  { %2945 = vmatprep.mubr.msk.f32.mxu0 %vm3542_vm0, %v3543_v6  ;;  %3112 = vmatprep.mubr.msk.f32.mxu1 %vm3542_vm0, %v3543_v6  ;;  %v1663_v34 = vld [vmem:[%s5513_s3 + $0x48] sm:$0xff] }
  0xb7   :  { %2946 = vmatmul.mubr.msk.f32.gmra.mrb[80].mxu0 %vm82_vm4, %v73_v35  ;;  %3113 = vmatmul.mubr.msk.f32.gmra.mrb[80].mxu1 %vm82_vm4, %v584_v36 }
  0xb8   :  { %2948 = vmatprep.mubr.msk.f32.mxu0 %vm3542_vm0, %v3543_v6  ;;  %3115 = vmatprep.mubr.msk.f32.mxu1 %vm3542_vm0, %v3543_v6 }
  0xbb   :  { %2949 = vmatmul.mubr.msk.f32.gmra.mrb[82].mxu0 %vm82_vm4, %v74_v37  ;;  %3116 = vmatmul.mubr.msk.f32.gmra.mrb[82].mxu1 %vm82_vm4, %v585_v38  ;;  %v1129_v38 = vld [vmem:[%s5512_s2 + $0xf0] sm:$0xff] }
  0xbc   :  { %2951 = vmatprep.mubr.msk.f32.mxu0 %vm3542_vm0, %v3543_v6  ;;  %3118 = vmatprep.mubr.msk.f32.mxu1 %vm3542_vm0, %v3543_v6 }
  0xbf   :  { %2952 = vmatmul.mubr.msk.f32.gmra.mrb[84].mxu0 %vm82_vm4, %v75_v39  ;;  %3119 = vmatmul.mubr.msk.f32.gmra.mrb[84].mxu1 %vm82_vm4, %v586_v40  ;;  %v1109_v40 = vld [vmem:[%s5512_s2 + $0x50] sm:$0xff] }
  0xc0   :  { %2954 = vmatprep.mubr.msk.f32.mxu0 %vm3542_vm0, %v3543_v6  ;;  %3121 = vmatprep.mubr.msk.f32.mxu1 %vm3542_vm0, %v3543_v6 }
  0xc3   :  { %2955 = vmatmul.mubr.msk.f32.gmra.mrb[86].mxu0 %vm82_vm4, %v76_v41  ;;  %3122 = vmatmul.mubr.msk.f32.gmra.mrb[86].mxu1 %vm82_vm4, %v587_v42  ;;  %v1664_v41 = vld [vmem:[%s5513_s3 + $0x50] sm:$0xff] }
  0xc4   :  { %2957 = vmatprep.mubr.msk.f32.mxu0 %vm3542_vm0, %v3543_v6  ;;  %3124 = vmatprep.mubr.msk.f32.mxu1 %vm3542_vm0, %v3543_v6 }
  0xc7   :  { %2958 = vmatmul.mubr.msk.f32.gmra.mrb[88].mxu0 %vm82_vm4, %v77_v43  ;;  %3125 = vmatmul.mubr.msk.f32.gmra.mrb[88].mxu1 %vm82_vm4, %v588_v44 }
  0xc8   :  { %2960 = vmatprep.mubr.msk.f32.mxu0 %vm3542_vm0, %v3543_v6  ;;  %3127 = vmatprep.mubr.msk.f32.mxu1 %vm3542_vm0, %v3543_v6 }
  0xcb   :  { %2961 = vmatmul.mubr.msk.f32.gmra.mrb[90].mxu0 %vm82_vm4, %v78_v45  ;;  %3128 = vmatmul.mubr.msk.f32.gmra.mrb[90].mxu1 %vm82_vm4, %v589_v46 }
  0xcc   :  { %2963 = vmatprep.mubr.msk.f32.mxu0 %vm3542_vm0, %v3543_v6  ;;  %3130 = vmatprep.mubr.msk.f32.mxu1 %vm3542_vm0, %v3543_v6 }
  0xcf   :  { %2964 = vmatmul.mubr.msk.f32.gmra.mrb[92].mxu0 %vm82_vm4, %v79_v47  ;;  %3131 = vmatmul.mubr.msk.f32.gmra.mrb[92].mxu1 %vm82_vm4, %v590_v48  ;;  %v1110_v47 = vld [vmem:[%s5512_s2 + $0x58] sm:$0xff] }
  0xd0   :  { %2966 = vmatprep.mubr.msk.f32.mxu0 %vm3542_vm0, %v3543_v6  ;;  %3133 = vmatprep.mubr.msk.f32.mxu1 %vm3542_vm0, %v3543_v6  ;;  %v1665_v48 = vld [vmem:[%s5513_s3 + $0x58] sm:$0xff] }
  0xd3   :  { %2967 = vmatmul.mubr.msk.f32.gmra.mrb[94].mxu0 %vm82_vm4, %v80_v49  ;;  %3134 = vmatmul.mubr.msk.f32.gmra.mrb[94].mxu1 %vm82_vm4, %v591_v50 }
  0xd4   :  { %2969 = vmatprep.mubr.msk.f32.mxu0 %vm3542_vm0, %v3543_v6  ;;  %3136 = vmatprep.mubr.msk.f32.mxu1 %vm3542_vm0, %v3543_v6 }
  0xd7   :  { %2970 = vmatmul.mubr.msk.f32.gmra.mrb[96].mxu0 %vm82_vm4, %v81_v51  ;;  %3137 = vmatmul.mubr.msk.f32.gmra.mrb[96].mxu1 %vm82_vm4, %v592_v52  ;;  %v1128_v52 = vld [vmem:[%s5512_s2 + $0xe8] sm:$0xff] }
  0xd8   :  { %3159 = vmatprep.mubr.msk.f32.mxu0 %vm3542_vm0, %v3543_v6  ;;  %3326 = vmatprep.mubr.msk.f32.mxu1 %vm3542_vm0, %v3543_v6 }
  0xdb   :  { %3160 = vmatmul.mubr.msk.f32.vlgmr.msra.gmra.mrb[98].mxu0 %vm82_vm4, %v1099_v53  ;;  %3327 = vmatmul.mubr.msk.f32.vlgmr.msra.gmra.mrb[98].mxu1 %vm82_vm4, %v1654_v54  ;;  %v1111_v54 = vld [vmem:[%s5512_s2 + $0x60] sm:$0xff] }
  0xdc   :  { %3162 = vmatprep.mubr.msk.f32.mxu0 %vm3542_vm0, %v3543_v6  ;;  %3329 = vmatprep.mubr.msk.f32.mxu1 %vm3542_vm0, %v3543_v6 }
  0xdf   :  { %3163 = vmatmul.mubr.msk.f32.gmra.mrb[100].mxu0 %vm82_vm4, %v1100_v55  ;;  %3330 = vmatmul.mubr.msk.f32.gmra.mrb[100].mxu1 %vm82_vm4, %v1655_v56  ;;  %v1666_v55 = vld [vmem:[%s5513_s3 + $0x60] sm:$0xff] }
  0xe0   :  { %3165 = vmatprep.mubr.msk.f32.mxu0 %vm3542_vm0, %v3543_v6  ;;  %3332 = vmatprep.mubr.msk.f32.mxu1 %vm3542_vm0, %v3543_v6 }
  0xe3   :  { %3166 = vmatmul.mubr.msk.f32.gmra.mrb[102].mxu0 %vm82_vm4, %v1101_v57  ;;  %3333 = vmatmul.mubr.msk.f32.gmra.mrb[102].mxu1 %vm82_vm4, %v1656_v58 }
  0xe4   :  { %3168 = vmatprep.mubr.msk.f32.mxu0 %vm3542_vm0, %v3543_v6  ;;  %3335 = vmatprep.mubr.msk.f32.mxu1 %vm3542_vm0, %v3543_v6 }
  0xe7   :  { %3169 = vmatmul.mubr.msk.f32.gmra.mrb[104].mxu0 %vm82_vm4, %v1102_v59  ;;  %3336 = vmatmul.mubr.msk.f32.gmra.mrb[104].mxu1 %vm82_vm4, %v1657_v60 }
  0xe8   :  { %3171 = vmatprep.mubr.msk.f32.mxu0 %vm3542_vm0, %v3543_v6  ;;  %3338 = vmatprep.mubr.msk.f32.mxu1 %vm3542_vm0, %v3543_v6 }
  0xea   :  { %v4288_v63 = vpop.f32.mrb[0].mxu0  ;;  %v4290_v0 = vpop.f32.mrb[0].mxu1 }
  0xeb   :  { %v2827_v1 = vpop.f32.mrb[1].mxu0  ;;  %3172 = vmatmul.mubr.msk.f32.gmra.mrb[106].mxu0 %vm82_vm4, %v1103_v61  ;;  %v2994_v3 = vpop.f32.mrb[1].mxu1  ;;  %3339 = vmatmul.mubr.msk.f32.gmra.mrb[106].mxu1 %vm82_vm4, %v1658_v62  ;;  %v1112_v61 = vld [vmem:[%s5512_s2 + $0x68] sm:$0xff] }
  0xec   :  { %3174 = vmatprep.mubr.msk.f32.mxu0 %vm3542_vm0, %v3543_v6  ;;  %3341 = vmatprep.mubr.msk.f32.mxu1 %vm3542_vm0, %v3543_v6  ;;  %v1667_v62 = vld [vmem:[%s5513_s3 + $0x68] sm:$0xff] }
  0xee   :  { %v4306_v7 = vpop.f32.mrb[2].mxu0  ;;  %v4308_v8 = vpop.f32.mrb[2].mxu1 }
  0xef   :  { %v2830_v9 = vpop.f32.mrb[3].mxu0  ;;  %3175 = vmatmul.mubr.msk.f32.gmra.mrb[108].mxu0 %vm82_vm4, %v1104_v4  ;;  %v2997_v11 = vpop.f32.mrb[3].mxu1  ;;  %3342 = vmatmul.mubr.msk.f32.gmra.mrb[108].mxu1 %vm82_vm4, %v1659_v5  ;;  %v1127_v5 = vld [vmem:[%s5512_s2 + $0xe0] sm:$0xff] }
  0xf0   :  { %3177 = vmatprep.mubr.msk.f32.mxu0 %vm3542_vm0, %v3543_v6  ;;  %3344 = vmatprep.mubr.msk.f32.mxu1 %vm3542_vm0, %v3543_v6  ;;  %v1113_v11 = vld [vmem:[%s5512_s2 + $0x70] sm:$0xff] }
  0xf2   :  { %v4324_v14 = vpop.f32.mrb[4].mxu0  ;;  %v4326_v15 = vpop.f32.mrb[4].mxu1 }
  0xf3   :  { %v2833_v16 = vpop.f32.mrb[5].mxu0  ;;  %3178 = vmatmul.mubr.msk.f32.gmra.mrb[110].mxu0 %vm82_vm4, %v1105_v12  ;;  %v3000_v18 = vpop.f32.mrb[5].mxu1  ;;  %3345 = vmatmul.mubr.msk.f32.gmra.mrb[110].mxu1 %vm82_vm4, %v1660_v13  ;;  %v1668_v12 = vld [vmem:[%s5513_s3 + $0x70] sm:$0xff] }
  0xf4   :  { %3180 = vmatprep.mubr.msk.f32.mxu0 %vm3542_vm0, %v3543_v6  ;;  %3347 = vmatprep.mubr.msk.f32.mxu1 %vm3542_vm0, %v3543_v6 }
  0xf6   :  { %v4342_v21 = vpop.f32.mrb[6].mxu0  ;;  %v4344_v22 = vpop.f32.mrb[6].mxu1 }
  0xf7   :  { %v2836_v23 = vpop.f32.mrb[7].mxu0  ;;  %3181 = vmatmul.mubr.msk.f32.gmra.mrb[112].mxu0 %vm82_vm4, %v1106_v19  ;;  %v3003_v25 = vpop.f32.mrb[7].mxu1  ;;  %3348 = vmatmul.mubr.msk.f32.gmra.mrb[112].mxu1 %vm82_vm4, %v1661_v20 }
  0xf8   :  { %3183 = vmatprep.mubr.msk.f32.mxu0 %vm3542_vm0, %v3543_v6  ;;  %3350 = vmatprep.mubr.msk.f32.mxu1 %vm3542_vm0, %v3543_v6  ;;  %v1114_v23 = vld [vmem:[%s5512_s2 + $0x78] sm:$0xff] }
  0xf9   :  { %v1669_v25 = vld [vmem:[%s5513_s3 + $0x78] sm:$0xff] }
  0xfa   :  { %v4360_v28 = vpop.f32.mrb[8].mxu0  ;;  %v4362_v29 = vpop.f32.mrb[8].mxu1 }
  0xfb   :  { %v2839_v30 = vpop.f32.mrb[9].mxu0  ;;  %3184 = vmatmul.mubr.msk.f32.gmra.mrb[114].mxu0 %vm82_vm4, %v1107_v26  ;;  %v3006_v32 = vpop.f32.mrb[9].mxu1  ;;  %3351 = vmatmul.mubr.msk.f32.gmra.mrb[114].mxu1 %vm82_vm4, %v1662_v27 }
  0xfc   :  { %3186 = vmatprep.mubr.msk.f32.mxu0 %vm3542_vm0, %v3543_v6  ;;  %3353 = vmatprep.mubr.msk.f32.mxu1 %vm3542_vm0, %v3543_v6  ;;  %v1126_v32 = vld [vmem:[%s5512_s2 + $0xd8] sm:$0xff] }
  0xfe   :  { %v4378_v35 = vpop.f32.mrb[10].mxu0  ;;  %v4380_v36 = vpop.f32.mrb[10].mxu1 }
  0xff   :  { %v2842_v37 = vpop.f32.mrb[11].mxu0  ;;  %3187 = vmatmul.mubr.msk.f32.gmra.mrb[116].mxu0 %vm82_vm4, %v1108_v33  ;;  %v3009_v39 = vpop.f32.mrb[11].mxu1  ;;  %3354 = vmatmul.mubr.msk.f32.gmra.mrb[116].mxu1 %vm82_vm4, %v1663_v34  ;;  %v1115_v34 = vld [vmem:[%s5512_s2 + $0x80] sm:$0xff] }
 0x100   :  { %3189 = vmatprep.mubr.msk.f32.mxu0 %vm3542_vm0, %v3543_v6  ;;  %3356 = vmatprep.mubr.msk.f32.mxu1 %vm3542_vm0, %v3543_v6  ;;  %v1670_v37 = vld [vmem:[%s5513_s3 + $0x80] sm:$0xff] }
 0x102   :  { %v4396_v42 = vpop.f32.mrb[12].mxu0  ;;  %v4398_v43 = vpop.f32.mrb[12].mxu1 }
 0x103   :  { %v2845_v44 = vpop.f32.mrb[13].mxu0  ;;  %3190 = vmatmul.mubr.msk.f32.gmra.mrb[118].mxu0 %vm82_vm4, %v1109_v40  ;;  %v3012_v46 = vpop.f32.mrb[13].mxu1  ;;  %3357 = vmatmul.mubr.msk.f32.gmra.mrb[118].mxu1 %vm82_vm4, %v1664_v41 }
 0x104   :  { %3192 = vmatprep.mubr.msk.f32.mxu0 %vm3542_vm0, %v3543_v6  ;;  %3359 = vmatprep.mubr.msk.f32.mxu1 %vm3542_vm0, %v3543_v6 }
 0x106   :  { %v4414_v49 = vpop.f32.mrb[14].mxu0  ;;  %v4416_v50 = vpop.f32.mrb[14].mxu1 }
 0x107   :  { %v2848_v51 = vpop.f32.mrb[15].mxu0  ;;  %3193 = vmatmul.mubr.msk.f32.gmra.mrb[120].mxu0 %vm82_vm4, %v1110_v47  ;;  %v3015_v53 = vpop.f32.mrb[15].mxu1  ;;  %3360 = vmatmul.mubr.msk.f32.gmra.mrb[120].mxu1 %vm82_vm4, %v1665_v48  ;;  %v1116_v47 = vld [vmem:[%s5512_s2 + $0x88] sm:$0xff] }
 0x108   :  { %3195 = vmatprep.mubr.msk.f32.mxu0 %vm3542_vm0, %v3543_v6  ;;  %3362 = vmatprep.mubr.msk.f32.mxu1 %vm3542_vm0, %v3543_v6  ;;  %v1671_v48 = vld [vmem:[%s5513_s3 + $0x88] sm:$0xff] }
 0x10a   :  { %v4432_v56 = vpop.f32.mrb[16].mxu0  ;;  %v4434_v57 = vpop.f32.mrb[16].mxu1 }
 0x10b   :  { %v2851_v58 = vpop.f32.mrb[17].mxu0  ;;  %3196 = vmatmul.mubr.msk.f32.gmra.mrb[122].mxu0 %vm82_vm4, %v1111_v54  ;;  %v3018_v60 = vpop.f32.mrb[17].mxu1  ;;  %3363 = vmatmul.mubr.msk.f32.gmra.mrb[122].mxu1 %vm82_vm4, %v1666_v55  ;;  %v1125_v55 = vld [vmem:[%s5512_s2 + $0xd0] sm:$0xff] }
 0x10c   :  { %3198 = vmatprep.mubr.msk.f32.mxu0 %vm3542_vm0, %v3543_v6  ;;  %3365 = vmatprep.mubr.msk.f32.mxu1 %vm3542_vm0, %v3543_v6  ;;  %v1117_v60 = vld [vmem:[%s5512_s2 + $0x90] sm:$0xff] }
 0x10e   :  { %v4450_v1 = vpop.f32.mrb[18].mxu0  ;;  %v4452_v3 = vpop.f32.mrb[18].mxu1 }
 0x10f   :  { %v2854_v4 = vpop.f32.mrb[19].mxu0  ;;  %3199 = vmatmul.mubr.msk.f32.gmra.mrb[124].mxu0 %vm82_vm4, %v1112_v61  ;;  %v3021_v9 = vpop.f32.mrb[19].mxu1  ;;  %3366 = vmatmul.mubr.msk.f32.gmra.mrb[124].mxu1 %vm82_vm4, %v1667_v62  ;;  %v1672_v61 = vld [vmem:[%s5513_s3 + $0x90] sm:$0xff] }
 0x110   :  { %3201 = vmatprep.mubr.msk.f32.mxu0 %vm3542_vm0, %v3543_v6  ;;  %3368 = vmatprep.mubr.msk.f32.mxu1 %vm3542_vm0, %v3543_v6 }
 0x112   :  { %v4468_v13 = vpop.f32.mrb[20].mxu0  ;;  %v4470_v16 = vpop.f32.mrb[20].mxu1 }
 0x113   :  { %v2857_v18 = vpop.f32.mrb[21].mxu0  ;;  %3202 = vmatmul.mubr.msk.f32.gmra.mrb[126].mxu0 %vm82_vm4, %v1113_v11  ;;  %v3024_v20 = vpop.f32.mrb[21].mxu1  ;;  %3369 = vmatmul.mubr.msk.f32.gmra.mrb[126].mxu1 %vm82_vm4, %v1668_v12 }
 0x114   :  { %3204 = vmatprep.mubr.msk.f32.mxu0 %vm3542_vm0, %v3543_v6  ;;  %3371 = vmatprep.mubr.msk.f32.mxu1 %vm3542_vm0, %v3543_v6  ;;  %v1118_v18 = vld [vmem:[%s5512_s2 + $0x98] sm:$0xff] }
 0x115   :  { %v1673_v20 = vld [vmem:[%s5513_s3 + $0x98] sm:$0xff] }
 0x116   :  { %v4486_v26 = vpop.f32.mrb[22].mxu0  ;;  %v4488_v27 = vpop.f32.mrb[22].mxu1 }
 0x117   :  { %v2860_v30 = vpop.f32.mrb[23].mxu0  ;;  %3205 = vmatmul.mubr.msk.f32.gmra.mrb[128].mxu0 %vm82_vm4, %v1114_v23  ;;  %v3027_v33 = vpop.f32.mrb[23].mxu1  ;;  %3372 = vmatmul.mubr.msk.f32.gmra.mrb[128].mxu1 %vm82_vm4, %v1669_v25 }
 0x118   :  { %3207 = vmatprep.mubr.msk.f32.mxu0 %vm3542_vm0, %v3543_v6  ;;  %3374 = vmatprep.mubr.msk.f32.mxu1 %vm3542_vm0, %v3543_v6  ;;  %v1124_v33 = vld [vmem:[%s5512_s2 + $0xc8] sm:$0xff] }
 0x11a   :  { %v4504_v39 = vpop.f32.mrb[24].mxu0  ;;  %v4506_v40 = vpop.f32.mrb[24].mxu1 }
 0x11b   :  { %v2863_v41 = vpop.f32.mrb[25].mxu0  ;;  %3208 = vmatmul.mubr.msk.f32.gmra.mrb[130].mxu0 %vm82_vm4, %v1115_v34  ;;  %v3030_v46 = vpop.f32.mrb[25].mxu1  ;;  %3375 = vmatmul.mubr.msk.f32.gmra.mrb[130].mxu1 %vm82_vm4, %v1670_v37  ;;  %v1119_v37 = vld [vmem:[%s5512_s2 + $0xa0] sm:$0xff] }
 0x11c   :  { %3210 = vmatprep.mubr.msk.f32.mxu0 %vm3542_vm0, %v3543_v6  ;;  %3377 = vmatprep.mubr.msk.f32.mxu1 %vm3542_vm0, %v3543_v6  ;;  %v1674_v41 = vld [vmem:[%s5513_s3 + $0xa0] sm:$0xff] }
 0x11e   :  { %v4522_v51 = vpop.f32.mrb[26].mxu0  ;;  %v4524_v53 = vpop.f32.mrb[26].mxu1 }
 0x11f   :  { %v2866_v54 = vpop.f32.mrb[27].mxu0  ;;  %3211 = vmatmul.mubr.msk.f32.gmra.mrb[132].mxu0 %vm82_vm4, %v1116_v47  ;;  %v3033_v58 = vpop.f32.mrb[27].mxu1  ;;  %3378 = vmatmul.mubr.msk.f32.gmra.mrb[132].mxu1 %vm82_vm4, %v1671_v48 }
 0x120   :  { %3213 = vmatprep.mubr.msk.f32.mxu0 %vm3542_vm0, %v3543_v6  ;;  %3380 = vmatprep.mubr.msk.f32.mxu1 %vm3542_vm0, %v3543_v6 }
 0x122   :  { %v4540_v62 = vpop.f32.mrb[28].mxu0  ;;  %v4542_v4 = vpop.f32.mrb[28].mxu1 }
 0x123   :  { %v2869_v9 = vpop.f32.mrb[29].mxu0  ;;  %3214 = vmatmul.mubr.msk.f32.gmra.mrb[134].mxu0 %vm82_vm4, %v1117_v60  ;;  %v3036_v12 = vpop.f32.mrb[29].mxu1  ;;  %3381 = vmatmul.mubr.msk.f32.gmra.mrb[134].mxu1 %vm82_vm4, %v1672_v61  ;;  %v1120_v60 = vld [vmem:[%s5512_s2 + $0xa8] sm:$0xff] }
 0x124   :  { %3216 = vmatprep.mubr.msk.f32.mxu0 %vm3542_vm0, %v3543_v6  ;;  %3383 = vmatprep.mubr.msk.f32.mxu1 %vm3542_vm0, %v3543_v6  ;;  %v1675_v61 = vld [vmem:[%s5513_s3 + $0xa8] sm:$0xff] }
 0x126   :  { %v4558_v23 = vpop.f32.mrb[30].mxu0  ;;  %v4560_v25 = vpop.f32.mrb[30].mxu1 }
 0x127   :  { %v2872_v30 = vpop.f32.mrb[31].mxu0  ;;  %3217 = vmatmul.mubr.msk.f32.gmra.mrb[136].mxu0 %vm82_vm4, %v1118_v18  ;;  %v3039_v34 = vpop.f32.mrb[31].mxu1  ;;  %3384 = vmatmul.mubr.msk.f32.gmra.mrb[136].mxu1 %vm82_vm4, %v1673_v20  ;;  %v1123_v20 = vld [vmem:[%s5512_s2 + $0xc0] sm:$0xff] }
 0x128   :  { %3219 = vmatprep.mubr.msk.f32.mxu0 %vm3542_vm0, %v3543_v6  ;;  %3386 = vmatprep.mubr.msk.f32.mxu1 %vm3542_vm0, %v3543_v6  ;;  %v1121_v34 = vld [vmem:[%s5512_s2 + $0xb0] sm:$0xff] }
 0x12a   :  { %v4576_v46 = vpop.f32.mrb[32].mxu0  ;;  %v4578_v47 = vpop.f32.mrb[32].mxu1 }
 0x12b   :  { %v2875_v48 = vpop.f32.mrb[33].mxu0  ;;  %3220 = vmatmul.mubr.msk.f32.gmra.mrb[138].mxu0 %vm82_vm4, %v1119_v37  ;;  %v3042_v58 = vpop.f32.mrb[33].mxu1  ;;  %3387 = vmatmul.mubr.msk.f32.gmra.mrb[138].mxu1 %vm82_vm4, %v1674_v41  ;;  %v1676_v37 = vld [vmem:[%s5513_s3 + $0xb0] sm:$0xff] }
 0x12c   :  { %3222 = vmatprep.mubr.msk.f32.mxu0 %vm3542_vm0, %v3543_v6  ;;  %3389 = vmatprep.mubr.msk.f32.mxu1 %vm3542_vm0, %v3543_v6 }
 0x12e   :  { %v4594_v9 = vpop.f32.mrb[34].mxu0  ;;  %v4596_v12 = vpop.f32.mrb[34].mxu1 }
 0x12f   :  { %v2878_v18 = vpop.f32.mrb[35].mxu0  ;;  %3223 = vmatmul.mubr.msk.f32.gmra.mrb[140].mxu0 %vm82_vm4, %v1120_v60  ;;  %v3045_v30 = vpop.f32.mrb[35].mxu1  ;;  %3390 = vmatmul.mubr.msk.f32.gmra.mrb[140].mxu1 %vm82_vm4, %v1675_v61 }
 0x130   :  { %3225 = vmatprep.mubr.msk.f32.mxu0 %vm3542_vm0, %v3543_v6  ;;  %3392 = vmatprep.mubr.msk.f32.mxu1 %vm3542_vm0, %v3543_v6  ;;  %v1122_v18 = vld [vmem:[%s5512_s2 + $0xb8] sm:$0xff] }
 0x131   :  { %v1677_v30 = vld [vmem:[%s5513_s3 + $0xb8] sm:$0xff] }
 0x132   :  { %v4612_v41 = vpop.f32.mrb[36].mxu0  ;;  %v4614_v48 = vpop.f32.mrb[36].mxu1 }
 0x133   :  { %v2881_v58 = vpop.f32.mrb[37].mxu0  ;;  %3226 = vmatmul.mubr.msk.f32.gmra.mrb[142].mxu0 %vm82_vm4, %v1121_v34  ;;  %v3048_v61 = vpop.f32.mrb[37].mxu1  ;;  %3393 = vmatmul.mubr.msk.f32.gmra.mrb[142].mxu1 %vm82_vm4, %v1676_v37 }
 0x134   :  { %3228 = vmatprep.mubr.msk.f32.mxu0 %vm3542_vm0, %v3543_v6  ;;  %3395 = vmatprep.mubr.msk.f32.mxu1 %vm3542_vm0, %v3543_v6 }
 0x136   :  { %v4630_v58 = vpop.f32.mrb[38].mxu0  ;;  %v4632_v34 = vpop.f32.mrb[38].mxu1 }
 0x137   :  { %v2884_v61 = vpop.f32.mrb[39].mxu0  ;;  %3229 = vmatmul.mubr.msk.f32.gmra.mrb[144].mxu0 %vm82_vm4, %v1122_v18  ;;  %v3051_v60 = vpop.f32.mrb[39].mxu1  ;;  %3396 = vmatmul.mubr.msk.f32.gmra.mrb[144].mxu1 %vm82_vm4, %v1677_v30 }
 0x138   :  { %3231 = vmatprep.mubr.msk.f32.mxu0 %vm3542_vm0, %v3543_v6  ;;  %3398 = vmatprep.mubr.msk.f32.mxu1 %vm3542_vm0, %v3543_v6  ;;  %v1678_v61 = vld [vmem:[%s5513_s3 + $0xc0] sm:$0xff] }
 0x13a   :  { %v4648_v37 = vpop.f32.mrb[40].mxu0  ;;  %v4650_v18 = vpop.f32.mrb[40].mxu1 }
 0x13b   :  { %v2887_v60 = vpop.f32.mrb[41].mxu0  ;;  %3232 = vmatmul.mubr.msk.f32.gmra.mrb[146].mxu0 %vm82_vm4, %v1123_v20  ;;  %v3054_v54 = vpop.f32.mrb[41].mxu1  ;;  %3399 = vmatmul.mubr.msk.f32.gmra.mrb[146].mxu1 %vm82_vm4, %v1678_v61 }
 0x13c   :  { %3234 = vmatprep.mubr.msk.f32.mxu0 %vm3542_vm0, %v3543_v6  ;;  %3401 = vmatprep.mubr.msk.f32.mxu1 %vm3542_vm0, %v3543_v6  ;;  %v1679_v60 = vld [vmem:[%s5513_s3 + $0xc8] sm:$0xff] }
 0x13e   :  { %v4666_v30 = vpop.f32.mrb[42].mxu0  ;;  %v4668_v20 = vpop.f32.mrb[42].mxu1 }
 0x13f   :  { %v2890_v54 = vpop.f32.mrb[43].mxu0  ;;  %3235 = vmatmul.mubr.msk.f32.gmra.mrb[148].mxu0 %vm82_vm4, %v1124_v33  ;;  %v3057_v11 = vpop.f32.mrb[43].mxu1  ;;  %3402 = vmatmul.mubr.msk.f32.gmra.mrb[148].mxu1 %vm82_vm4, %v1679_v60 }
 0x140   :  { %3237 = vmatprep.mubr.msk.f32.mxu0 %vm3542_vm0, %v3543_v6  ;;  %3404 = vmatprep.mubr.msk.f32.mxu1 %vm3542_vm0, %v3543_v6  ;;  %v1680_v54 = vld [vmem:[%s5513_s3 + $0xd0] sm:$0xff] }
 0x142   :  { %v4684_v61 = vpop.f32.mrb[44].mxu0  ;;  %v4686_v33 = vpop.f32.mrb[44].mxu1 }
 0x143   :  { %v2893_v11 = vpop.f32.mrb[45].mxu0  ;;  %3238 = vmatmul.mubr.msk.f32.gmra.mrb[150].mxu0 %vm82_vm4, %v1125_v55  ;;  %v3060_v44 = vpop.f32.mrb[45].mxu1  ;;  %3405 = vmatmul.mubr.msk.f32.gmra.mrb[150].mxu1 %vm82_vm4, %v1680_v54 }
 0x144   :  { %3240 = vmatprep.mubr.msk.f32.mxu0 %vm3542_vm0, %v3543_v6  ;;  %3407 = vmatprep.mubr.msk.f32.mxu1 %vm3542_vm0, %v3543_v6  ;;  %v1681_v11 = vld [vmem:[%s5513_s3 + $0xd8] sm:$0xff] }
 0x146   :  { %v4702_v60 = vpop.f32.mrb[46].mxu0  ;;  %v4704_v55 = vpop.f32.mrb[46].mxu1 }
 0x147   :  { %v2896_v44 = vpop.f32.mrb[47].mxu0  ;;  %3241 = vmatmul.mubr.msk.f32.gmra.mrb[152].mxu0 %vm82_vm4, %v1126_v32  ;;  %v3063_v19 = vpop.f32.mrb[47].mxu1  ;;  %3408 = vmatmul.mubr.msk.f32.gmra.mrb[152].mxu1 %vm82_vm4, %v1681_v11 }
 0x148   :  { %3243 = vmatprep.mubr.msk.f32.mxu0 %vm3542_vm0, %v3543_v6  ;;  %3410 = vmatprep.mubr.msk.f32.mxu1 %vm3542_vm0, %v3543_v6  ;;  %v1682_v44 = vld [vmem:[%s5513_s3 + $0xe0] sm:$0xff] }
 0x14a   :  { %v4720_v54 = vpop.f32.mrb[48].mxu0  ;;  %v4722_v32 = vpop.f32.mrb[48].mxu1 }
 0x14b   :  { %5567 = vst [vmem:[#allocation2_spill] sm:$0xff] %v4722_v32  ;;  %v2899_v19 = vpop.f32.mrb[49].mxu0  ;;  %3244 = vmatmul.mubr.msk.f32.gmra.mrb[154].mxu0 %vm82_vm4, %v1127_v5  ;;  %v3066_v59 = vpop.f32.mrb[49].mxu1  ;;  %3411 = vmatmul.mubr.msk.f32.gmra.mrb[154].mxu1 %vm82_vm4, %v1682_v44 }
 0x14c   :  { %3246 = vmatprep.mubr.msk.f32.mxu0 %vm3542_vm0, %v3543_v6  ;;  %3413 = vmatprep.mubr.msk.f32.mxu1 %vm3542_vm0, %v3543_v6  ;;  %v1683_v19 = vld [vmem:[%s5513_s3 + $0xe8] sm:$0xff] }
 0x14e   :  { %v4738_v11 = vpop.f32.mrb[50].mxu0  ;;  %v4740_v5 = vpop.f32.mrb[50].mxu1 }
 0x14f   :  { %5568 = vst [vmem:[#allocation3_spill] sm:$0xff] %v4738_v11  ;;  %5569 = vst [vmem:[#allocation4_spill] sm:$0xff] %v4740_v5  ;;  %v2902_v59 = vpop.f32.mrb[51].mxu0  ;;  %3247 = vmatmul.mubr.msk.f32.gmra.mrb[156].mxu0 %vm82_vm4, %v1128_v52  ;;  %v3069_v45 = vpop.f32.mrb[51].mxu1  ;;  %3414 = vmatmul.mubr.msk.f32.gmra.mrb[156].mxu1 %vm82_vm4, %v1683_v19 }
 0x150   :  { %3249 = vmatprep.mubr.msk.f32.mxu0 %vm3542_vm0, %v3543_v6  ;;  %3416 = vmatprep.mubr.msk.f32.mxu1 %vm3542_vm0, %v3543_v6  ;;  %v1684_v59 = vld [vmem:[%s5513_s3 + $0xf0] sm:$0xff] }
 0x152   :  { %v4756_v44 = vpop.f32.mrb[52].mxu0  ;;  %v4758_v52 = vpop.f32.mrb[52].mxu1 }
 0x153   :  { %5570 = vst [vmem:[#allocation5_spill] sm:$0xff] %v4756_v44  ;;  %5571 = vst [vmem:[#allocation6_spill] sm:$0xff] %v4758_v52  ;;  %v2905_v45 = vpop.f32.mrb[53].mxu0  ;;  %3250 = vmatmul.mubr.msk.f32.gmra.mrb[158].mxu0 %vm82_vm4, %v1129_v38  ;;  %v3072_v31 = vpop.f32.mrb[53].mxu1  ;;  %3417 = vmatmul.mubr.msk.f32.gmra.mrb[158].mxu1 %vm82_vm4, %v1684_v59 }
 0x154   :  { %3252 = vmatprep.mubr.msk.f32.mxu0 %vm3542_vm0, %v3543_v6  ;;  %3419 = vmatprep.mubr.msk.f32.mxu1 %vm3542_vm0, %v3543_v6  ;;  %v1685_v45 = vld [vmem:[%s5513_s3 + $0xf8] sm:$0xff] }
 0x156   :  { %v4774_v19 = vpop.f32.mrb[54].mxu0  ;;  %v4776_v38 = vpop.f32.mrb[54].mxu1 }
 0x157   :  { %5572 = vst [vmem:[#allocation7_spill] sm:$0xff] %v4774_v19  ;;  %5573 = vst [vmem:[#allocation8_spill] sm:$0xff] %v4776_v38  ;;  %v2908_v31 = vpop.f32.mrb[55].mxu0  ;;  %3253 = vmatmul.mubr.msk.f32.gmra.mrb[160].mxu0 %vm82_vm4, %v1130_v24  ;;  %v3075_v17 = vpop.f32.mrb[55].mxu1  ;;  %3420 = vmatmul.mubr.msk.f32.gmra.mrb[160].mxu1 %vm82_vm4, %v1685_v45  ;;  %v1132_v38 = vld [vmem:[%s5512_s2 + $0x108] sm:$0xff] }
 0x158   :  { %3255 = vmatprep.mubr.msk.f32.mxu0 %vm3542_vm0, %v3543_v6  ;;  %3422 = vmatprep.mubr.msk.f32.mxu1 %vm3542_vm0, %v3543_v6  ;;  %v1686_v31 = vld [vmem:[%s5513_s3 + $0x100] sm:$0xff] }
 0x15a   :  { %v4792_v59 = vpop.f32.mrb[56].mxu0  ;;  %v4794_v24 = vpop.f32.mrb[56].mxu1 }
 0x15b   :  { %5574 = vst [vmem:[#allocation9_spill] sm:$0xff] %v4792_v59  ;;  %5575 = vst [vmem:[#allocation10_spill] sm:$0xff] %v4794_v24  ;;  %v2911_v17 = vpop.f32.mrb[57].mxu0  ;;  %3256 = vmatmul.mubr.msk.f32.gmra.mrb[162].mxu0 %vm82_vm4, %v1131_v10  ;;  %v3078_v2 = vpop.f32.mrb[57].mxu1  ;;  %3423 = vmatmul.mubr.msk.f32.gmra.mrb[162].mxu1 %vm82_vm4, %v1686_v31  ;;  %v1133_v59 = vld [vmem:[%s5512_s2 + $0x110] sm:$0xff] }
 0x15c   :  { %3258 = vmatprep.mubr.msk.f32.mxu0 %vm3542_vm0, %v3543_v6  ;;  %3425 = vmatprep.mubr.msk.f32.mxu1 %vm3542_vm0, %v3543_v6  ;;  %v1687_v17 = vld [vmem:[%s5513_s3 + $0x108] sm:$0xff] }
 0x15e   :  { %v4810_v45 = vpop.f32.mrb[58].mxu0  ;;  %v4812_v10 = vpop.f32.mrb[58].mxu1 }
 0x15f   :  { %5576 = vst [vmem:[#allocation11_spill] sm:$0xff] %v4810_v45  ;;  %5577 = vst [vmem:[#allocation12_spill] sm:$0xff] %v4812_v10  ;;  %v2914_v2 = vpop.f32.mrb[59].mxu0  ;;  %3259 = vmatmul.mubr.msk.f32.gmra.mrb[164].mxu0 %vm82_vm4, %v1132_v38  ;;  %v3081_v24 = vpop.f32.mrb[59].mxu1  ;;  %3426 = vmatmul.mubr.msk.f32.gmra.mrb[164].mxu1 %vm82_vm4, %v1687_v17  ;;  %v1134_v45 = vld [vmem:[%s5512_s2 + $0x118] sm:$0xff] }
 0x160   :  { %3261 = vmatprep.mubr.msk.f32.mxu0 %vm3542_vm0, %v3543_v6  ;;  %3428 = vmatprep.mubr.msk.f32.mxu1 %vm3542_vm0, %v3543_v6  ;;  %v1688_v2 = vld [vmem:[%s5513_s3 + $0x110] sm:$0xff] }
 0x162   :  { %v4828_v31 = vpop.f32.mrb[60].mxu0  ;;  %v4830_v38 = vpop.f32.mrb[60].mxu1 }
 0x163   :  { %5578 = vst [vmem:[#allocation13_spill] sm:$0xff] %v4828_v31  ;;  %5579 = vst [vmem:[#allocation14_spill] sm:$0xff] %v4830_v38  ;;  %v2917_v24 = vpop.f32.mrb[61].mxu0  ;;  %3262 = vmatmul.mubr.msk.f32.gmra.mrb[166].mxu0 %vm82_vm4, %v1133_v59  ;;  %v3084_v10 = vpop.f32.mrb[61].mxu1  ;;  %3429 = vmatmul.mubr.msk.f32.gmra.mrb[166].mxu1 %vm82_vm4, %v1688_v2  ;;  %v1135_v31 = vld [vmem:[%s5512_s2 + $0x120] sm:$0xff] }
 0x164   :  { %3264 = vmatprep.mubr.msk.f32.mxu0 %vm3542_vm0, %v3543_v6  ;;  %3431 = vmatprep.mubr.msk.f32.mxu1 %vm3542_vm0, %v3543_v6  ;;  %v1689_v24 = vld [vmem:[%s5513_s3 + $0x118] sm:$0xff] }
 0x166   :  { %v4846_v17 = vpop.f32.mrb[62].mxu0  ;;  %v4848_v59 = vpop.f32.mrb[62].mxu1 }
 0x167   :  { %5580 = vst [vmem:[#allocation15_spill] sm:$0xff] %v4846_v17  ;;  %5581 = vst [vmem:[#allocation16_spill] sm:$0xff] %v4848_v59  ;;  %v2920_v10 = vpop.f32.mrb[63].mxu0  ;;  %3265 = vmatmul.mubr.msk.f32.gmra.mrb[168].mxu0 %vm82_vm4, %v1134_v45  ;;  %v3087_v38 = vpop.f32.mrb[63].mxu1  ;;  %3432 = vmatmul.mubr.msk.f32.gmra.mrb[168].mxu1 %vm82_vm4, %v1689_v24  ;;  %v1136_v17 = vld [vmem:[%s5512_s2 + $0x128] sm:$0xff] }
 0x168   :  { %3267 = vmatprep.mubr.msk.f32.mxu0 %vm3542_vm0, %v3543_v6  ;;  %3434 = vmatprep.mubr.msk.f32.mxu1 %vm3542_vm0, %v3543_v6  ;;  %v1690_v10 = vld [vmem:[%s5513_s3 + $0x120] sm:$0xff] }
 0x16a   :  { %v4864_v2 = vpop.f32.mrb[64].mxu0  ;;  %v4866_v45 = vpop.f32.mrb[64].mxu1 }
 0x16b   :  { %5582 = vst [vmem:[#allocation17_spill] sm:$0xff] %v4864_v2  ;;  %5583 = vst [vmem:[#allocation18_spill] sm:$0xff] %v4866_v45  ;;  %v2923_v38 = vpop.f32.mrb[65].mxu0  ;;  %3268 = vmatmul.mubr.msk.f32.gmra.mrb[170].mxu0 %vm82_vm4, %v1135_v31  ;;  %v3090_v59 = vpop.f32.mrb[65].mxu1  ;;  %3435 = vmatmul.mubr.msk.f32.gmra.mrb[170].mxu1 %vm82_vm4, %v1690_v10  ;;  %v1137_v2 = vld [vmem:[%s5512_s2 + $0x130] sm:$0xff] }
 0x16c   :  { %3270 = vmatprep.mubr.msk.f32.mxu0 %vm3542_vm0, %v3543_v6  ;;  %3437 = vmatprep.mubr.msk.f32.mxu1 %vm3542_vm0, %v3543_v6  ;;  %v1691_v38 = vld [vmem:[%s5513_s3 + $0x128] sm:$0xff] }
 0x16e   :  { %v4882_v24 = vpop.f32.mrb[66].mxu0  ;;  %v4884_v31 = vpop.f32.mrb[66].mxu1 }
 0x16f   :  { %5584 = vst [vmem:[#allocation19_spill] sm:$0xff] %v4882_v24  ;;  %5585 = vst [vmem:[#allocation20_spill] sm:$0xff] %v4884_v31  ;;  %v2926_v59 = vpop.f32.mrb[67].mxu0  ;;  %3271 = vmatmul.mubr.msk.f32.gmra.mrb[172].mxu0 %vm82_vm4, %v1136_v17  ;;  %v3093_v45 = vpop.f32.mrb[67].mxu1  ;;  %3438 = vmatmul.mubr.msk.f32.gmra.mrb[172].mxu1 %vm82_vm4, %v1691_v38  ;;  %v1138_v24 = vld [vmem:[%s5512_s2 + $0x138] sm:$0xff] }
 0x170   :  { %3273 = vmatprep.mubr.msk.f32.mxu0 %vm3542_vm0, %v3543_v6  ;;  %3440 = vmatprep.mubr.msk.f32.mxu1 %vm3542_vm0, %v3543_v6  ;;  %v1692_v59 = vld [vmem:[%s5513_s3 + $0x130] sm:$0xff] }
 0x172   :  { %v4900_v10 = vpop.f32.mrb[68].mxu0  ;;  %v4902_v17 = vpop.f32.mrb[68].mxu1 }
 0x173   :  { %5586 = vst [vmem:[#allocation21_spill] sm:$0xff] %v4900_v10  ;;  %5587 = vst [vmem:[#allocation22_spill] sm:$0xff] %v4902_v17  ;;  %v2929_v45 = vpop.f32.mrb[69].mxu0  ;;  %3274 = vmatmul.mubr.msk.f32.gmra.mrb[174].mxu0 %vm82_vm4, %v1137_v2  ;;  %v3096_v31 = vpop.f32.mrb[69].mxu1  ;;  %3441 = vmatmul.mubr.msk.f32.gmra.mrb[174].mxu1 %vm82_vm4, %v1692_v59  ;;  %v1139_v10 = vld [vmem:[%s5512_s2 + $0x140] sm:$0xff] }
 0x174   :  { %3276 = vmatprep.mubr.msk.f32.mxu0 %vm3542_vm0, %v3543_v6  ;;  %3443 = vmatprep.mubr.msk.f32.mxu1 %vm3542_vm0, %v3543_v6  ;;  %v1693_v45 = vld [vmem:[%s5513_s3 + $0x138] sm:$0xff] }
 0x176   :  { %v4918_v38 = vpop.f32.mrb[70].mxu0  ;;  %v4920_v2 = vpop.f32.mrb[70].mxu1 }
 0x177   :  { %5588 = vst [vmem:[#allocation23_spill] sm:$0xff] %v4918_v38  ;;  %5589 = vst [vmem:[#allocation24_spill] sm:$0xff] %v4920_v2  ;;  %v2932_v31 = vpop.f32.mrb[71].mxu0  ;;  %3277 = vmatmul.mubr.msk.f32.gmra.mrb[176].mxu0 %vm82_vm4, %v1138_v24  ;;  %v3099_v17 = vpop.f32.mrb[71].mxu1  ;;  %3444 = vmatmul.mubr.msk.f32.gmra.mrb[176].mxu1 %vm82_vm4, %v1693_v45  ;;  %v1140_v38 = vld [vmem:[%s5512_s2 + $0x148] sm:$0xff] }
 0x178   :  { %3279 = vmatprep.mubr.msk.f32.mxu0 %vm3542_vm0, %v3543_v6  ;;  %3446 = vmatprep.mubr.msk.f32.mxu1 %vm3542_vm0, %v3543_v6  ;;  %v1694_v31 = vld [vmem:[%s5513_s3 + $0x140] sm:$0xff] }
 0x17a   :  { %v4936_v59 = vpop.f32.mrb[72].mxu0  ;;  %v4938_v24 = vpop.f32.mrb[72].mxu1 }
 0x17b   :  { %5590 = vst [vmem:[#allocation25_spill] sm:$0xff] %v4936_v59  ;;  %5591 = vst [vmem:[#allocation26_spill] sm:$0xff] %v4938_v24  ;;  %v2935_v17 = vpop.f32.mrb[73].mxu0  ;;  %3280 = vmatmul.mubr.msk.f32.gmra.mrb[178].mxu0 %vm82_vm4, %v1139_v10  ;;  %v3102_v2 = vpop.f32.mrb[73].mxu1  ;;  %3447 = vmatmul.mubr.msk.f32.gmra.mrb[178].mxu1 %vm82_vm4, %v1694_v31  ;;  %v1141_v59 = vld [vmem:[%s5512_s2 + $0x150] sm:$0xff] }
 0x17c   :  { %3282 = vmatprep.mubr.msk.f32.mxu0 %vm3542_vm0, %v3543_v6  ;;  %3449 = vmatprep.mubr.msk.f32.mxu1 %vm3542_vm0, %v3543_v6  ;;  %v1695_v17 = vld [vmem:[%s5513_s3 + $0x148] sm:$0xff] }
 0x17e   :  { %v4954_v45 = vpop.f32.mrb[74].mxu0  ;;  %v4956_v10 = vpop.f32.mrb[74].mxu1 }
 0x17f   :  { %5592 = vst [vmem:[#allocation27_spill] sm:$0xff] %v4954_v45  ;;  %5593 = vst [vmem:[#allocation28_spill] sm:$0xff] %v4956_v10  ;;  %v2938_v2 = vpop.f32.mrb[75].mxu0  ;;  %3283 = vmatmul.mubr.msk.f32.gmra.mrb[180].mxu0 %vm82_vm4, %v1140_v38  ;;  %v3105_v24 = vpop.f32.mrb[75].mxu1  ;;  %3450 = vmatmul.mubr.msk.f32.gmra.mrb[180].mxu1 %vm82_vm4, %v1695_v17  ;;  %v1142_v45 = vld [vmem:[%s5512_s2 + $0x158] sm:$0xff] }
 0x180   :  { %3285 = vmatprep.mubr.msk.f32.mxu0 %vm3542_vm0, %v3543_v6  ;;  %3452 = vmatprep.mubr.msk.f32.mxu1 %vm3542_vm0, %v3543_v6  ;;  %v1696_v2 = vld [vmem:[%s5513_s3 + $0x150] sm:$0xff] }
 0x182   :  { %v4972_v31 = vpop.f32.mrb[76].mxu0  ;;  %v4974_v38 = vpop.f32.mrb[76].mxu1 }
 0x183   :  { %5594 = vst [vmem:[#allocation29_spill] sm:$0xff] %v4972_v31  ;;  %5595 = vst [vmem:[#allocation30_spill] sm:$0xff] %v4974_v38  ;;  %v2941_v24 = vpop.f32.mrb[77].mxu0  ;;  %3286 = vmatmul.mubr.msk.f32.gmra.mrb[182].mxu0 %vm82_vm4, %v1141_v59  ;;  %v3108_v10 = vpop.f32.mrb[77].mxu1  ;;  %3453 = vmatmul.mubr.msk.f32.gmra.mrb[182].mxu1 %vm82_vm4, %v1696_v2  ;;  %v1143_v31 = vld [vmem:[%s5512_s2 + $0x160] sm:$0xff] }
 0x184   :  { %3288 = vmatprep.mubr.msk.f32.mxu0 %vm3542_vm0, %v3543_v6  ;;  %3455 = vmatprep.mubr.msk.f32.mxu1 %vm3542_vm0, %v3543_v6  ;;  %v1697_v24 = vld [vmem:[%s5513_s3 + $0x158] sm:$0xff] }
 0x186   :  { %v4990_v17 = vpop.f32.mrb[78].mxu0  ;;  %v4992_v59 = vpop.f32.mrb[78].mxu1 }
 0x187   :  { %5596 = vst [vmem:[#allocation31_spill] sm:$0xff] %v4990_v17  ;;  %5597 = vst [vmem:[#allocation32_spill] sm:$0xff] %v4992_v59  ;;  %v2944_v10 = vpop.f32.mrb[79].mxu0  ;;  %3289 = vmatmul.mubr.msk.f32.gmra.mrb[184].mxu0 %vm82_vm4, %v1142_v45  ;;  %v3111_v38 = vpop.f32.mrb[79].mxu1  ;;  %3456 = vmatmul.mubr.msk.f32.gmra.mrb[184].mxu1 %vm82_vm4, %v1697_v24  ;;  %v1144_v17 = vld [vmem:[%s5512_s2 + $0x168] sm:$0xff] }
 0x188   :  { %3291 = vmatprep.mubr.msk.f32.mxu0 %vm3542_vm0, %v3543_v6  ;;  %3458 = vmatprep.mubr.msk.f32.mxu1 %vm3542_vm0, %v3543_v6  ;;  %v1698_v10 = vld [vmem:[%s5513_s3 + $0x160] sm:$0xff] }
 0x18a   :  { %v5008_v2 = vpop.f32.mrb[80].mxu0  ;;  %v5010_v45 = vpop.f32.mrb[80].mxu1 }
 0x18b   :  { %5598 = vst [vmem:[#allocation33_spill] sm:$0xff] %v5008_v2  ;;  %5599 = vst [vmem:[#allocation34_spill] sm:$0xff] %v5010_v45  ;;  %v2947_v38 = vpop.f32.mrb[81].mxu0  ;;  %3292 = vmatmul.mubr.msk.f32.gmra.mrb[186].mxu0 %vm82_vm4, %v1143_v31  ;;  %v3114_v59 = vpop.f32.mrb[81].mxu1  ;;  %3459 = vmatmul.mubr.msk.f32.gmra.mrb[186].mxu1 %vm82_vm4, %v1698_v10  ;;  %v1145_v2 = vld [vmem:[%s5512_s2 + $0x170] sm:$0xff] }
 0x18c   :  { %3294 = vmatprep.mubr.msk.f32.mxu0 %vm3542_vm0, %v3543_v6  ;;  %3461 = vmatprep.mubr.msk.f32.mxu1 %vm3542_vm0, %v3543_v6  ;;  %v1699_v38 = vld [vmem:[%s5513_s3 + $0x168] sm:$0xff] }
 0x18e   :  { %v5026_v24 = vpop.f32.mrb[82].mxu0  ;;  %v5028_v31 = vpop.f32.mrb[82].mxu1 }
 0x18f   :  { %5600 = vst [vmem:[#allocation35_spill] sm:$0xff] %v5026_v24  ;;  %5601 = vst [vmem:[#allocation36_spill] sm:$0xff] %v5028_v31  ;;  %v2950_v59 = vpop.f32.mrb[83].mxu0  ;;  %3295 = vmatmul.mubr.msk.f32.gmra.mrb[188].mxu0 %vm82_vm4, %v1144_v17  ;;  %v3117_v45 = vpop.f32.mrb[83].mxu1  ;;  %3462 = vmatmul.mubr.msk.f32.gmra.mrb[188].mxu1 %vm82_vm4, %v1699_v38  ;;  %v1146_v24 = vld [vmem:[%s5512_s2 + $0x178] sm:$0xff] }
 0x190   :  { %3297 = vmatprep.mubr.msk.f32.mxu0 %vm3542_vm0, %v3543_v6  ;;  %3464 = vmatprep.mubr.msk.f32.mxu1 %vm3542_vm0, %v3543_v6  ;;  %v1700_v59 = vld [vmem:[%s5513_s3 + $0x170] sm:$0xff] }
 0x192   :  { %v5044_v10 = vpop.f32.mrb[84].mxu0  ;;  %v5046_v17 = vpop.f32.mrb[84].mxu1 }
 0x193   :  { %5602 = vst [vmem:[#allocation37_spill] sm:$0xff] %v5044_v10  ;;  %5603 = vst [vmem:[#allocation38_spill] sm:$0xff] %v5046_v17  ;;  %v2953_v45 = vpop.f32.mrb[85].mxu0  ;;  %3298 = vmatmul.mubr.msk.f32.gmra.mrb[190].mxu0 %vm82_vm4, %v1145_v2  ;;  %v3120_v31 = vpop.f32.mrb[85].mxu1  ;;  %3465 = vmatmul.mubr.msk.f32.gmra.mrb[190].mxu1 %vm82_vm4, %v1700_v59  ;;  %v1147_v10 = vld [vmem:[%s5512_s2 + $0x180] sm:$0xff] }
 0x194   :  { %3300 = vmatprep.mubr.msk.f32.mxu0 %vm3542_vm0, %v3543_v6  ;;  %3467 = vmatprep.mubr.msk.f32.mxu1 %vm3542_vm0, %v3543_v6  ;;  %v1701_v45 = vld [vmem:[%s5513_s3 + $0x178] sm:$0xff] }
 0x196   :  { %v5062_v38 = vpop.f32.mrb[86].mxu0  ;;  %v5064_v2 = vpop.f32.mrb[86].mxu1 }
 0x197   :  { %5604 = vst [vmem:[#allocation39_spill] sm:$0xff] %v5062_v38  ;;  %5605 = vst [vmem:[#allocation40_spill] sm:$0xff] %v5064_v2  ;;  %v2956_v31 = vpop.f32.mrb[87].mxu0  ;;  %3301 = vmatmul.mubr.msk.f32.gmra.mrb[192].mxu0 %vm82_vm4, %v1146_v24  ;;  %v3123_v17 = vpop.f32.mrb[87].mxu1  ;;  %3468 = vmatmul.mubr.msk.f32.gmra.mrb[192].mxu1 %vm82_vm4, %v1701_v45 }
 0x198   :  { %3303 = vmatprep.mubr.msk.f32.mxu0 %vm3542_vm0, %v3543_v6  ;;  %3470 = vmatprep.mubr.msk.f32.mxu1 %vm3542_vm0, %v3543_v6  ;;  %v1702_v31 = vld [vmem:[%s5513_s3 + $0x180] sm:$0xff] }
 0x19a   :  { %v5080_v59 = vpop.f32.mrb[88].mxu0  ;;  %v5082_v24 = vpop.f32.mrb[88].mxu1 }
 0x19b   :  { %5606 = vst [vmem:[#allocation41_spill] sm:$0xff] %v5080_v59  ;;  %5607 = vst [vmem:[#allocation42_spill] sm:$0xff] %v5082_v24  ;;  %v2959_v17 = vpop.f32.mrb[89].mxu0  ;;  %3304 = vmatmul.mubr.msk.f32.gmra.mrb[194].mxu0 %vm82_vm4, %v1147_v10  ;;  %v3126_v2 = vpop.f32.mrb[89].mxu1  ;;  %3471 = vmatmul.mubr.msk.f32.gmra.mrb[194].mxu1 %vm82_vm4, %v1702_v31 }
 0x19e   :  { %v5088_v38 = vpop.f32.mrb[90].mxu0  ;;  %v5090_v6 = vpop.f32.mrb[90].mxu1 }
 0x19f   :  { %5608 = vst [vmem:[#allocation43_spill] sm:$0xff] %v5088_v38  ;;  %5609 = vst [vmem:[#allocation44_spill] sm:$0xff] %v5090_v6  ;;  %v2962_v19 = vpop.f32.mrb[91].mxu0  ;;  %v3129_v44 = vpop.f32.mrb[91].mxu1 }
 0x1a2   :  { %v5094_v5 = vpop.f32.mrb[92].mxu0  ;;  %v5096_v17 = vpop.f32.mrb[92].mxu1 }
 0x1a3   :  { %5610 = vst [vmem:[#allocation45_spill] sm:$0xff] %v5094_v5  ;;  %5611 = vst [vmem:[#allocation46_spill] sm:$0xff] %v5096_v17  ;;  %v2965_v11 = vpop.f32.mrb[93].mxu0  ;;  %v3132_v2 = vpop.f32.mrb[93].mxu1  ;;  %v5616_v17 = vmax.f32 %v4288_v63, %v4290_v0 }
 0x1a6   :  { %v5100_v45 = vpop.f32.mrb[94].mxu0  ;;  %v5102_v31 = vpop.f32.mrb[94].mxu1 }
 0x1a7   :  { %5612 = vst [vmem:[#allocation47_spill] sm:$0xff] %v5100_v45  ;;  %5613 = vst [vmem:[#allocation48_spill] sm:$0xff] %v5102_v31  ;;  %v2968_v24 = vpop.f32.mrb[95].mxu0  ;;  %v3135_v59 = vpop.f32.mrb[95].mxu1 }
 0x1a8   :  { %v5118_v59 = vld [vmem:[%s5514_s5] ss:$0 sm:$0xff] }
 0x1aa   :  { %v5106_v52 = vpop.f32.mrb[96].mxu0  ;;  %v5108_v44 = vpop.f32.mrb[96].mxu1 }
 0x1ab   :  { %5614 = vst [vmem:[#allocation49_spill] sm:$0xff] %v5106_v52  ;;  %5615 = vst [vmem:[#allocation50_spill] sm:$0xff] %v5108_v44  ;;  %v2971_v6 = vpop.f32.mrb[97].mxu0  ;;  %v3138_v38 = vpop.f32.mrb[97].mxu1 }
 0x1ac   :  { %v5617_v38 = vmax.f32 %v4306_v7, %v4308_v8 }
 0x1ae   :  { %v1361_v10 = vpop.f32.mrb[98].mxu0  ;;  %v1916_v2 = vpop.f32.mrb[98].mxu1 }
 0x1af   :  { %v1605_v5 = vmax.f32 %v5616_v17, %v1361_v10  ;;  %v3161_v24 = vpop.f32.mrb[99].mxu0  ;;  %v3328_v32 = vpop.f32.mrb[99].mxu1  ;;  %v5618_v10 = vmax.f32 %v4324_v14, %v4326_v15 }
 0x1b1   :  { %v2160_v19 = vmax.f32 %v1605_v5, %v1916_v2  ;;  %v5619_v2 = vmax.f32 %v4342_v21, %v4344_v22 }
 0x1b2   :  { %v1366_v31 = vpop.f32.mrb[100].mxu0  ;;  %v1921_v6 = vpop.f32.mrb[100].mxu1 }
 0x1b3   :  { %v2216_v45 = vadd.f32 %v5118_v59, %v2160_v19  ;;  %v1606_v11 = vmax.f32 %v5617_v38, %v1366_v31  ;;  %v3164_v44 = vpop.f32.mrb[101].mxu0  ;;  %v3331_v52 = vpop.f32.mrb[101].mxu1 }
 0x1b5   :  { %v2265_v63 = vmax.f32 %v2216_v45, 0.0  ;;  %v2161_v0 = vmax.f32 %v1606_v11, %v1921_v6 }
 0x1b6   :  { %v1371_v32 = vpop.f32.mrb[102].mxu0  ;;  %v1926_v17 = vpop.f32.mrb[102].mxu1 }
 0x1b7   :  { %2315 = vst.msk [vmem:[%s5515_s6] sm:$0xff] %vm2314_vm5, %v2265_v63  ;;  %v2217_v5 = vadd.f32 %v5118_v59, %v2161_v0  ;;  %v1607_v19 = vmax.f32 %v5618_v10, %v1371_v32  ;;  %v3167_v7 = vpop.f32.mrb[103].mxu0  ;;  %v3334_v8 = vpop.f32.mrb[103].mxu1 }
 0x1b9   :  { %v2266_v31 = vmax.f32 %v2217_v5, 0.0  ;;  %v2162_v52 = vmax.f32 %v1607_v19, %v1926_v17  ;;  %v5620_v17 = vmax.f32 %v4360_v28, %v4362_v29 }
 0x1ba   :  { %v1376_v44 = vpop.f32.mrb[104].mxu0  ;;  %v1931_v45 = vpop.f32.mrb[104].mxu1 }
 0x1bb   :  { %2316 = vst.msk [vmem:[%s5515_s6 + $0x8] sm:$0xff] %vm2314_vm5, %v2266_v31  ;;  %v2218_v11 = vadd.f32 %v5118_v59, %v2162_v52  ;;  %v1608_v24 = vmax.f32 %v5619_v2, %v1376_v44  ;;  %v3170_v6 = vpop.f32.mrb[105].mxu0  ;;  %v3337_v14 = vpop.f32.mrb[105].mxu1  ;;  %v5621_v52 = vmax.f32 %v4378_v35, %v4380_v36 }
 0x1bc   :  { %v5622_v14 = vmax.f32 %v4396_v42, %v4398_v43 }
 0x1bd   :  { %v2267_v15 = vmax.f32 %v2218_v11, 0.0  ;;  %v2163_v38 = vmax.f32 %v1608_v24, %v1931_v45 }
 0x1be   :  { %v1381_v63 = vpop.f32.mrb[106].mxu0  ;;  %v1936_v0 = vpop.f32.mrb[106].mxu1 }
 0x1bf   :  { %2317 = vst.msk [vmem:[%s5515_s6 + $0x10] sm:$0xff] %vm2314_vm5, %v2267_v15  ;;  %v2219_v32 = vadd.f32 %v5118_v59, %v2163_v38  ;;  %v1609_v5 = vmax.f32 %v5620_v17, %v1381_v63  ;;  %v3173_v10 = vpop.f32.mrb[107].mxu0  ;;  %v3340_v21 = vpop.f32.mrb[107].mxu1 }
 0x1c1   :  { %v2268_v22 = vmax.f32 %v2219_v32, 0.0  ;;  %v2164_v19 = vmax.f32 %v1609_v5, %v1936_v0  ;;  %v5623_v5 = vmax.f32 %v4414_v49, %v4416_v50 }
 0x1c2   :  { %v1386_v7 = vpop.f32.mrb[108].mxu0  ;;  %v1941_v8 = vpop.f32.mrb[108].mxu1 }
 0x1c3   :  { %2318 = vst.msk [vmem:[%s5515_s6 + $0x18] sm:$0xff] %vm2314_vm5, %v2268_v22  ;;  %v2220_v31 = vadd.f32 %v5118_v59, %v2164_v19  ;;  %v1610_v44 = vmax.f32 %v5621_v52, %v1386_v7  ;;  %v3176_v45 = vpop.f32.mrb[109].mxu0  ;;  %v3343_v28 = vpop.f32.mrb[109].mxu1 }
 0x1c5   :  { %v2269_v29 = vmax.f32 %v2220_v31, 0.0  ;;  %v2165_v11 = vmax.f32 %v1610_v44, %v1941_v8  ;;  %v5624_v31 = vmax.f32 %v4432_v56, %v4434_v57 }
 0x1c6   :  { %v1391_v2 = vpop.f32.mrb[110].mxu0  ;;  %v1946_v24 = vpop.f32.mrb[110].mxu1 }
 0x1c7   :  { %2319 = vst.msk [vmem:[%s5515_s6 + $0x20] sm:$0xff] %vm2314_vm5, %v2269_v29  ;;  %v2221_v6 = vadd.f32 %v5118_v59, %v2165_v11  ;;  %v1611_v15 = vmax.f32 %v5622_v14, %v1391_v2  ;;  %v3179_v38 = vpop.f32.mrb[111].mxu0  ;;  %v3346_v35 = vpop.f32.mrb[111].mxu1  ;;  %v5625_v2 = vmax.f32 %v4450_v1, %v4452_v3 }
 0x1c9   :  { %v2270_v36 = vmax.f32 %v2221_v6, 0.0  ;;  %v2166_v63 = vmax.f32 %v1611_v15, %v1946_v24 }
 0x1ca   :  { %v1396_v0 = vpop.f32.mrb[112].mxu0  ;;  %v1951_v32 = vpop.f32.mrb[112].mxu1 }
 0x1cb   :  { %2320 = vst.msk [vmem:[%s5515_s6 + $0x28] sm:$0xff] %vm2314_vm5, %v2270_v36  ;;  %v2222_v17 = vadd.f32 %v5118_v59, %v2166_v63  ;;  %v1612_v10 = vmax.f32 %v5623_v5, %v1396_v0  ;;  %v3182_v21 = vpop.f32.mrb[113].mxu0  ;;  %v3349_v42 = vpop.f32.mrb[113].mxu1  ;;  %v5626_v36 = vmax.f32 %v4468_v13, %v4470_v16 }
 0x1cc   :  { %v5627_v21 = vmax.f32 %v4486_v26, %v4488_v27 }
 0x1cd   :  { %v2271_v43 = vmax.f32 %v2222_v17, 0.0  ;;  %v2167_v22 = vmax.f32 %v1612_v10, %v1951_v32 }
 0x1ce   :  { %v1401_v19 = vpop.f32.mrb[114].mxu0  ;;  %v1956_v7 = vpop.f32.mrb[114].mxu1 }
 0x1cf   :  { %2321 = vst.msk [vmem:[%s5515_s6 + $0x30] sm:$0xff] %vm2314_vm5, %v2271_v43  ;;  %v2223_v8 = vadd.f32 %v5118_v59, %v2167_v22  ;;  %v1613_v52 = vmax.f32 %v5624_v31, %v1401_v19  ;;  %v3185_v44 = vpop.f32.mrb[115].mxu0  ;;  %v3352_v49 = vpop.f32.mrb[115].mxu1  ;;  %v5628_v31 = vmax.f32 %v4504_v39, %v4506_v40 }
 0x1d1   :  { %v2272_v50 = vmax.f32 %v2223_v8, 0.0  ;;  %v2168_v45 = vmax.f32 %v1613_v52, %v1956_v7 }
 0x1d2   :  { %v1406_v28 = vpop.f32.mrb[116].mxu0  ;;  %v1961_v29 = vpop.f32.mrb[116].mxu1 }
 0x1d3   :  { %2322 = vst.msk [vmem:[%s5515_s6 + $0x38] sm:$0xff] %vm2314_vm5, %v2272_v50  ;;  %v2224_v11 = vadd.f32 %v5118_v59, %v2168_v45  ;;  %v1614_v24 = vmax.f32 %v5625_v2, %v1406_v28  ;;  %v3188_v6 = vpop.f32.mrb[117].mxu0  ;;  %v3355_v56 = vpop.f32.mrb[117].mxu1 }
 0x1d5   :  { %v2273_v57 = vmax.f32 %v2224_v11, 0.0  ;;  %v2169_v14 = vmax.f32 %v1614_v24, %v1961_v29  ;;  %v5629_v29 = vmax.f32 %v4522_v51, %v4524_v53 }
 0x1d6   :  { %v1411_v15 = vpop.f32.mrb[118].mxu0  ;;  %v1966_v38 = vpop.f32.mrb[118].mxu1 }
 0x1d7   :  { %2323 = vst.msk [vmem:[%s5515_s6 + $0x40] sm:$0xff] %vm2314_vm5, %v2273_v57  ;;  %v2225_v35 = vadd.f32 %v5118_v59, %v2169_v14  ;;  %v1615_v63 = vmax.f32 %v5626_v36, %v1411_v15  ;;  %v3191_v0 = vpop.f32.mrb[119].mxu0  ;;  %v3358_v1 = vpop.f32.mrb[119].mxu1  ;;  %v5630_v14 = vmax.f32 %v4540_v62, %v4542_v4 }
 0x1d8   :  { %v5631_v1 = vmax.f32 %v4558_v23, %v4560_v25 }
 0x1d9   :  { %v2274_v3 = vmax.f32 %v2225_v35, 0.0  ;;  %v2170_v32 = vmax.f32 %v1615_v63, %v1966_v38 }
 0x1da   :  { %v1416_v17 = vpop.f32.mrb[120].mxu0  ;;  %v1971_v5 = vpop.f32.mrb[120].mxu1 }
 0x1db   :  { %2324 = vst.msk [vmem:[%s5515_s6 + $0x48] sm:$0xff] %vm2314_vm5, %v2274_v3  ;;  %v2226_v10 = vadd.f32 %v5118_v59, %v2170_v32  ;;  %v1616_v42 = vmax.f32 %v5627_v21, %v1416_v17  ;;  %v3194_v43 = vpop.f32.mrb[121].mxu0  ;;  %v3361_v13 = vpop.f32.mrb[121].mxu1 }
 0x1dd   :  { %v2275_v16 = vmax.f32 %v2226_v10, 0.0  ;;  %v2171_v22 = vmax.f32 %v1616_v42, %v1971_v5  ;;  %v5632_v42 = vmax.f32 %v4576_v46, %v4578_v47 }
 0x1de   :  { %v1421_v19 = vpop.f32.mrb[122].mxu0  ;;  %v1976_v7 = vpop.f32.mrb[122].mxu1 }
 0x1df   :  { %2325 = vst.msk [vmem:[%s5515_s6 + $0x50] sm:$0xff] %vm2314_vm5, %v2275_v16  ;;  %v2227_v8 = vadd.f32 %v5118_v59, %v2171_v22  ;;  %v1617_v52 = vmax.f32 %v5628_v31, %v1421_v19  ;;  %v3197_v44 = vpop.f32.mrb[123].mxu0  ;;  %v3364_v26 = vpop.f32.mrb[123].mxu1 }
 0x1e1   :  { %v2276_v27 = vmax.f32 %v2227_v8, 0.0  ;;  %v2172_v49 = vmax.f32 %v1617_v52, %v1976_v7  ;;  %v5633_v8 = vmax.f32 %v4594_v9, %v4596_v12 }
 0x1e2   :  { %v1426_v50 = vpop.f32.mrb[124].mxu0  ;;  %v1981_v45 = vpop.f32.mrb[124].mxu1 }
 0x1e3   :  { %2326 = vst.msk [vmem:[%s5515_s6 + $0x58] sm:$0xff] %vm2314_vm5, %v2276_v27  ;;  %v2228_v28 = vadd.f32 %v5118_v59, %v2172_v49  ;;  %v1618_v11 = vmax.f32 %v5629_v29, %v1426_v50  ;;  %v3200_v2 = vpop.f32.mrb[125].mxu0  ;;  %v3367_v39 = vpop.f32.mrb[125].mxu1  ;;  %v5634_v50 = vmax.f32 %v4612_v41, %v4614_v48 }
 0x1e5   :  { %v2277_v40 = vmax.f32 %v2228_v28, 0.0  ;;  %v2173_v24 = vmax.f32 %v1618_v11, %v1981_v45 }
 0x1e6   :  { %v1431_v6 = vpop.f32.mrb[126].mxu0  ;;  %v1986_v56 = vpop.f32.mrb[126].mxu1 }
 0x1e7   :  { %2327 = vst.msk [vmem:[%s5515_s6 + $0x60] sm:$0xff] %vm2314_vm5, %v2277_v40  ;;  %v2229_v57 = vadd.f32 %v5118_v59, %v2173_v24  ;;  %v1619_v15 = vmax.f32 %v5630_v14, %v1431_v6  ;;  %v3203_v38 = vpop.f32.mrb[127].mxu0  ;;  %v3370_v51 = vpop.f32.mrb[127].mxu1  ;;  %v5635_v40 = vmax.f32 %v4630_v58, %v4632_v34 }
 0x1e8   :  { %v5636_v38 = vmax.f32 %v4648_v37, %v4650_v18 }
 0x1e9   :  { %v2278_v53 = vmax.f32 %v2229_v57, 0.0  ;;  %v2174_v35 = vmax.f32 %v1619_v15, %v1986_v56 }
 0x1ea   :  { %v1436_v36 = vpop.f32.mrb[128].mxu0  ;;  %v1991_v63 = vpop.f32.mrb[128].mxu1 }
 0x1eb   :  { %2328 = vst.msk [vmem:[%s5515_s6 + $0x68] sm:$0xff] %vm2314_vm5, %v2278_v53  ;;  %v2230_v0 = vadd.f32 %v5118_v59, %v2174_v35  ;;  %v1620_v3 = vmax.f32 %v5631_v1, %v1436_v36  ;;  %v3206_v32 = vpop.f32.mrb[129].mxu0  ;;  %v3373_v62 = vpop.f32.mrb[129].mxu1  ;;  %v5637_v1 = vmax.f32 %v4666_v30, %v4668_v20 }
 0x1ed   :  { %v2279_v4 = vmax.f32 %v2230_v0, 0.0  ;;  %v2175_v17 = vmax.f32 %v1620_v3, %v1991_v63 }
 0x1ee   :  { %v1441_v5 = vpop.f32.mrb[130].mxu0  ;;  %v1996_v10 = vpop.f32.mrb[130].mxu1 }
 0x1ef   :  { %2329 = vst.msk [vmem:[%s5515_s6 + $0x70] sm:$0xff] %vm2314_vm5, %v2279_v4  ;;  %v2231_v21 = vadd.f32 %v5118_v59, %v2175_v17  ;;  %v1621_v43 = vmax.f32 %v5632_v42, %v1441_v5  ;;  %v3209_v13 = vpop.f32.mrb[131].mxu0  ;;  %v3376_v23 = vpop.f32.mrb[131].mxu1 }
 0x1f1   :  { %v2280_v25 = vmax.f32 %v2231_v21, 0.0  ;;  %v2176_v16 = vmax.f32 %v1621_v43, %v1996_v10  ;;  %v5638_v10 = vmax.f32 %v4684_v61, %v4686_v33 }
 0x1f2   :  { %v1446_v22 = vpop.f32.mrb[132].mxu0  ;;  %v2001_v19 = vpop.f32.mrb[132].mxu1 }
 0x1f3   :  { %2330 = vst.msk [vmem:[%s5515_s6 + $0x78] sm:$0xff] %vm2314_vm5, %v2280_v25  ;;  %v2232_v7 = vadd.f32 %v5118_v59, %v2176_v16  ;;  %v1622_v31 = vmax.f32 %v5633_v8, %v1446_v22  ;;  %v3212_v52 = vpop.f32.mrb[133].mxu0  ;;  %v3379_v46 = vpop.f32.mrb[133].mxu1  ;;  %v5639_v16 = vmax.f32 %v4702_v60, %v4704_v55 }
 0x1f4   :  { %v5640_v46 = vld [vmem:[#allocation2_spill] sm:$0xff] }
 0x1f5   :  { %v2281_v47 = vmax.f32 %v2232_v7, 0.0  ;;  %v2177_v44 = vmax.f32 %v1622_v31, %v2001_v19 }
 0x1f6   :  { %v1451_v26 = vpop.f32.mrb[134].mxu0  ;;  %v2006_v27 = vpop.f32.mrb[134].mxu1 }
 0x1f7   :  { %2331 = vst.msk [vmem:[%s5515_s6 + $0x80] sm:$0xff] %vm2314_vm5, %v2281_v47  ;;  %v2233_v49 = vadd.f32 %v5118_v59, %v2177_v44  ;;  %v1623_v45 = vmax.f32 %v5634_v50, %v1451_v26  ;;  %v3215_v28 = vpop.f32.mrb[135].mxu0  ;;  %v3382_v9 = vpop.f32.mrb[135].mxu1  ;;  %v5641_v47 = vmax.f32 %v4720_v54, %v5640_v46 }
 0x1f8   :  { %v5642_v28 = vld [vmem:[#allocation3_spill] sm:$0xff]  ;;  %v5643_v9 = vld [vmem:[#allocation4_spill] sm:$0xff] }
 0x1f9   :  { %v2282_v12 = vmax.f32 %v2233_v49, 0.0  ;;  %v2178_v29 = vmax.f32 %v1623_v45, %v2006_v27 }
 0x1fa   :  { %v1456_v11 = vpop.f32.mrb[136].mxu0  ;;  %v2011_v2 = vpop.f32.mrb[136].mxu1 }
 0x1fb   :  { %2332 = vst.msk [vmem:[%s5515_s6 + $0x88] sm:$0xff] %vm2314_vm5, %v2282_v12  ;;  %v2234_v39 = vadd.f32 %v5118_v59, %v2178_v29  ;;  %v1624_v24 = vmax.f32 %v5635_v40, %v1456_v11  ;;  %v3218_v6 = vpop.f32.mrb[137].mxu0  ;;  %v3385_v41 = vpop.f32.mrb[137].mxu1  ;;  %v5644_v12 = vmax.f32 %v5642_v28, %v5643_v9 }
 0x1fc   :  { %v5645_v41 = vld [vmem:[#allocation5_spill] sm:$0xff] }
 0x1fd   :  { %v2283_v48 = vmax.f32 %v2234_v39, 0.0  ;;  %v2179_v56 = vmax.f32 %v1624_v24, %v2011_v2 }
 0x1fe   :  { %v1461_v57 = vpop.f32.mrb[138].mxu0  ;;  %v2016_v14 = vpop.f32.mrb[138].mxu1 }
 0x1ff   :  { %2333 = vst.msk [vmem:[%s5515_s6 + $0x90] sm:$0xff] %vm2314_vm5, %v2283_v48  ;;  %v2235_v15 = vadd.f32 %v5118_v59, %v2179_v56  ;;  %v1625_v51 = vmax.f32 %v5636_v38, %v1461_v57  ;;  %v3221_v53 = vpop.f32.mrb[139].mxu0  ;;  %v3388_v58 = vpop.f32.mrb[139].mxu1  ;;  %v5646_v48 = vld [vmem:[#allocation6_spill] sm:$0xff] }
 0x200   :  { %v5647_v56 = vmax.f32 %v5645_v41, %v5646_v48 }
 0x201   :  { %v2284_v34 = vmax.f32 %v2235_v15, 0.0  ;;  %v2180_v35 = vmax.f32 %v1625_v51, %v2016_v14 }
 0x202   :  { %v1466_v36 = vpop.f32.mrb[140].mxu0  ;;  %v2021_v63 = vpop.f32.mrb[140].mxu1 }
 0x203   :  { %2334 = vst.msk [vmem:[%s5515_s6 + $0x98] sm:$0xff] %vm2314_vm5, %v2284_v34  ;;  %v2236_v0 = vadd.f32 %v5118_v59, %v2180_v35  ;;  %v1626_v3 = vmax.f32 %v5637_v1, %v1466_v36  ;;  %v3224_v32 = vpop.f32.mrb[141].mxu0  ;;  %v3391_v37 = vpop.f32.mrb[141].mxu1  ;;  %v5648_v35 = vld [vmem:[#allocation7_spill] sm:$0xff]  ;;  %v5649_v36 = vld [vmem:[#allocation8_spill] sm:$0xff] }
 0x205   :  { %v2285_v18 = vmax.f32 %v2236_v0, 0.0  ;;  %v2181_v62 = vmax.f32 %v1626_v3, %v2021_v63  ;;  %v5650_v63 = vmax.f32 %v5648_v35, %v5649_v36 }
 0x206   :  { %v1471_v4 = vpop.f32.mrb[142].mxu0  ;;  %v2026_v17 = vpop.f32.mrb[142].mxu1 }
 0x207   :  { %2335 = vst.msk [vmem:[%s5515_s6 + $0xa0] sm:$0xff] %vm2314_vm5, %v2285_v18  ;;  %v2237_v5 = vadd.f32 %v5118_v59, %v2181_v62  ;;  %v1627_v21 = vmax.f32 %v5638_v10, %v1471_v4  ;;  %v3227_v42 = vpop.f32.mrb[143].mxu0  ;;  %v3394_v30 = vpop.f32.mrb[143].mxu1 }
 0x209   :  { %v2286_v20 = vmax.f32 %v2237_v5, 0.0  ;;  %v2182_v43 = vmax.f32 %v1627_v21, %v2026_v17  ;;  %v5651_v17 = vld [vmem:[#allocation9_spill] sm:$0xff]  ;;  %v5652_v5 = vld [vmem:[#allocation10_spill] sm:$0xff] }
 0x20a   :  { %v1476_v13 = vpop.f32.mrb[144].mxu0  ;;  %v2031_v23 = vpop.f32.mrb[144].mxu1  ;;  %v5653_v10 = vmax.f32 %v5651_v17, %v5652_v5 }
 0x20b   :  { %2336 = vst.msk [vmem:[%s5515_s6 + $0xa8] sm:$0xff] %vm2314_vm5, %v2286_v20  ;;  %v2238_v25 = vadd.f32 %v5118_v59, %v2182_v43  ;;  %v1628_v22 = vmax.f32 %v5639_v16, %v1476_v13  ;;  %v3230_v19 = vpop.f32.mrb[145].mxu0  ;;  %v3397_v61 = vpop.f32.mrb[145].mxu1  ;;  %v5654_v16 = vld [vmem:[#allocation11_spill] sm:$0xff] }
 0x20d   :  { %v2287_v33 = vmax.f32 %v2238_v25, 0.0  ;;  %v2183_v7 = vmax.f32 %v1628_v22, %v2031_v23  ;;  %v5655_v22 = vld [vmem:[#allocation12_spill] sm:$0xff] }
 0x20e   :  { %v1481_v8 = vpop.f32.mrb[146].mxu0  ;;  %v2036_v31 = vpop.f32.mrb[146].mxu1  ;;  %v5656_v19 = vmax.f32 %v5654_v16, %v5655_v22 }
 0x20f   :  { %2337 = vst.msk [vmem:[%s5515_s6 + $0xb0] sm:$0xff] %vm2314_vm5, %v2287_v33  ;;  %v2239_v52 = vadd.f32 %v5118_v59, %v2183_v7  ;;  %v1629_v44 = vmax.f32 %v5641_v47, %v1481_v8  ;;  %v3233_v26 = vpop.f32.mrb[147].mxu0  ;;  %v3400_v60 = vpop.f32.mrb[147].mxu1 }
 0x210   :  { %v5658_v26 = vld [vmem:[#allocation14_spill] sm:$0xff] }
 0x211   :  { %v2288_v55 = vmax.f32 %v2239_v52, 0.0  ;;  %v2184_v27 = vmax.f32 %v1629_v44, %v2036_v31  ;;  %v5657_v44 = vld [vmem:[#allocation13_spill] sm:$0xff] }
 0x212   :  { %v1486_v49 = vpop.f32.mrb[148].mxu0  ;;  %v2041_v50 = vpop.f32.mrb[148].mxu1  ;;  %v5659_v60 = vmax.f32 %v5657_v44, %v5658_v26 }
 0x213   :  { %2338 = vst.msk [vmem:[%s5515_s6 + $0xb8] sm:$0xff] %vm2314_vm5, %v2288_v55  ;;  %v2240_v45 = vadd.f32 %v5118_v59, %v2184_v27  ;;  %v1630_v29 = vmax.f32 %v5644_v12, %v1486_v49  ;;  %v3236_v11 = vpop.f32.mrb[149].mxu0  ;;  %v3403_v54 = vpop.f32.mrb[149].mxu1 }
 0x214   :  { %v5661_v11 = vld [vmem:[#allocation16_spill] sm:$0xff] }
 0x215   :  { %v2289_v2 = vmax.f32 %v2240_v45, 0.0  ;;  %v2185_v39 = vmax.f32 %v1630_v29, %v2041_v50  ;;  %v5660_v29 = vld [vmem:[#allocation15_spill] sm:$0xff] }
 0x216   :  { %v1491_v40 = vpop.f32.mrb[150].mxu0  ;;  %v2046_v24 = vpop.f32.mrb[150].mxu1  ;;  %v5662_v54 = vmax.f32 %v5660_v29, %v5661_v11 }
 0x217   :  { %2339 = vst.msk [vmem:[%s5515_s6 + $0xc0] sm:$0xff] %vm2314_vm5, %v2289_v2  ;;  %v2241_v6 = vadd.f32 %v5118_v59, %v2185_v39  ;;  %v1631_v57 = vmax.f32 %v5647_v56, %v1491_v40  ;;  %v3239_v14 = vpop.f32.mrb[151].mxu0  ;;  %v3406_v15 = vpop.f32.mrb[151].mxu1 }
 0x218   :  { %v5664_v14 = vld [vmem:[#allocation18_spill] sm:$0xff] }
 0x219   :  { %v2290_v38 = vmax.f32 %v2241_v6, 0.0  ;;  %v2186_v51 = vmax.f32 %v1631_v57, %v2046_v24  ;;  %v5663_v57 = vld [vmem:[#allocation17_spill] sm:$0xff] }
 0x21a   :  { %v1496_v53 = vpop.f32.mrb[152].mxu0  ;;  %v2051_v58 = vpop.f32.mrb[152].mxu1  ;;  %v5665_v15 = vmax.f32 %v5663_v57, %v5664_v14 }
 0x21b   :  { %2340 = vst.msk [vmem:[%s5515_s6 + $0xc8] sm:$0xff] %vm2314_vm5, %v2290_v38  ;;  %v2242_v34 = vadd.f32 %v5118_v59, %v2186_v51  ;;  %v1632_v0 = vmax.f32 %v5650_v63, %v1496_v53  ;;  %v3242_v1 = vpop.f32.mrb[153].mxu0  ;;  %v3409_v3 = vpop.f32.mrb[153].mxu1 }
 0x21c   :  { %v5667_v1 = vld [vmem:[#allocation20_spill] sm:$0xff] }
 0x21d   :  { %v2291_v32 = vmax.f32 %v2242_v34, 0.0  ;;  %v2187_v37 = vmax.f32 %v1632_v0, %v2051_v58  ;;  %v5666_v0 = vld [vmem:[#allocation19_spill] sm:$0xff] }
 0x21e   :  { %v1501_v18 = vpop.f32.mrb[154].mxu0  ;;  %v2056_v62 = vpop.f32.mrb[154].mxu1  ;;  %v5668_v3 = vmax.f32 %v5666_v0, %v5667_v1 }
 0x21f   :  { %2341 = vst.msk [vmem:[%s5515_s6 + $0xd0] sm:$0xff] %vm2314_vm5, %v2291_v32  ;;  %v2243_v4 = vadd.f32 %v5118_v59, %v2187_v37  ;;  %v1633_v21 = vmax.f32 %v5653_v10, %v1501_v18  ;;  %v3245_v42 = vpop.f32.mrb[155].mxu0  ;;  %v3412_v30 = vpop.f32.mrb[155].mxu1 }
 0x220   :  { %v5670_v42 = vld [vmem:[#allocation22_spill] sm:$0xff] }
 0x221   :  { %v2292_v20 = vmax.f32 %v2243_v4, 0.0  ;;  %v2188_v43 = vmax.f32 %v1633_v21, %v2056_v62  ;;  %v5669_v21 = vld [vmem:[#allocation21_spill] sm:$0xff] }
 0x222   :  { %v1506_v13 = vpop.f32.mrb[156].mxu0  ;;  %v2061_v23 = vpop.f32.mrb[156].mxu1  ;;  %v5671_v30 = vmax.f32 %v5669_v21, %v5670_v42 }
 0x223   :  { %2342 = vst.msk [vmem:[%s5515_s6 + $0xd8] sm:$0xff] %vm2314_vm5, %v2292_v20  ;;  %v2244_v25 = vadd.f32 %v5118_v59, %v2188_v43  ;;  %v1634_v61 = vmax.f32 %v5656_v19, %v1506_v13  ;;  %v3248_v33 = vpop.f32.mrb[157].mxu0  ;;  %v3415_v7 = vpop.f32.mrb[157].mxu1 }
 0x224   :  { %v5673_v33 = vld [vmem:[#allocation24_spill] sm:$0xff] }
 0x225   :  { %v2293_v8 = vmax.f32 %v2244_v25, 0.0  ;;  %v2189_v31 = vmax.f32 %v1634_v61, %v2061_v23  ;;  %v5672_v61 = vld [vmem:[#allocation23_spill] sm:$0xff] }
 0x226   :  { %v1511_v52 = vpop.f32.mrb[158].mxu0  ;;  %v2066_v46 = vpop.f32.mrb[158].mxu1  ;;  %v5674_v7 = vmax.f32 %v5672_v61, %v5673_v33 }
 0x227   :  { %2343 = vst.msk [vmem:[%s5515_s6 + $0xe0] sm:$0xff] %vm2314_vm5, %v2293_v8  ;;  %v2245_v47 = vadd.f32 %v5118_v59, %v2189_v31  ;;  %v1635_v55 = vmax.f32 %v5659_v60, %v1511_v52  ;;  %v3251_v27 = vpop.f32.mrb[159].mxu0  ;;  %v3418_v49 = vpop.f32.mrb[159].mxu1 }
 0x228   :  { %v5676_v27 = vld [vmem:[#allocation26_spill] sm:$0xff] }
 0x229   :  { %v2294_v50 = vmax.f32 %v2245_v47, 0.0  ;;  %v2190_v45 = vmax.f32 %v1635_v55, %v2066_v46  ;;  %v5675_v55 = vld [vmem:[#allocation25_spill] sm:$0xff] }
 0x22a   :  { %v1516_v28 = vpop.f32.mrb[160].mxu0  ;;  %v2071_v9 = vpop.f32.mrb[160].mxu1  ;;  %v5677_v49 = vmax.f32 %v5675_v55, %v5676_v27 }
 0x22b   :  { %2344 = vst.msk [vmem:[%s5515_s6 + $0xe8] sm:$0xff] %vm2314_vm5, %v2294_v50  ;;  %v2246_v12 = vadd.f32 %v5118_v59, %v2190_v45  ;;  %v1636_v2 = vmax.f32 %v5662_v54, %v1516_v28  ;;  %v3254_v39 = vpop.f32.mrb[161].mxu0  ;;  %v3421_v40 = vpop.f32.mrb[161].mxu1 }
 0x22c   :  { %v5679_v39 = vld [vmem:[#allocation28_spill] sm:$0xff] }
 0x22d   :  { %v2295_v24 = vmax.f32 %v2246_v12, 0.0  ;;  %v2191_v6 = vmax.f32 %v1636_v2, %v2071_v9  ;;  %v5678_v2 = vld [vmem:[#allocation27_spill] sm:$0xff] }
 0x22e   :  { %v1521_v41 = vpop.f32.mrb[162].mxu0  ;;  %v2076_v48 = vpop.f32.mrb[162].mxu1  ;;  %v5680_v40 = vmax.f32 %v5678_v2, %v5679_v39 }
 0x22f   :  { %2345 = vst.msk [vmem:[%s5515_s6 + $0xf0] sm:$0xff] %vm2314_vm5, %v2295_v24  ;;  %v2247_v56 = vadd.f32 %v5118_v59, %v2191_v6  ;;  %v1637_v38 = vmax.f32 %v5665_v15, %v1521_v41  ;;  %v3257_v51 = vpop.f32.mrb[163].mxu0  ;;  %v3424_v53 = vpop.f32.mrb[163].mxu1 }
 0x230   :  { %v5682_v51 = vld [vmem:[#allocation30_spill] sm:$0xff] }
 0x231   :  { %v2296_v58 = vmax.f32 %v2247_v56, 0.0  ;;  %v2192_v34 = vmax.f32 %v1637_v38, %v2076_v48  ;;  %v5681_v38 = vld [vmem:[#allocation29_spill] sm:$0xff] }
 0x232   :  { %v1526_v35 = vpop.f32.mrb[164].mxu0  ;;  %v2081_v36 = vpop.f32.mrb[164].mxu1  ;;  %v5683_v53 = vmax.f32 %v5681_v38, %v5682_v51 }
 0x233   :  { %2346 = vst.msk [vmem:[%s5515_s6 + $0xf8] sm:$0xff] %vm2314_vm5, %v2296_v58  ;;  %v2248_v63 = vadd.f32 %v5118_v59, %v2192_v34  ;;  %v1638_v32 = vmax.f32 %v5668_v3, %v1526_v35  ;;  %v3260_v37 = vpop.f32.mrb[165].mxu0  ;;  %v3427_v18 = vpop.f32.mrb[165].mxu1 }
 0x234   :  { %v5685_v37 = vld [vmem:[#allocation32_spill] sm:$0xff] }
 0x235   :  { %v2297_v62 = vmax.f32 %v2248_v63, 0.0  ;;  %v2193_v4 = vmax.f32 %v1638_v32, %v2081_v36  ;;  %v5684_v32 = vld [vmem:[#allocation31_spill] sm:$0xff] }
 0x236   :  { %v1531_v17 = vpop.f32.mrb[166].mxu0  ;;  %v2086_v5 = vpop.f32.mrb[166].mxu1  ;;  %v5686_v18 = vmax.f32 %v5684_v32, %v5685_v37 }
 0x237   :  { %2347 = vst.msk [vmem:[%s5515_s6 + $0x100] sm:$0xff] %vm2314_vm5, %v2297_v62  ;;  %v2249_v10 = vadd.f32 %v5118_v59, %v2193_v4  ;;  %v1639_v20 = vmax.f32 %v5671_v30, %v1531_v17  ;;  %v3263_v43 = vpop.f32.mrb[167].mxu0  ;;  %v3430_v13 = vpop.f32.mrb[167].mxu1 }
 0x238   :  { %v5688_v43 = vld [vmem:[#allocation34_spill] sm:$0xff] }
 0x239   :  { %v2298_v23 = vmax.f32 %v2249_v10, 0.0  ;;  %v2194_v25 = vmax.f32 %v1639_v20, %v2086_v5  ;;  %v5687_v20 = vld [vmem:[#allocation33_spill] sm:$0xff] }
 0x23a   :  { %v1536_v16 = vpop.f32.mrb[168].mxu0  ;;  %v2091_v22 = vpop.f32.mrb[168].mxu1  ;;  %v5689_v13 = vmax.f32 %v5687_v20, %v5688_v43 }
 0x23b   :  { %2348 = vst.msk [vmem:[%s5515_s6 + $0x108] sm:$0xff] %vm2314_vm5, %v2298_v23  ;;  %v2250_v19 = vadd.f32 %v5118_v59, %v2194_v25  ;;  %v1640_v8 = vmax.f32 %v5674_v7, %v1536_v16  ;;  %v3266_v31 = vpop.f32.mrb[169].mxu0  ;;  %v3433_v52 = vpop.f32.mrb[169].mxu1 }
 0x23c   :  { %v5691_v31 = vld [vmem:[#allocation36_spill] sm:$0xff] }
 0x23d   :  { %v2299_v46 = vmax.f32 %v2250_v19, 0.0  ;;  %v2195_v47 = vmax.f32 %v1640_v8, %v2091_v22  ;;  %v5690_v8 = vld [vmem:[#allocation35_spill] sm:$0xff] }
 0x23e   :  { %v1541_v44 = vpop.f32.mrb[170].mxu0  ;;  %v2096_v26 = vpop.f32.mrb[170].mxu1  ;;  %v5692_v52 = vmax.f32 %v5690_v8, %v5691_v31 }
 0x23f   :  { %2349 = vst.msk [vmem:[%s5515_s6 + $0x110] sm:$0xff] %vm2314_vm5, %v2299_v46  ;;  %v2251_v60 = vadd.f32 %v5118_v59, %v2195_v47  ;;  %v1641_v50 = vmax.f32 %v5677_v49, %v1541_v44  ;;  %v3269_v45 = vpop.f32.mrb[171].mxu0  ;;  %v3436_v28 = vpop.f32.mrb[171].mxu1 }
 0x240   :  { %v5694_v45 = vld [vmem:[#allocation38_spill] sm:$0xff] }
 0x241   :  { %v2300_v9 = vmax.f32 %v2251_v60, 0.0  ;;  %v2196_v12 = vmax.f32 %v1641_v50, %v2096_v26  ;;  %v5693_v50 = vld [vmem:[#allocation37_spill] sm:$0xff] }
 0x242   :  { %v1546_v29 = vpop.f32.mrb[172].mxu0  ;;  %v2101_v11 = vpop.f32.mrb[172].mxu1  ;;  %v5695_v28 = vmax.f32 %v5693_v50, %v5694_v45 }
 0x243   :  { %2350 = vst.msk [vmem:[%s5515_s6 + $0x118] sm:$0xff] %vm2314_vm5, %v2300_v9  ;;  %v2252_v54 = vadd.f32 %v5118_v59, %v2196_v12  ;;  %v1642_v24 = vmax.f32 %v5680_v40, %v1546_v29  ;;  %v3272_v6 = vpop.f32.mrb[173].mxu0  ;;  %v3439_v41 = vpop.f32.mrb[173].mxu1 }
 0x244   :  { %v5697_v6 = vld [vmem:[#allocation40_spill] sm:$0xff] }
 0x245   :  { %v2301_v48 = vmax.f32 %v2252_v54, 0.0  ;;  %v2197_v56 = vmax.f32 %v1642_v24, %v2101_v11  ;;  %v5696_v24 = vld [vmem:[#allocation39_spill] sm:$0xff] }
 0x246   :  { %v1551_v57 = vpop.f32.mrb[174].mxu0  ;;  %v2106_v14 = vpop.f32.mrb[174].mxu1  ;;  %v5698_v41 = vmax.f32 %v5696_v24, %v5697_v6 }
 0x247   :  { %2351 = vst.msk [vmem:[%s5515_s6 + $0x120] sm:$0xff] %vm2314_vm5, %v2301_v48  ;;  %v2253_v15 = vadd.f32 %v5118_v59, %v2197_v56  ;;  %v1643_v58 = vmax.f32 %v5683_v53, %v1551_v57  ;;  %v3275_v34 = vpop.f32.mrb[175].mxu0  ;;  %v3442_v35 = vpop.f32.mrb[175].mxu1 }
 0x248   :  { %v5700_v34 = vld [vmem:[#allocation42_spill] sm:$0xff] }
 0x249   :  { %v2302_v36 = vmax.f32 %v2253_v15, 0.0  ;;  %v2198_v63 = vmax.f32 %v1643_v58, %v2106_v14  ;;  %v5699_v58 = vld [vmem:[#allocation41_spill] sm:$0xff] }
 0x24a   :  { %v1556_v0 = vpop.f32.mrb[176].mxu0  ;;  %v2111_v1 = vpop.f32.mrb[176].mxu1  ;;  %v5701_v35 = vmax.f32 %v5699_v58, %v5700_v34 }
 0x24b   :  { %2352 = vst.msk [vmem:[%s5515_s6 + $0x128] sm:$0xff] %vm2314_vm5, %v2302_v36  ;;  %v2254_v3 = vadd.f32 %v5118_v59, %v2198_v63  ;;  %v1644_v62 = vmax.f32 %v5686_v18, %v1556_v0  ;;  %v3278_v4 = vpop.f32.mrb[177].mxu0  ;;  %v3445_v17 = vpop.f32.mrb[177].mxu1 }
 0x24c   :  { %v5703_v4 = vld [vmem:[#allocation44_spill] sm:$0xff] }
 0x24d   :  { %v2303_v5 = vmax.f32 %v2254_v3, 0.0  ;;  %v2199_v10 = vmax.f32 %v1644_v62, %v2111_v1  ;;  %v5702_v62 = vld [vmem:[#allocation43_spill] sm:$0xff] }
 0x24e   :  { %v1561_v21 = vpop.f32.mrb[178].mxu0  ;;  %v2116_v42 = vpop.f32.mrb[178].mxu1  ;;  %v5704_v17 = vmax.f32 %v5702_v62, %v5703_v4 }
 0x24f   :  { %2353 = vst.msk [vmem:[%s5515_s6 + $0x130] sm:$0xff] %vm2314_vm5, %v2303_v5  ;;  %v2255_v30 = vadd.f32 %v5118_v59, %v2199_v10  ;;  %v1645_v23 = vmax.f32 %v5689_v13, %v1561_v21  ;;  %v3281_v25 = vpop.f32.mrb[179].mxu0  ;;  %v3448_v16 = vpop.f32.mrb[179].mxu1 }
 0x250   :  { %v5706_v25 = vld [vmem:[#allocation46_spill] sm:$0xff] }
 0x251   :  { %v2304_v22 = vmax.f32 %v2255_v30, 0.0  ;;  %v2200_v19 = vmax.f32 %v1645_v23, %v2116_v42  ;;  %v5705_v23 = vld [vmem:[#allocation45_spill] sm:$0xff] }
 0x252   :  { %v1566_v61 = vpop.f32.mrb[180].mxu0  ;;  %v2121_v33 = vpop.f32.mrb[180].mxu1  ;;  %v5707_v16 = vmax.f32 %v5705_v23, %v5706_v25 }
 0x253   :  { %2354 = vst.msk [vmem:[%s5515_s6 + $0x138] sm:$0xff] %vm2314_vm5, %v2304_v22  ;;  %v2256_v7 = vadd.f32 %v5118_v59, %v2200_v19  ;;  %v1646_v46 = vmax.f32 %v5692_v52, %v1566_v61  ;;  %v3284_v47 = vpop.f32.mrb[181].mxu0  ;;  %v3451_v44 = vpop.f32.mrb[181].mxu1 }
 0x254   :  { %v5709_v47 = vld [vmem:[#allocation48_spill] sm:$0xff] }
 0x255   :  { %v2305_v26 = vmax.f32 %v2256_v7, 0.0  ;;  %v2201_v60 = vmax.f32 %v1646_v46, %v2121_v33  ;;  %v5708_v46 = vld [vmem:[#allocation47_spill] sm:$0xff] }
 0x256   :  { %v1571_v55 = vpop.f32.mrb[182].mxu0  ;;  %v2126_v27 = vpop.f32.mrb[182].mxu1  ;;  %v5710_v44 = vmax.f32 %v5708_v46, %v5709_v47 }
 0x257   :  { %2355 = vst.msk [vmem:[%s5515_s6 + $0x140] sm:$0xff] %vm2314_vm5, %v2305_v26  ;;  %v2257_v49 = vadd.f32 %v5118_v59, %v2201_v60  ;;  %v1647_v9 = vmax.f32 %v5695_v28, %v1571_v55  ;;  %v3287_v12 = vpop.f32.mrb[183].mxu0  ;;  %v3454_v29 = vpop.f32.mrb[183].mxu1 }
 0x258   :  { %v5712_v12 = vld [vmem:[#allocation50_spill] sm:$0xff] }
 0x259   :  { %v2306_v11 = vmax.f32 %v2257_v49, 0.0  ;;  %v2202_v54 = vmax.f32 %v1647_v9, %v2126_v27  ;;  %v5711_v9 = vld [vmem:[#allocation49_spill] sm:$0xff] }
 0x25a   :  { %v1576_v2 = vpop.f32.mrb[184].mxu0  ;;  %v2131_v39 = vpop.f32.mrb[184].mxu1  ;;  %v5713_v29 = vmax.f32 %v5711_v9, %v5712_v12 }
 0x25b   :  { %2356 = vst.msk [vmem:[%s5515_s6 + $0x148] sm:$0xff] %vm2314_vm5, %v2306_v11  ;;  %v2258_v40 = vadd.f32 %v5118_v59, %v2202_v54  ;;  %v1648_v48 = vmax.f32 %v5698_v41, %v1576_v2  ;;  %v3290_v56 = vpop.f32.mrb[185].mxu0  ;;  %v3457_v57 = vpop.f32.mrb[185].mxu1 }
 0x25d   :  { %v2307_v14 = vmax.f32 %v2258_v40, 0.0  ;;  %v2203_v15 = vmax.f32 %v1648_v48, %v2131_v39 }
 0x25e   :  { %v1581_v38 = vpop.f32.mrb[186].mxu0  ;;  %v2136_v51 = vpop.f32.mrb[186].mxu1 }
 0x25f   :  { %2357 = vst.msk [vmem:[%s5515_s6 + $0x150] sm:$0xff] %vm2314_vm5, %v2307_v14  ;;  %v2259_v53 = vadd.f32 %v5118_v59, %v2203_v15  ;;  %v1649_v36 = vmax.f32 %v5701_v35, %v1581_v38  ;;  %v3293_v63 = vpop.f32.mrb[187].mxu0  ;;  %v3460_v0 = vpop.f32.mrb[187].mxu1 }
 0x261   :  { %v2308_v1 = vmax.f32 %v2259_v53, 0.0  ;;  %v2204_v3 = vmax.f32 %v1649_v36, %v2136_v51 }
 0x262   :  { %v1586_v32 = vpop.f32.mrb[188].mxu0  ;;  %v2141_v37 = vpop.f32.mrb[188].mxu1 }
 0x263   :  { %2358 = vst.msk [vmem:[%s5515_s6 + $0x158] sm:$0xff] %vm2314_vm5, %v2308_v1  ;;  %v2260_v18 = vadd.f32 %v5118_v59, %v2204_v3  ;;  %v1650_v5 = vmax.f32 %v5704_v17, %v1586_v32  ;;  %v3296_v10 = vpop.f32.mrb[189].mxu0  ;;  %v3463_v21 = vpop.f32.mrb[189].mxu1 }
 0x265   :  { %v2309_v42 = vmax.f32 %v2260_v18, 0.0  ;;  %v2205_v30 = vmax.f32 %v1650_v5, %v2141_v37 }
 0x266   :  { %v1591_v20 = vpop.f32.mrb[190].mxu0  ;;  %v2146_v43 = vpop.f32.mrb[190].mxu1 }
 0x267   :  { %2359 = vst.msk [vmem:[%s5515_s6 + $0x160] sm:$0xff] %vm2314_vm5, %v2309_v42  ;;  %v2261_v13 = vadd.f32 %v5118_v59, %v2205_v30  ;;  %v1651_v22 = vmax.f32 %v5707_v16, %v1591_v20  ;;  %v3299_v19 = vpop.f32.mrb[191].mxu0  ;;  %v3466_v61 = vpop.f32.mrb[191].mxu1 }
 0x269   :  { %v2310_v33 = vmax.f32 %v2261_v13, 0.0  ;;  %v2206_v7 = vmax.f32 %v1651_v22, %v2146_v43 }
 0x26a   :  { %v1596_v8 = vpop.f32.mrb[192].mxu0  ;;  %v2151_v31 = vpop.f32.mrb[192].mxu1 }
 0x26b   :  { %2360 = vst.msk [vmem:[%s5515_s6 + $0x168] sm:$0xff] %vm2314_vm5, %v2310_v33  ;;  %v2262_v52 = vadd.f32 %v5118_v59, %v2206_v7  ;;  %v1652_v26 = vmax.f32 %v5710_v44, %v1596_v8  ;;  %v3302_v60 = vpop.f32.mrb[193].mxu0  ;;  %v3469_v55 = vpop.f32.mrb[193].mxu1 }
 0x26d   :  { %v2311_v27 = vmax.f32 %v2262_v52, 0.0  ;;  %v2207_v49 = vmax.f32 %v1652_v26, %v2151_v31 }
 0x26e   :  { %v1601_v50 = vpop.f32.mrb[194].mxu0  ;;  %v2156_v45 = vpop.f32.mrb[194].mxu1 }
 0x26f   :  { %2361 = vst.msk [vmem:[%s5515_s6 + $0x170] sm:$0xff] %vm2314_vm5, %v2311_v27  ;;  %v2263_v28 = vadd.f32 %v5118_v59, %v2207_v49  ;;  %v1653_v11 = vmax.f32 %v5713_v29, %v1601_v50  ;;  %v3305_v54 = vpop.f32.mrb[195].mxu0  ;;  %v3472_v2 = vpop.f32.mrb[195].mxu1 }
 0x271   :  { %v2312_v39 = vmax.f32 %v2263_v28, 0.0  ;;  %v2208_v40 = vmax.f32 %v1653_v11, %v2156_v45 }
 0x273   :  { %2362 = vst.msk [vmem:[%s5515_s6 + $0x178] sm:$0xff] %vm2314_vm5, %v2312_v39  ;;  %v2264_v24 = vadd.f32 %v5118_v59, %v2208_v40 }
 0x275   :  { %v2313_v6 = vmax.f32 %v2264_v24, 0.0 }
 0x277   :  { %2363 = vst.msk [vmem:[%s5515_s6 + $0x180] sm:$0xff] %vm2314_vm5, %v2313_v6 }

// kernel: ensemble_forward.4
= control target key start
LH: loop header
LB: loop body
LE: loop exit
PB: predicated region body
PF: predicated region fallthrough
CT: control target
= control target key end

     0   :  { %v1655_v0 = vmov 0.0|0.0   ;;  %vm108_vm0 = vcmask 539648   ;;  %vm130_vm1 = vcmask 1041408   ;;  %vm1123_vm2 = vcmask 392192   ;;  %s2520_s4 = inlined_call_operand.vmem [shape: f32[450,48], index: 4, kind: input, shape index: {}]   ;;  %s2521_s0 = inlined_call_operand.vmem [shape: f32[50,450], index: 0, kind: input, shape index: {}]   ;;  %s2522_s1 = inlined_call_operand.vmem [shape: f32[50,450], index: 1, kind: input, shape index: {}]   ;;  %s2523_s2 = inlined_call_operand.vmem [shape: f32[50,450], index: 2, kind: input, shape index: {}]   ;;  %s2524_s3 = inlined_call_operand.vmem [shape: f32[50,450], index: 3, kind: input, shape index: {}]   ;;  %s2525_s5 = inlined_call_operand.vmem [shape: f32[1,48], index: 5, kind: input, shape index: {}]   ;;  %s2526_s6 = inlined_call_operand.vmem [shape: f32[50,48], index: 6, kind: output, shape index: {}]  }
   0x1   :  { %1413 = vmatprep.subr.bf16.mxu1 %v1655_v0  ;;  %v39_v1 = vld [vmem:[%s2520_s4 + $0x80] sm:$0xff]  ;;  %v40_v2 = vld [vmem:[%s2520_s4 + $0x88] sm:$0xff]  ;;  %v41_v10 = vld [vmem:[%s2520_s4 + $0x90] sm:$0xff]  ;;  %vm1130_vm3 = vcmask 386048  }
   0x2   :  { %v55_v3 = vld [vmem:[%s2520_s4 + $0x100] sm:$0xff]  ;;  %v1702_v4 = vpack.c.bf16 %v40_v2, %v39_v1  ;;  %v56_v5 = vld [vmem:[%s2520_s4 + $0x108] sm:$0xff]  ;;  %v42_v11 = vld [vmem:[%s2520_s4 + $0x98] sm:$0xff] }
   0x3   :  { %v23_v6 = vld [vmem:[%s2520_s4] sm:$0xff]  ;;  %v24_v7 = vld [vmem:[%s2520_s4 + $0x8] sm:$0xff]  ;;  %v1713_v8 = vpack.c.bf16 %v56_v5, %v55_v3  ;;  %v57_v12 = vld [vmem:[%s2520_s4 + $0x110] sm:$0xff]  ;;  %v1727_v13 = vpack.c.bf16 %v42_v11, %v41_v10 }
   0x4   :  { %v1715_v9 = vpack.c.bf16 %v24_v7, %v23_v6  ;;  %1382 = vmatprep.subr.bf16.mxu0 %v1702_v4  ;;  %v58_v14 = vld [vmem:[%s2520_s4 + $0x118] sm:$0xff]  ;;  %v25_v15 = vld [vmem:[%s2520_s4 + $0x10] sm:$0xff]  ;;  %v43_v19 = vld [vmem:[%s2520_s4 + $0xa0] sm:$0xff] }
   0x5   :  { %v26_v16 = vld [vmem:[%s2520_s4 + $0x18] sm:$0xff]  ;;  %1415 = vmatpush1.bf16.msra.mxu1 %v1713_v8  ;;  %v1740_v17 = vpack.c.bf16 %v58_v14, %v57_v12  ;;  %v44_v20 = vld [vmem:[%s2520_s4 + $0xa8] sm:$0xff]  ;;  %v59_v21 = vld [vmem:[%s2520_s4 + $0x120] sm:$0xff] }
   0x6   :  { %1384 = vmatpush3.bf16.msra.mxu0 %v1715_v9  ;;  %v1742_v18 = vpack.c.bf16 %v26_v16, %v25_v15  ;;  %1416 = vmatprep.subr.bf16.mxu1 %v1655_v0  ;;  %v1755_v22 = vpack.c.bf16 %v44_v20, %v43_v19  ;;  %v60_v23 = vld [vmem:[%s2520_s4 + $0x128] sm:$0xff]  ;;  %v27_v24 = vld [vmem:[%s2520_s4 + $0x20] sm:$0xff]  ;;  %v45_v26 = vld [vmem:[%s2520_s4 + $0xb0] sm:$0xff] }
   0x7   :  { %1386 = vmatprep.subr.bf16.mxu0 %v1727_v13  ;;  %v28_v25 = vld [vmem:[%s2520_s4 + $0x28] sm:$0xff]  ;;  %v46_v27 = vld [vmem:[%s2520_s4 + $0xb8] sm:$0xff]  ;;  %v1774_v28 = vpack.c.bf16 %v60_v23, %v59_v21  ;;  %v61_v30 = vld [vmem:[%s2520_s4 + $0x130] sm:$0xff] }
   0x8   :  { %v1776_v29 = vpack.c.bf16 %v28_v25, %v27_v24  ;;  %v1783_v31 = vpack.c.bf16 %v46_v27, %v45_v26  ;;  %v62_v32 = vld [vmem:[%s2520_s4 + $0x138] sm:$0xff]  ;;  %v29_v33 = vld [vmem:[%s2520_s4 + $0x30] sm:$0xff]  ;;  %v47_v35 = vld [vmem:[%s2520_s4 + $0xc0] sm:$0xff] }
   0x9   :  { %1418 = vmatpush1.bf16.msra.mxu1 %v1740_v17  ;;  %v30_v34 = vld [vmem:[%s2520_s4 + $0x38] sm:$0xff]  ;;  %v48_v36 = vld [vmem:[%s2520_s4 + $0xc8] sm:$0xff]  ;;  %v1802_v37 = vpack.c.bf16 %v62_v32, %v61_v30  ;;  %v63_v39 = vld [vmem:[%s2520_s4 + $0x140] sm:$0xff] }
   0xa   :  { %1388 = vmatpush3.bf16.msra.mxu0 %v1742_v18  ;;  %1419 = vmatprep.subr.bf16.mxu1 %v1655_v0  ;;  %v1804_v38 = vpack.c.bf16 %v30_v34, %v29_v33  ;;  %v1811_v40 = vpack.c.bf16 %v48_v36, %v47_v35  ;;  %v64_v41 = vld [vmem:[%s2520_s4 + $0x148] sm:$0xff]  ;;  %v31_v42 = vld [vmem:[%s2520_s4 + $0x40] sm:$0xff]  ;;  %v49_v44 = vld [vmem:[%s2520_s4 + $0xd0] sm:$0xff] }
   0xb   :  { %1390 = vmatprep.subr.bf16.mxu0 %v1755_v22  ;;  %v32_v43 = vld [vmem:[%s2520_s4 + $0x48] sm:$0xff]  ;;  %v50_v45 = vld [vmem:[%s2520_s4 + $0xd8] sm:$0xff]  ;;  %v1830_v46 = vpack.c.bf16 %v64_v41, %v63_v39  ;;  %v65_v48 = vld [vmem:[%s2520_s4 + $0x150] sm:$0xff] }
   0xc   :  { %v1832_v47 = vpack.c.bf16 %v32_v43, %v31_v42  ;;  %v81_v49 = vld [vmem:[%s2521_s0 + $0x8] sm:$0xff]  ;;  %v1842_v50 = vpack.c.bf16 %v50_v45, %v49_v44  ;;  %v66_v51 = vld [vmem:[%s2520_s4 + $0x158] sm:$0xff]  ;;  %v33_v52 = vld [vmem:[%s2520_s4 + $0x50] sm:$0xff] }
   0xd   :  { %1421 = vmatpush1.bf16.msra.mxu1 %v1774_v28  ;;  %v34_v53 = vld [vmem:[%s2520_s4 + $0x58] sm:$0xff]  ;;  %v51_v54 = vld [vmem:[%s2520_s4 + $0xe0] sm:$0xff]  ;;  %v52_v55 = vld [vmem:[%s2520_s4 + $0xe8] sm:$0xff]  ;;  %198 = vmatprep.mubr.f32.mxu0 %v81_v49  ;;  %v1861_v56 = vpack.c.bf16 %v66_v51, %v65_v48  ;;  %v1656_v48 = vmov 0.0  }
   0xe   :  { %1392 = vmatpush3.bf16.msra.mxu0 %v1776_v29  ;;  %1422 = vmatprep.subr.bf16.mxu1 %v1655_v0  ;;  %v1863_v57 = vpack.c.bf16 %v34_v53, %v33_v52  ;;  %v67_v58 = vld [vmem:[%s2520_s4 + $0x160] sm:$0xff]  ;;  %v68_v59 = vld [vmem:[%s2520_s4 + $0x168] sm:$0xff]  ;;  %v1873_v60 = vpack.c.bf16 %v52_v55, %v51_v54  ;;  %v83_v63 = vld [vmem:[%s2521_s0 + $0x18] sm:$0xff] }
   0xf   :  { %1394 = vmatprep.subr.bf16.mxu0 %v1783_v31  ;;  %v35_v61 = vld [vmem:[%s2520_s4 + $0x60] sm:$0xff]  ;;  %v36_v62 = vld [vmem:[%s2520_s4 + $0x68] sm:$0xff]  ;;  %v53_v1 = vld [vmem:[%s2520_s4 + $0xf0] sm:$0xff]  ;;  %1137 = vmatprep.mubr.msk.f32.mxu1 %vm108_vm0, %v83_v63  ;;  %v1893_v3 = vpack.c.bf16 %v68_v59, %v67_v58 }
  0x10   :  { %v54_v2 = vld [vmem:[%s2520_s4 + $0xf8] sm:$0xff]  ;;  %v1895_v5 = vpack.c.bf16 %v36_v62, %v35_v61  ;;  %v69_v6 = vld [vmem:[%s2520_s4 + $0x170] sm:$0xff]  ;;  %v71_v16 = vld [vmem:[%s2520_s4 + $0x180] sm:$0xff] }
  0x11   :  { %1424 = vmatpush1.bf16.msra.mxu1 %v1802_v37  ;;  %v1902_v7 = vpack.c.bf16 %v54_v2, %v53_v1  ;;  %v70_v10 = vld [vmem:[%s2520_s4 + $0x178] sm:$0xff]  ;;  %v37_v11 = vld [vmem:[%s2520_s4 + $0x70] sm:$0xff]  ;;  %v72_v19 = vld [vmem:[%s2520_s4 + $0x188] sm:$0xff] }
  0x12   :  { %1396 = vmatpush3.bf16.msra.mxu0 %v1804_v38  ;;  %1425 = vmatprep.subr.bf16.mxu1 %v1655_v0  ;;  %v38_v12 = vld [vmem:[%s2520_s4 + $0x78] sm:$0xff]  ;;  %v1915_v14 = vpack.c.bf16 %v70_v10, %v69_v6  ;;  %v80_v20 = vld [vmem:[%s2521_s0] sm:$0xff]  ;;  %v1932_v21 = vpack.c.bf16 %v72_v19, %v71_v16  ;;  %v73_v23 = vld [vmem:[%s2520_s4 + $0x190] sm:$0xff] }
  0x13   :  { %1398 = vmatprep.subr.bf16.mxu0 %v1811_v40  ;;  %v1917_v15 = vpack.c.bf16 %v38_v12, %v37_v11  ;;  %v74_v24 = vld [vmem:[%s2520_s4 + $0x198] sm:$0xff]  ;;  %v85_v25 = vld [vmem:[%s2521_s0 + $0x28] sm:$0xff]  ;;  %v84_v27 = vld [vmem:[%s2521_s0 + $0x20] sm:$0xff] }
  0x14   :  { %v1947_v26 = vpack.c.bf16 %v74_v24, %v73_v23  ;;  %v75_v30 = vld [vmem:[%s2520_s4 + $0x1a0] sm:$0xff]  ;;  %v76_v32 = vld [vmem:[%s2520_s4 + $0x1a8] sm:$0xff]  ;;  %v77_v36 = vld [vmem:[%s2520_s4 + $0x1b0] sm:$0xff] }
  0x15   :  { %1427 = vmatpush1.bf16.msra.mxu1 %v1830_v46  ;;  %v89_v33 = vld [vmem:[%s2521_s0 + $0x48] sm:$0xff]  ;;  %v1965_v34 = vpack.c.bf16 %v76_v32, %v75_v30  ;;  %v88_v35 = vld [vmem:[%s2521_s0 + $0x40] sm:$0xff]  ;;  %v78_v39 = vld [vmem:[%s2520_s4 + $0x1b8] sm:$0xff] }
  0x16   :  { %1400 = vmatpush3.bf16.msra.mxu0 %v1832_v47  ;;  %1428 = vmatprep.subr.bf16.mxu1 %v1655_v0  ;;  %v93_v41 = vld [vmem:[%s2521_s0 + $0x68] sm:$0xff]  ;;  %v1983_v42 = vpack.c.bf16 %v78_v39, %v77_v36  ;;  %v92_v43 = vld [vmem:[%s2521_s0 + $0x60] sm:$0xff]  ;;  %v82_v51 = vld [vmem:[%s2521_s0 + $0x10] sm:$0xff] }
  0x17   :  { %1402 = vmatprep.subr.bf16.mxu0 %v1842_v50  ;;  %v97_v44 = vld [vmem:[%s2521_s0 + $0x88] sm:$0xff]  ;;  %v96_v45 = vld [vmem:[%s2521_s0 + $0x80] sm:$0xff]  ;;  %v87_v52 = vld [vmem:[%s2521_s0 + $0x38] sm:$0xff] }
  0x18   :  { %v2002_v49 = vld [vmem:[%s2520_s4 + $0x1c0] sm:$0x3]  ;;  %v101_v53 = vld [vmem:[%s2521_s0 + $0xa8] sm:$0xff]  ;;  %v86_v54 = vld [vmem:[%s2521_s0 + $0x30] sm:$0xff] }
  0x19   :  { %1430 = vmatpush1.bf16.msra.mxu1 %v1861_v56  ;;  %v100_v55 = vld [vmem:[%s2521_s0 + $0xa0] sm:$0xff]  ;;  %v91_v58 = vld [vmem:[%s2521_s0 + $0x58] sm:$0xff]  ;;  %v105_v59 = vld [vmem:[%s2521_s0 + $0xc8] sm:$0x3] }
  0x1a   :  { %1404 = vmatpush3.bf16.msra.mxu0 %v1863_v57  ;;  %1431 = vmatprep.subr.bf16.mxu1 %v1655_v0  ;;  %v90_v61 = vld [vmem:[%s2521_s0 + $0x50] sm:$0xff]  ;;  %v104_v62 = vld [vmem:[%s2521_s0 + $0xc0] sm:$0x3]  ;;  %v95_v63 = vld [vmem:[%s2521_s0 + $0x78] sm:$0xff] }
  0x1b   :  { %1406 = vmatprep.subr.bf16.mxu0 %v1873_v60  ;;  %v335_v1 = vld [vmem:[%s2522_s1 + $0x8] sm:$0xff]  ;;  %v94_v2 = vld [vmem:[%s2521_s0 + $0x70] sm:$0xff]  ;;  %v99_v6 = vld [vmem:[%s2521_s0 + $0x98] sm:$0xff] }
  0x1c   :  { %v334_v10 = vld [vmem:[%s2522_s1] sm:$0xff]  ;;  %v339_v11 = vld [vmem:[%s2522_s1 + $0x28] sm:$0xff]  ;;  %v98_v12 = vld [vmem:[%s2521_s0 + $0x90] sm:$0xff] }
  0x1d   :  { %1433 = vmatpush1.bf16.msra.mxu1 %v1893_v3  ;;  %v103_v16 = vld [vmem:[%s2521_s0 + $0xb8] sm:$0xff]  ;;  %v338_v19 = vld [vmem:[%s2522_s1 + $0x20] sm:$0xff]  ;;  %v102_v23 = vld [vmem:[%s2521_s0 + $0xb0] sm:$0xff] }
  0x1e   :  { %1408 = vmatpush3.bf16.msra.mxu0 %v1895_v5  ;;  %1434 = vmatprep.subr.bf16.mxu1 %v1655_v0  ;;  %v107_v24 = vld [vmem:[%s2521_s0 + $0xd8] sm:$0x3]  ;;  %v106_v30 = vld [vmem:[%s2521_s0 + $0xd0] sm:$0x3]  ;;  %v350_v36 = vld [vmem:[%s2522_s1 + $0x80] sm:$0xff] }
  0x1f   :  { %1410 = vmatprep.subr.bf16.mxu0 %v1902_v7  ;;  %v337_v32 = vld [vmem:[%s2522_s1 + $0x18] sm:$0xff]  ;;  %v355_v39 = vld [vmem:[%s2522_s1 + $0xa8] sm:$0xff] }
  0x21   :  { %1436 = vmatpush1.bf16.msra.mxu1 %v1915_v14 }
  0x22   :  { %1412 = vmatpush3.bf16.msra.mxu0 %v1917_v15  ;;  %1437 = vmatprep.subr.bf16.mxu1 %v1655_v0 }
  0x23   :  { %1450 = vmatprep.subr.bf16.mxu0 %v1702_v4 }
  0x25   :  { %199 = vmatmul.mubr.f32.vlgmr.msra.gmra.mrb[0].mxu0 %v80_v20  ;;  %1439 = vmatpush1.bf16.msra.mxu1 %v1932_v21  ;;  %v343_v20 = vld [vmem:[%s2522_s1 + $0x48] sm:$0xff] }
  0x26   :  { %1452 = vmatpush3.bf16.msra.mxu0 %v1715_v9  ;;  %1440 = vmatprep.subr.bf16.mxu1 %v1655_v0 }
  0x27   :  { %1454 = vmatprep.subr.bf16.mxu0 %v1727_v13  ;;  %203 = vmatprep.mubr.f32.mxu0 %v85_v25  ;;  %v342_v25 = vld [vmem:[%s2522_s1 + $0x40] sm:$0xff] }
  0x29   :  { %204 = vmatmul.mubr.f32.gmra.mrb[2].mxu0 %v84_v27  ;;  %1442 = vmatpush1.bf16.msra.mxu1 %v1947_v26  ;;  %v347_v27 = vld [vmem:[%s2522_s1 + $0x68] sm:$0xff] }
  0x2a   :  { %1456 = vmatpush3.bf16.msra.mxu0 %v1742_v18  ;;  %1443 = vmatprep.subr.bf16.mxu1 %v1655_v0 }
  0x2b   :  { %1458 = vmatprep.subr.bf16.mxu0 %v1755_v22  ;;  %208 = vmatprep.mubr.f32.mxu0 %v89_v33  ;;  %v346_v33 = vld [vmem:[%s2522_s1 + $0x60] sm:$0xff] }
  0x2d   :  { %209 = vmatmul.mubr.f32.gmra.mrb[4].mxu0 %v88_v35  ;;  %1445 = vmatpush1.bf16.msra.mxu1 %v1965_v34  ;;  %v351_v35 = vld [vmem:[%s2522_s1 + $0x88] sm:$0xff] }
  0x2e   :  { %1460 = vmatpush3.bf16.msra.mxu0 %v1776_v29  ;;  %1446 = vmatprep.subr.bf16.mxu1 %v1655_v0 }
  0x2f   :  { %1462 = vmatprep.subr.bf16.mxu0 %v1783_v31  ;;  %213 = vmatprep.mubr.f32.mxu0 %v93_v41  ;;  %v354_v41 = vld [vmem:[%s2522_s1 + $0xa0] sm:$0xff] }
  0x31   :  { %214 = vmatmul.mubr.f32.gmra.mrb[6].mxu0 %v92_v43  ;;  %1448 = vmatpush1.bf16.msra.mxu1 %v1983_v42  ;;  %v359_v43 = vld [vmem:[%s2522_s1 + $0xc8] sm:$0x3] }
  0x32   :  { %1464 = vmatpush3.bf16.msra.mxu0 %v1804_v38  ;;  %282 = vmatprep.subr.mxu1 %v1656_v48 }
  0x33   :  { %1466 = vmatprep.subr.bf16.mxu0 %v1811_v40  ;;  %218 = vmatprep.mubr.f32.mxu0 %v97_v44  ;;  %v358_v44 = vld [vmem:[%s2522_s1 + $0xc0] sm:$0x3] }
  0x35   :  { %219 = vmatmul.mubr.f32.gmra.mrb[8].mxu0 %v96_v45  ;;  %1136 = vmatpush1.msk.msra.mxu1 %vm130_vm1, %v2002_v49  ;;  %v591_v45 = vld [vmem:[%s2523_s2 + $0x8] sm:$0xff] }
  0x36   :  { %1468 = vmatpush3.bf16.msra.mxu0 %v1832_v47  ;;  %299 = vmatmul.mubr.f32.vlgmr.msra.gmra.mrb[0].mxu1 %v82_v51  ;;  %v590_v51 = vld [vmem:[%s2523_s2] sm:$0xff] }
  0x37   :  { %1481 = vmatprep.subr.bf16.mxu1 %v1655_v0  ;;  %1138 = vmatprep.mubr.msk.f32.mxu1 %vm108_vm0, %v87_v52  ;;  %v595_v52 = vld [vmem:[%s2523_s2 + $0x28] sm:$0xff] }
  0x38   :  { %1483 = vmatpush1.bf16.msra.mxu1 %v1713_v8  ;;  %1470 = vmatprep.subr.bf16.mxu0 %v1842_v50 }
  0x39   :  { %1484 = vmatprep.subr.bf16.mxu1 %v1655_v0  ;;  %223 = vmatprep.mubr.f32.mxu0 %v101_v53  ;;  %v336_v53 = vld [vmem:[%s2522_s1 + $0x10] sm:$0xff] }
  0x3a   :  { %1472 = vmatpush3.bf16.msra.mxu0 %v1863_v57  ;;  %304 = vmatmul.mubr.f32.gmra.mrb[2].mxu1 %v86_v54  ;;  %v594_v54 = vld [vmem:[%s2523_s2 + $0x20] sm:$0xff] }
  0x3b   :  { %224 = vmatmul.mubr.f32.gmra.mrb[10].mxu0 %v100_v55  ;;  %1139 = vmatprep.mubr.msk.f32.mxu1 %vm108_vm0, %v91_v58  ;;  %v341_v55 = vld [vmem:[%s2522_s1 + $0x38] sm:$0xff]  ;;  %v599_v58 = vld [vmem:[%s2523_s2 + $0x48] sm:$0xff] }
  0x3c   :  { %1486 = vmatpush1.bf16.msra.mxu1 %v1740_v17  ;;  %1474 = vmatprep.subr.bf16.mxu0 %v1873_v60 }
  0x3d   :  { %1487 = vmatprep.subr.bf16.mxu1 %v1655_v0  ;;  %228 = vmatprep.mubr.f32.mxu0 %v105_v59  ;;  %v340_v59 = vld [vmem:[%s2522_s1 + $0x30] sm:$0xff] }
  0x3e   :  { %1476 = vmatpush3.bf16.msra.mxu0 %v1895_v5  ;;  %309 = vmatmul.mubr.f32.gmra.mrb[4].mxu1 %v90_v61  ;;  %v598_v61 = vld [vmem:[%s2523_s2 + $0x40] sm:$0xff] }
  0x3f   :  { %229 = vmatmul.mubr.f32.gmra.mrb[12].mxu0 %v104_v62  ;;  %1140 = vmatprep.mubr.msk.f32.mxu1 %vm108_vm0, %v95_v63  ;;  %v345_v62 = vld [vmem:[%s2522_s1 + $0x58] sm:$0xff]  ;;  %v603_v63 = vld [vmem:[%s2523_s2 + $0x68] sm:$0xff] }
  0x40   :  { %1489 = vmatpush1.bf16.msra.mxu1 %v1774_v28  ;;  %1478 = vmatprep.subr.bf16.mxu0 %v1902_v7 }
  0x41   :  { %1490 = vmatprep.subr.bf16.mxu1 %v1655_v0  ;;  %447 = vmatprep.mubr.f32.mxu0 %v335_v1  ;;  %v344_v1 = vld [vmem:[%s2522_s1 + $0x50] sm:$0xff] }
  0x42   :  { %1480 = vmatpush3.bf16.msra.mxu0 %v1917_v15  ;;  %314 = vmatmul.mubr.f32.gmra.mrb[6].mxu1 %v94_v2  ;;  %v602_v2 = vld [vmem:[%s2523_s2 + $0x60] sm:$0xff] }
  0x43   :  { %1518 = vmatprep.subr.bf16.mxu0 %v1702_v4  ;;  %1141 = vmatprep.mubr.msk.f32.mxu1 %vm108_vm0, %v99_v6  ;;  %v349_v6 = vld [vmem:[%s2522_s1 + $0x78] sm:$0xff] }
  0x44   :  { %1492 = vmatpush1.bf16.msra.mxu1 %v1802_v37 }
  0x45   :  { %448 = vmatmul.mubr.f32.vlgmr.msra.gmra.mrb[14].mxu0 %v334_v10  ;;  %1493 = vmatprep.subr.bf16.mxu1 %v1655_v0  ;;  %v607_v10 = vld [vmem:[%s2523_s2 + $0x88] sm:$0xff] }
  0x46   :  { %1520 = vmatpush3.bf16.msra.mxu0 %v1715_v9  ;;  %452 = vmatprep.mubr.f32.mxu0 %v339_v11  ;;  %v348_v11 = vld [vmem:[%s2522_s1 + $0x70] sm:$0xff] }
  0x47   :  { %319 = vmatmul.mubr.f32.gmra.mrb[8].mxu1 %v98_v12  ;;  %1522 = vmatprep.subr.bf16.mxu0 %v1727_v13  ;;  %v606_v12 = vld [vmem:[%s2523_s2 + $0x80] sm:$0xff] }
  0x48   :  { %1495 = vmatpush1.bf16.msra.mxu1 %v1830_v46  ;;  %1142 = vmatprep.mubr.msk.f32.mxu1 %vm108_vm0, %v103_v16  ;;  %v611_v16 = vld [vmem:[%s2523_s2 + $0xa8] sm:$0xff] }
  0x49   :  { %1496 = vmatprep.subr.bf16.mxu1 %v1655_v0  ;;  %453 = vmatmul.mubr.f32.gmra.mrb[16].mxu0 %v338_v19  ;;  %v352_v19 = vld [vmem:[%s2522_s1 + $0x90] sm:$0xff] }
  0x4a   :  { %1524 = vmatpush3.bf16.msra.mxu0 %v1742_v18  ;;  %457 = vmatprep.mubr.f32.mxu0 %v343_v20  ;;  %v610_v20 = vld [vmem:[%s2523_s2 + $0xa0] sm:$0xff] }
  0x4b   :  { %324 = vmatmul.mubr.f32.gmra.mrb[10].mxu1 %v102_v23  ;;  %1526 = vmatprep.subr.bf16.mxu0 %v1755_v22  ;;  %v357_v23 = vld [vmem:[%s2522_s1 + $0xb8] sm:$0xff] }
  0x4c   :  { %1498 = vmatpush1.bf16.msra.mxu1 %v1861_v56  ;;  %1143 = vmatprep.mubr.msk.f32.mxu1 %vm108_vm0, %v107_v24  ;;  %v615_v24 = vld [vmem:[%s2523_s2 + $0xc8] sm:$0x3] }
  0x4d   :  { %1499 = vmatprep.subr.bf16.mxu1 %v1655_v0  ;;  %458 = vmatmul.mubr.f32.gmra.mrb[18].mxu0 %v342_v25  ;;  %v356_v25 = vld [vmem:[%s2522_s1 + $0xb0] sm:$0xff] }
  0x4e   :  { %1528 = vmatpush3.bf16.msra.mxu0 %v1776_v29  ;;  %462 = vmatprep.mubr.f32.mxu0 %v347_v27  ;;  %v361_v27 = vld [vmem:[%s2522_s1 + $0xd8] sm:$0x3] }
  0x4f   :  { %329 = vmatmul.mubr.f32.gmra.mrb[12].mxu1 %v106_v30  ;;  %1530 = vmatprep.subr.bf16.mxu0 %v1783_v31  ;;  %v593_v30 = vld [vmem:[%s2523_s2 + $0x18] sm:$0xff] }
  0x50   :  { %1501 = vmatpush1.bf16.msra.mxu1 %v1893_v3  ;;  %1145 = vmatprep.mubr.msk.f32.mxu1 %vm108_vm0, %v337_v32  ;;  %v360_v32 = vld [vmem:[%s2522_s1 + $0xd0] sm:$0x3] }
  0x51   :  { %1502 = vmatprep.subr.bf16.mxu1 %v1655_v0  ;;  %463 = vmatmul.mubr.f32.gmra.mrb[20].mxu0 %v346_v33  ;;  %v873_v33 = vld [vmem:[%s2524_s3 + $0xd8] sm:$0x3] }
  0x52   :  { %1532 = vmatpush3.bf16.msra.mxu0 %v1804_v38  ;;  %467 = vmatprep.mubr.f32.mxu0 %v351_v35  ;;  %v855_v35 = vld [vmem:[%s2524_s3 + $0x48] sm:$0xff] }
  0x53   :  { %1534 = vmatprep.subr.bf16.mxu0 %v1811_v40 }
  0x54   :  { %1504 = vmatpush1.bf16.msra.mxu1 %v1915_v14 }
  0x55   :  { %1505 = vmatprep.subr.bf16.mxu1 %v1655_v0  ;;  %468 = vmatmul.mubr.f32.gmra.mrb[22].mxu0 %v350_v36  ;;  %v872_v36 = vld [vmem:[%s2524_s3 + $0xd0] sm:$0x3] }
  0x56   :  { %1536 = vmatpush3.bf16.msra.mxu0 %v1832_v47  ;;  %472 = vmatprep.mubr.f32.mxu0 %v355_v39  ;;  %v854_v39 = vld [vmem:[%s2524_s3 + $0x40] sm:$0xff] }
  0x57   :  { %1538 = vmatprep.subr.bf16.mxu0 %v1842_v50 }
  0x58   :  { %1507 = vmatpush1.bf16.msra.mxu1 %v1932_v21 }
  0x59   :  { %1508 = vmatprep.subr.bf16.mxu1 %v1655_v0  ;;  %473 = vmatmul.mubr.f32.gmra.mrb[24].mxu0 %v354_v41  ;;  %v859_v41 = vld [vmem:[%s2524_s3 + $0x68] sm:$0xff] }
  0x5a   :  { %1540 = vmatpush3.bf16.msra.mxu0 %v1863_v57  ;;  %477 = vmatprep.mubr.f32.mxu0 %v359_v43  ;;  %v858_v43 = vld [vmem:[%s2524_s3 + $0x60] sm:$0xff] }
  0x5b   :  { %1542 = vmatprep.subr.bf16.mxu0 %v1873_v60 }
  0x5c   :  { %1510 = vmatpush1.bf16.msra.mxu1 %v1947_v26 }
  0x5d   :  { %1511 = vmatprep.subr.bf16.mxu1 %v1655_v0  ;;  %478 = vmatmul.mubr.f32.gmra.mrb[26].mxu0 %v358_v44  ;;  %v863_v44 = vld [vmem:[%s2524_s3 + $0x88] sm:$0xff] }
  0x5e   :  { %1544 = vmatpush3.bf16.msra.mxu0 %v1895_v5  ;;  %703 = vmatprep.mubr.f32.mxu0 %v591_v45  ;;  %v862_v45 = vld [vmem:[%s2524_s3 + $0x80] sm:$0xff] }
  0x5f   :  { %1546 = vmatprep.subr.bf16.mxu0 %v1902_v7 }
  0x60   :  { %1513 = vmatpush1.bf16.msra.mxu1 %v1965_v34 }
  0x61   :  { %1514 = vmatprep.subr.bf16.mxu1 %v1655_v0 }
  0x62   :  { %1548 = vmatpush3.bf16.msra.mxu0 %v1917_v15 }
  0x63   :  { %1549 = vmatprep.subr.bf16.mxu0 %v1655_v0 }
  0x64   :  { %1516 = vmatpush1.bf16.msra.mxu1 %v1983_v42 }
  0x65   :  { %704 = vmatmul.mubr.f32.vlgmr.msra.gmra.mrb[28].mxu0 %v590_v51  ;;  %531 = vmatprep.subr.mxu1 %v1656_v48  ;;  %v867_v51 = vld [vmem:[%s2524_s3 + $0xa8] sm:$0xff] }
  0x66   :  { %1551 = vmatpush1.bf16.msra.mxu0 %v1713_v8  ;;  %708 = vmatprep.mubr.f32.mxu0 %v595_v52  ;;  %v866_v52 = vld [vmem:[%s2524_s3 + $0xa0] sm:$0xff] }
  0x67   :  { %1552 = vmatprep.subr.bf16.mxu0 %v1655_v0 }
  0x68   :  { %1144 = vmatpush1.msk.msra.mxu1 %vm130_vm1, %v2002_v49 }
  0x69   :  { %548 = vmatmul.mubr.f32.vlgmr.msra.gmra.mrb[14].mxu1 %v336_v53  ;;  %709 = vmatmul.mubr.f32.gmra.mrb[30].mxu0 %v594_v54  ;;  %v871_v53 = vld [vmem:[%s2524_s3 + $0xc8] sm:$0x3]  ;;  %v870_v54 = vld [vmem:[%s2524_s3 + $0xc0] sm:$0x3] }
  0x6a   :  { %1554 = vmatpush1.bf16.msra.mxu0 %v1740_v17  ;;  %1146 = vmatprep.mubr.msk.f32.mxu1 %vm108_vm0, %v341_v55 }
  0x6b   :  { %1555 = vmatprep.subr.bf16.mxu0 %v1655_v0  ;;  %713 = vmatprep.mubr.f32.mxu0 %v599_v58 }
  0x6c   :  { %1617 = vmatprep.subr.bf16.mxu1 %v1655_v0 }
  0x6d   :  { %553 = vmatmul.mubr.f32.gmra.mrb[16].mxu1 %v340_v59  ;;  %714 = vmatmul.mubr.f32.gmra.mrb[32].mxu0 %v598_v61 }
  0x6e   :  { %1557 = vmatpush1.bf16.msra.mxu0 %v1774_v28  ;;  %1147 = vmatprep.mubr.msk.f32.mxu1 %vm108_vm0, %v345_v62 }
  0x6f   :  { %1558 = vmatprep.subr.bf16.mxu0 %v1655_v0  ;;  %718 = vmatprep.mubr.f32.mxu0 %v603_v63 }
  0x70   :  { %1619 = vmatpush1.bf16.msra.mxu1 %v1713_v8  ;;  %v353_v8 = vld [vmem:[%s2522_s1 + $0x98] sm:$0xff] }
  0x71   :  { %558 = vmatmul.mubr.f32.gmra.mrb[18].mxu1 %v344_v1  ;;  %719 = vmatmul.mubr.f32.gmra.mrb[34].mxu0 %v602_v2 }
  0x72   :  { %1560 = vmatpush1.bf16.msra.mxu0 %v1802_v37  ;;  %1148 = vmatprep.mubr.msk.f32.mxu1 %vm108_vm0, %v349_v6 }
  0x73   :  { %1561 = vmatprep.subr.bf16.mxu0 %v1655_v0  ;;  %723 = vmatprep.mubr.f32.mxu0 %v607_v10 }
  0x74   :  { %1620 = vmatprep.subr.bf16.mxu1 %v1655_v0 }
  0x75   :  { %563 = vmatmul.mubr.f32.gmra.mrb[20].mxu1 %v348_v11  ;;  %724 = vmatmul.mubr.f32.gmra.mrb[36].mxu0 %v606_v12 }
  0x76   :  { %1563 = vmatpush1.bf16.msra.mxu0 %v1830_v46  ;;  %1149 = vmatprep.mubr.msk.f32.mxu1 %vm108_vm0, %v353_v8 }
  0x77   :  { %1564 = vmatprep.subr.bf16.mxu0 %v1655_v0  ;;  %1622 = vmatpush1.bf16.msra.mxu1 %v1740_v17  ;;  %v614_v17 = vld [vmem:[%s2523_s2 + $0xc0] sm:$0x3] }
  0x78   :  { %728 = vmatprep.mubr.f32.mxu0 %v611_v16  ;;  %1623 = vmatprep.subr.bf16.mxu1 %v1655_v0 }
  0x79   :  { %568 = vmatmul.mubr.f32.gmra.mrb[22].mxu1 %v352_v19  ;;  %729 = vmatmul.mubr.f32.gmra.mrb[38].mxu0 %v610_v20 }
  0x7a   :  { %1566 = vmatpush1.bf16.msra.mxu0 %v1861_v56  ;;  %1150 = vmatprep.mubr.msk.f32.mxu1 %vm108_vm0, %v357_v23 }
  0x7b   :  { %1567 = vmatprep.subr.bf16.mxu0 %v1655_v0  ;;  %1625 = vmatpush1.bf16.msra.mxu1 %v1774_v28  ;;  %v849_v28 = vld [vmem:[%s2524_s3 + $0x18] sm:$0xff] }
  0x7c   :  { %733 = vmatprep.mubr.f32.mxu0 %v615_v24  ;;  %1626 = vmatprep.subr.bf16.mxu1 %v1655_v0 }
  0x7d   :  { %573 = vmatmul.mubr.f32.gmra.mrb[24].mxu1 %v356_v25  ;;  %734 = vmatmul.mubr.f32.gmra.mrb[40].mxu0 %v614_v17 }
  0x7e   :  { %1569 = vmatpush1.bf16.msra.mxu0 %v1893_v3  ;;  %1151 = vmatprep.mubr.msk.f32.mxu1 %vm108_vm0, %v361_v27 }
  0x7f   :  { %1570 = vmatprep.subr.bf16.mxu0 %v1655_v0  ;;  %1628 = vmatpush1.bf16.msra.mxu1 %v1802_v37  ;;  %v592_v37 = vld [vmem:[%s2523_s2 + $0x10] sm:$0xff] }
  0x80   :  { %1153 = vmatprep.mubr.msk.f32.mxu0 %vm108_vm0, %v593_v30  ;;  %1629 = vmatprep.subr.bf16.mxu1 %v1655_v0 }
  0x81   :  { %578 = vmatmul.mubr.f32.gmra.mrb[26].mxu1 %v360_v32 }
  0x82   :  { %1572 = vmatpush1.bf16.msra.mxu0 %v1915_v14  ;;  %1161 = vmatprep.mubr.msk.f32.mxu1 %vm108_vm0, %v849_v28 }
  0x83   :  { %1573 = vmatprep.subr.bf16.mxu0 %v1655_v0  ;;  %1631 = vmatpush1.bf16.msra.mxu1 %v1830_v46  ;;  %v597_v46 = vld [vmem:[%s2523_s2 + $0x38] sm:$0xff] }
  0x84   :  { %1632 = vmatprep.subr.bf16.mxu1 %v1655_v0 }
  0x86   :  { %1575 = vmatpush1.bf16.msra.mxu0 %v1932_v21 }
  0x87   :  { %1576 = vmatprep.subr.bf16.mxu0 %v1655_v0  ;;  %1634 = vmatpush1.bf16.msra.mxu1 %v1861_v56  ;;  %v596_v56 = vld [vmem:[%s2523_s2 + $0x30] sm:$0xff] }
  0x88   :  { %1635 = vmatprep.subr.bf16.mxu1 %v1655_v0 }
  0x8a   :  { %1578 = vmatpush1.bf16.msra.mxu0 %v1947_v26 }
  0x8b   :  { %1579 = vmatprep.subr.bf16.mxu0 %v1655_v0  ;;  %1637 = vmatpush1.bf16.msra.mxu1 %v1893_v3  ;;  %v601_v3 = vld [vmem:[%s2523_s2 + $0x58] sm:$0xff] }
  0x8c   :  { %1638 = vmatprep.subr.bf16.mxu1 %v1655_v0 }
  0x8e   :  { %1581 = vmatpush1.bf16.msra.mxu0 %v1965_v34 }
  0x8f   :  { %1582 = vmatprep.subr.bf16.mxu0 %v1655_v0  ;;  %1640 = vmatpush1.bf16.msra.mxu1 %v1915_v14  ;;  %v857_v14 = vld [vmem:[%s2524_s3 + $0x58] sm:$0xff] }
  0x90   :  { %1641 = vmatprep.subr.bf16.mxu1 %v1655_v0 }
  0x92   :  { %1584 = vmatpush1.bf16.msra.mxu0 %v1983_v42 }
  0x93   :  { %787 = vmatprep.subr.mxu0 %v1656_v48  ;;  %1643 = vmatpush1.bf16.msra.mxu1 %v1932_v21  ;;  %v617_v21 = vld [vmem:[%s2523_s2 + $0xd8] sm:$0x3] }
  0x94   :  { %1644 = vmatprep.subr.bf16.mxu1 %v1655_v0 }
  0x96   :  { %1152 = vmatpush1.msk.msra.mxu0 %vm130_vm1, %v2002_v49 }
  0x97   :  { %804 = vmatmul.mubr.f32.vlgmr.msra.gmra.mrb[42].mxu0 %v592_v37  ;;  %1586 = vmatprep.subr.bf16.mxu0 %v1702_v4  ;;  %v600_v4 = vld [vmem:[%s2523_s2 + $0x50] sm:$0xff] }
  0x98   :  { %1588 = vmatpush3.bf16.msra.mxu0 %v1715_v9  ;;  %1154 = vmatprep.mubr.msk.f32.mxu0 %vm108_vm0, %v597_v46  ;;  %v605_v9 = vld [vmem:[%s2523_s2 + $0x78] sm:$0xff] }
  0x99   :  { %1590 = vmatprep.subr.bf16.mxu0 %v1727_v13  ;;  %1646 = vmatpush1.bf16.msra.mxu1 %v1947_v26  ;;  %v604_v13 = vld [vmem:[%s2523_s2 + $0x70] sm:$0xff]  ;;  %v861_v26 = vld [vmem:[%s2524_s3 + $0x78] sm:$0xff] }
  0x9a   :  { %1647 = vmatprep.subr.bf16.mxu1 %v1655_v0 }
  0x9b   :  { %809 = vmatmul.mubr.f32.gmra.mrb[44].mxu0 %v596_v56 }
  0x9c   :  { %1592 = vmatpush3.bf16.msra.mxu0 %v1742_v18  ;;  %1155 = vmatprep.mubr.msk.f32.mxu0 %vm108_vm0, %v601_v3  ;;  %v609_v18 = vld [vmem:[%s2523_s2 + $0x98] sm:$0xff] }
  0x9d   :  { %1594 = vmatprep.subr.bf16.mxu0 %v1755_v22  ;;  %1649 = vmatpush1.bf16.msra.mxu1 %v1965_v34  ;;  %v608_v22 = vld [vmem:[%s2523_s2 + $0x90] sm:$0xff]  ;;  %v847_v34 = vld [vmem:[%s2524_s3 + $0x8] sm:$0xff] }
  0x9e   :  { %1650 = vmatprep.subr.bf16.mxu1 %v1655_v0  ;;  %v848_v0 = vld [vmem:[%s2524_s3 + $0x10] sm:$0xff] }
  0x9f   :  { %814 = vmatmul.mubr.f32.gmra.mrb[46].mxu0 %v600_v4 }
  0xa0   :  { %1596 = vmatpush3.bf16.msra.mxu0 %v1776_v29  ;;  %1156 = vmatprep.mubr.msk.f32.mxu0 %vm108_vm0, %v605_v9  ;;  %v853_v29 = vld [vmem:[%s2524_s3 + $0x38] sm:$0xff] }
  0xa1   :  { %1598 = vmatprep.subr.bf16.mxu0 %v1783_v31  ;;  %1652 = vmatpush1.bf16.msra.mxu1 %v1983_v42  ;;  %v613_v31 = vld [vmem:[%s2523_s2 + $0xb8] sm:$0xff] }
  0xa2   :  { %1043 = vmatprep.subr.mxu1 %v1656_v48  ;;  %v865_v42 = vld [vmem:[%s2524_s3 + $0x98] sm:$0xff] }
  0xa3   :  { %819 = vmatmul.mubr.f32.gmra.mrb[48].mxu0 %v604_v13  ;;  %v869_v48 = vld [vmem:[%s2524_s3 + $0xb8] sm:$0xff] }
  0xa4   :  { %1600 = vmatpush3.bf16.msra.mxu0 %v1804_v38  ;;  %1157 = vmatprep.mubr.msk.f32.mxu0 %vm108_vm0, %v609_v18  ;;  %v852_v38 = vld [vmem:[%s2524_s3 + $0x30] sm:$0xff] }
  0xa5   :  { %1602 = vmatprep.subr.bf16.mxu0 %v1811_v40  ;;  %1160 = vmatpush1.msk.msra.mxu1 %vm130_vm1, %v2002_v49  ;;  %v612_v40 = vld [vmem:[%s2523_s2 + $0xb0] sm:$0xff]  ;;  %v850_v49 = vld [vmem:[%s2524_s3 + $0x20] sm:$0xff] }
  0xa6   :  { %1060 = vmatmul.mubr.f32.vlgmr.msra.gmra.mrb[28].mxu1 %v848_v0 }
  0xa7   :  { %824 = vmatmul.mubr.f32.gmra.mrb[50].mxu0 %v608_v22  ;;  %1162 = vmatprep.mubr.msk.f32.mxu1 %vm108_vm0, %v853_v29 }
  0xa8   :  { %1604 = vmatpush3.bf16.msra.mxu0 %v1832_v47  ;;  %1158 = vmatprep.mubr.msk.f32.mxu0 %vm108_vm0, %v613_v31  ;;  %v856_v47 = vld [vmem:[%s2524_s3 + $0x50] sm:$0xff] }
  0xa9   :  { %1606 = vmatprep.subr.bf16.mxu0 %v1842_v50  ;;  %v616_v50 = vld [vmem:[%s2523_s2 + $0xd0] sm:$0x3] }
  0xaa   :  { %1065 = vmatmul.mubr.f32.gmra.mrb[30].mxu1 %v852_v38 }
  0xab   :  { %829 = vmatmul.mubr.f32.gmra.mrb[52].mxu0 %v612_v40  ;;  %1163 = vmatprep.mubr.msk.f32.mxu1 %vm108_vm0, %v857_v14 }
  0xac   :  { %1608 = vmatpush3.bf16.msra.mxu0 %v1863_v57  ;;  %1159 = vmatprep.mubr.msk.f32.mxu0 %vm108_vm0, %v617_v21  ;;  %v860_v57 = vld [vmem:[%s2524_s3 + $0x70] sm:$0xff] }
  0xad   :  { %1610 = vmatprep.subr.bf16.mxu0 %v1873_v60  ;;  %v864_v60 = vld [vmem:[%s2524_s3 + $0x90] sm:$0xff] }
  0xae   :  { %1070 = vmatmul.mubr.f32.gmra.mrb[32].mxu1 %v856_v47 }
  0xaf   :  { %834 = vmatmul.mubr.f32.gmra.mrb[54].mxu0 %v616_v50  ;;  %1164 = vmatprep.mubr.msk.f32.mxu1 %vm108_vm0, %v861_v26 }
  0xb0   :  { %1612 = vmatpush3.bf16.msra.mxu0 %v1895_v5  ;;  %959 = vmatprep.mubr.f32.mxu0 %v847_v34  ;;  %v846_v5 = vld [vmem:[%s2524_s3] sm:$0xff] }
  0xb1   :  { %1614 = vmatprep.subr.bf16.mxu0 %v1902_v7  ;;  %v851_v7 = vld [vmem:[%s2524_s3 + $0x28] sm:$0xff] }
  0xb2   :  { %1075 = vmatmul.mubr.f32.gmra.mrb[34].mxu1 %v860_v57 }
  0xb3   :  { %1165 = vmatprep.mubr.msk.f32.mxu1 %vm108_vm0, %v865_v42 }
  0xb4   :  { %1616 = vmatpush3.bf16.msra.mxu0 %v1917_v15  ;;  %v868_v15 = vld [vmem:[%s2524_s3 + $0xb0] sm:$0xff] }
  0xb6   :  { %1080 = vmatmul.mubr.f32.gmra.mrb[36].mxu1 %v864_v60 }
  0xb7   :  { %960 = vmatmul.mubr.f32.vlgmr.msra.gmra.mrb[56].mxu0 %v846_v5  ;;  %1166 = vmatprep.mubr.msk.f32.mxu1 %vm108_vm0, %v869_v48 }
  0xb8   :  { %964 = vmatprep.mubr.f32.mxu0 %v851_v7 }
  0xba   :  { %1085 = vmatmul.mubr.f32.gmra.mrb[38].mxu1 %v868_v15 }
  0xbb   :  { %965 = vmatmul.mubr.f32.gmra.mrb[58].mxu0 %v850_v49  ;;  %1167 = vmatprep.mubr.msk.f32.mxu1 %vm108_vm0, %v873_v33 }
  0xbc   :  { %969 = vmatprep.mubr.f32.mxu0 %v855_v35 }
  0xbe   :  { %1090 = vmatmul.mubr.f32.gmra.mrb[40].mxu1 %v872_v36 }
  0xbf   :  { %970 = vmatmul.mubr.f32.gmra.mrb[60].mxu0 %v854_v39 }
  0xc0   :  { %974 = vmatprep.mubr.f32.mxu0 %v859_v41 }
  0xc3   :  { %975 = vmatmul.mubr.f32.gmra.mrb[62].mxu0 %v858_v43 }
  0xc4   :  { %979 = vmatprep.mubr.f32.mxu0 %v863_v44 }
  0xc7   :  { %980 = vmatmul.mubr.f32.gmra.mrb[64].mxu0 %v862_v45 }
  0xc8   :  { %984 = vmatprep.mubr.f32.mxu0 %v867_v51 }
  0xcb   :  { %985 = vmatmul.mubr.f32.gmra.mrb[66].mxu0 %v866_v52 }
  0xcc   :  { %989 = vmatprep.mubr.f32.mxu0 %v871_v53 }
  0xcf   :  { %990 = vmatmul.mubr.f32.gmra.mrb[68].mxu0 %v870_v54 }
  0xf8   :  { %v1201_v55 = vpop.f32.mrb[0].mxu0 }
  0xf9   :  { %v1202_v58 = vpop.f32.mrb[1].mxu0 }
  0xfa   :  { %v1203_v59 = vadd.f32 %v1202_v58, %v1201_v55 }
  0xfc   :  { %v1204_v61 = vpop.f32.mrb[2].mxu0 }
  0xfd   :  { %v1205_v62 = vpop.f32.mrb[3].mxu0 }
  0xfe   :  { %v1206_v63 = vadd.f32 %v1205_v62, %v1204_v61 }
 0x100   :  { %v1207_v1 = vpop.f32.mrb[4].mxu0 }
 0x101   :  { %v1208_v2 = vpop.f32.mrb[5].mxu0 }
 0x102   :  { %v1209_v6 = vadd.f32 %v1208_v2, %v1207_v1 }
 0x104   :  { %v1210_v10 = vpop.f32.mrb[6].mxu0 }
 0x105   :  { %v1211_v11 = vpop.f32.mrb[7].mxu0 }
 0x106   :  { %v1212_v12 = vadd.f32 %v1211_v11, %v1210_v10 }
 0x108   :  { %v1213_v8 = vpop.f32.mrb[8].mxu0 }
 0x109   :  { %v1214_v16 = vpop.f32.mrb[9].mxu0  ;;  %v300_v19 = vpop.f32.mrb[0].mxu1 }
 0x10a   :  { %v1215_v20 = vadd.f32 %v1214_v16, %v1213_v8  ;;  %v2457_v23 = vadd.f32 %v1203_v59, %v300_v19  ;;  %v302_v24 = vpop.f32.mrb[1].mxu1 }
 0x10d   :  { %v305_v25 = vpop.f32.mrb[2].mxu1 }
 0x10e   :  { %v1216_v17 = vpop.f32.mrb[10].mxu0  ;;  %v2459_v27 = vadd.f32 %v1206_v63, %v305_v25  ;;  %v307_v30 = vpop.f32.mrb[3].mxu1 }
 0x10f   :  { %v1217_v32 = vpop.f32.mrb[11].mxu0 }
 0x110   :  { %v1218_v28 = vadd.f32 %v1217_v32, %v1216_v17 }
 0x111   :  { %v310_v37 = vpop.f32.mrb[4].mxu1 }
 0x112   :  { %v1219_v46 = vpop.f32.mrb[12].mxu0  ;;  %v2461_v56 = vadd.f32 %v1209_v6, %v310_v37  ;;  %v312_v3 = vpop.f32.mrb[5].mxu1 }
 0x113   :  { %v1220_v4 = vpop.f32.mrb[13].mxu0 }
 0x114   :  { %v1221_v9 = vadd.f32 %v1220_v4, %v1219_v46 }
 0x115   :  { %v315_v13 = vpop.f32.mrb[6].mxu1 }
 0x116   :  { %v2463_v18 = vadd.f32 %v1212_v12, %v315_v13  ;;  %v317_v0 = vpop.f32.mrb[7].mxu1 }
 0x118   :  { %v1254_v22 = vpop.f32.mrb[14].mxu0 }
 0x119   :  { %v1255_v29 = vpop.f32.mrb[15].mxu0 }
 0x11a   :  { %v320_v31 = vpop.f32.mrb[8].mxu1  ;;  %v1256_v38 = vadd.f32 %v1255_v29, %v1254_v22 }
 0x11b   :  { %v2465_v40 = vadd.f32 %v1215_v20, %v320_v31  ;;  %v322_v14 = vpop.f32.mrb[9].mxu1 }
 0x11c   :  { %v1257_v21 = vpop.f32.mrb[16].mxu0 }
 0x11d   :  { %v1258_v47 = vpop.f32.mrb[17].mxu0 }
 0x11e   :  { %v325_v50 = vpop.f32.mrb[10].mxu1  ;;  %v1259_v26 = vadd.f32 %v1258_v47, %v1257_v21 }
 0x11f   :  { %v2467_v34 = vadd.f32 %v1218_v28, %v325_v50  ;;  %v327_v57 = vpop.f32.mrb[11].mxu1 }
 0x120   :  { %v1260_v42 = vpop.f32.mrb[18].mxu0 }
 0x121   :  { %v1261_v60 = vpop.f32.mrb[19].mxu0 }
 0x122   :  { %v330_v5 = vpop.f32.mrb[12].mxu1  ;;  %v1262_v48 = vadd.f32 %v1261_v60, %v1260_v42 }
 0x123   :  { %v2469_v7 = vadd.f32 %v1221_v9, %v330_v5  ;;  %v332_v15 = vpop.f32.mrb[13].mxu1 }
 0x124   :  { %v1263_v49 = vpop.f32.mrb[20].mxu0 }
 0x125   :  { %v1264_v33 = vpop.f32.mrb[21].mxu0 }
 0x126   :  { %v1265_v35 = vadd.f32 %v1264_v33, %v1263_v49 }
 0x128   :  { %v1266_v36 = vpop.f32.mrb[22].mxu0 }
 0x129   :  { %v1267_v39 = vpop.f32.mrb[23].mxu0 }
 0x12a   :  { %v1268_v41 = vadd.f32 %v1267_v39, %v1266_v36 }
 0x12c   :  { %v1269_v43 = vpop.f32.mrb[24].mxu0 }
 0x12d   :  { %v1270_v44 = vpop.f32.mrb[25].mxu0 }
 0x12e   :  { %v1271_v45 = vadd.f32 %v1270_v44, %v1269_v43 }
 0x130   :  { %v1272_v51 = vpop.f32.mrb[26].mxu0 }
 0x131   :  { %v1273_v52 = vpop.f32.mrb[27].mxu0 }
 0x132   :  { %v1274_v53 = vadd.f32 %v1273_v52, %v1272_v51 }
 0x138   :  { %v1307_v54 = vpop.f32.mrb[28].mxu0 }
 0x139   :  { %v1308_v55 = vpop.f32.mrb[29].mxu0 }
 0x13a   :  { %v1309_v58 = vadd.f32 %v1308_v55, %v1307_v54 }
 0x13c   :  { %v549_v59 = vpop.f32.mrb[14].mxu1  ;;  %v1310_v61 = vpop.f32.mrb[30].mxu0 }
 0x13d   :  { %v550_v62 = vadd.f32 %v1256_v38, %v549_v59  ;;  %v551_v63 = vpop.f32.mrb[15].mxu1  ;;  %v1311_v1 = vpop.f32.mrb[31].mxu0 }
 0x13e   :  { %v1312_v2 = vadd.f32 %v1311_v1, %v1310_v61 }
 0x13f   :  { %v583_v6 = vmax.f32 %v2457_v23, %v550_v62 }
 0x140   :  { %v554_v10 = vpop.f32.mrb[16].mxu1  ;;  %v1313_v11 = vpop.f32.mrb[32].mxu0 }
 0x141   :  { %v555_v12 = vadd.f32 %v1259_v26, %v554_v10  ;;  %v556_v8 = vpop.f32.mrb[17].mxu1  ;;  %v1314_v16 = vpop.f32.mrb[33].mxu0 }
 0x142   :  { %v1315_v19 = vadd.f32 %v1314_v16, %v1313_v11 }
 0x143   :  { %v584_v20 = vmax.f32 %v2459_v27, %v555_v12 }
 0x144   :  { %v559_v24 = vpop.f32.mrb[18].mxu1  ;;  %v1316_v25 = vpop.f32.mrb[34].mxu0 }
 0x145   :  { %v560_v17 = vadd.f32 %v1262_v48, %v559_v24  ;;  %v561_v30 = vpop.f32.mrb[19].mxu1  ;;  %v1317_v32 = vpop.f32.mrb[35].mxu0 }
 0x146   :  { %v1318_v28 = vadd.f32 %v1317_v32, %v1316_v25 }
 0x147   :  { %v585_v37 = vmax.f32 %v2461_v56, %v560_v17 }
 0x148   :  { %v564_v46 = vpop.f32.mrb[20].mxu1  ;;  %v1319_v3 = vpop.f32.mrb[36].mxu0 }
 0x149   :  { %v565_v4 = vadd.f32 %v1265_v35, %v564_v46  ;;  %v566_v23 = vpop.f32.mrb[21].mxu1  ;;  %v1320_v9 = vpop.f32.mrb[37].mxu0 }
 0x14a   :  { %v1321_v13 = vadd.f32 %v1320_v9, %v1319_v3 }
 0x14b   :  { %v586_v0 = vmax.f32 %v2463_v18, %v565_v4 }
 0x14c   :  { %v569_v22 = vpop.f32.mrb[22].mxu1  ;;  %v1322_v29 = vpop.f32.mrb[38].mxu0 }
 0x14d   :  { %v570_v31 = vadd.f32 %v1268_v41, %v569_v22  ;;  %v571_v27 = vpop.f32.mrb[23].mxu1  ;;  %v1323_v38 = vpop.f32.mrb[39].mxu0 }
 0x14e   :  { %v1324_v14 = vadd.f32 %v1323_v38, %v1322_v29 }
 0x14f   :  { %v587_v21 = vmax.f32 %v2465_v40, %v570_v31 }
 0x150   :  { %v574_v47 = vpop.f32.mrb[24].mxu1  ;;  %v1325_v50 = vpop.f32.mrb[40].mxu0 }
 0x151   :  { %v575_v26 = vadd.f32 %v1271_v45, %v574_v47  ;;  %v576_v56 = vpop.f32.mrb[25].mxu1  ;;  %v1326_v57 = vpop.f32.mrb[41].mxu0 }
 0x152   :  { %v1327_v42 = vadd.f32 %v1326_v57, %v1325_v50 }
 0x153   :  { %v588_v60 = vmax.f32 %v2467_v34, %v575_v26 }
 0x154   :  { %v579_v5 = vpop.f32.mrb[26].mxu1 }
 0x155   :  { %v580_v48 = vadd.f32 %v1274_v53, %v579_v5  ;;  %v581_v15 = vpop.f32.mrb[27].mxu1 }
 0x157   :  { %v589_v18 = vmax.f32 %v2469_v7, %v580_v48 }
 0x16a   :  { %v805_v49 = vpop.f32.mrb[42].mxu0 }
 0x16b   :  { %v806_v33 = vadd.f32 %v1309_v58, %v805_v49  ;;  %v807_v35 = vpop.f32.mrb[43].mxu0 }
 0x16d   :  { %v839_v36 = vmax.f32 %v583_v6, %v806_v33 }
 0x16e   :  { %v810_v39 = vpop.f32.mrb[44].mxu0 }
 0x16f   :  { %v811_v41 = vadd.f32 %v1312_v2, %v810_v39  ;;  %v812_v40 = vpop.f32.mrb[45].mxu0 }
 0x171   :  { %v840_v43 = vmax.f32 %v584_v20, %v811_v41 }
 0x172   :  { %v815_v44 = vpop.f32.mrb[46].mxu0 }
 0x173   :  { %v816_v45 = vadd.f32 %v1315_v19, %v815_v44  ;;  %v817_v51 = vpop.f32.mrb[47].mxu0 }
 0x175   :  { %v841_v52 = vmax.f32 %v585_v37, %v816_v45 }
 0x176   :  { %v820_v54 = vpop.f32.mrb[48].mxu0 }
 0x177   :  { %v821_v55 = vadd.f32 %v1318_v28, %v820_v54  ;;  %v822_v34 = vpop.f32.mrb[49].mxu0 }
 0x179   :  { %v2478_v59 = vmax.f32 %v586_v0, %v821_v55  ;;  %v1061_v53 = vpop.f32.mrb[28].mxu1  ;;  %v1168_v0 = vld [vmem:[%s2525_s5] ss:$0 sm:$0xff] }
 0x17a   :  { %v825_v61 = vpop.f32.mrb[50].mxu0  ;;  %v1063_v7 = vpop.f32.mrb[29].mxu1 }
 0x17b   :  { %v826_v62 = vadd.f32 %v1321_v13, %v825_v61  ;;  %v827_v58 = vpop.f32.mrb[51].mxu0 }
 0x17d   :  { %v2480_v63 = vmax.f32 %v587_v21, %v826_v62  ;;  %v1066_v1 = vpop.f32.mrb[30].mxu1 }
 0x17e   :  { %v830_v2 = vpop.f32.mrb[52].mxu0  ;;  %v1068_v6 = vpop.f32.mrb[31].mxu1 }
 0x17f   :  { %v831_v10 = vadd.f32 %v1324_v14, %v830_v2  ;;  %v832_v11 = vpop.f32.mrb[53].mxu0 }
 0x181   :  { %v2482_v12 = vmax.f32 %v588_v60, %v831_v10  ;;  %v1071_v8 = vpop.f32.mrb[32].mxu1 }
 0x182   :  { %v835_v16 = vpop.f32.mrb[54].mxu0  ;;  %v1073_v19 = vpop.f32.mrb[33].mxu1 }
 0x183   :  { %v836_v20 = vadd.f32 %v1327_v42, %v835_v16  ;;  %v837_v24 = vpop.f32.mrb[55].mxu0 }
 0x185   :  { %v2484_v25 = vmax.f32 %v589_v18, %v836_v20  ;;  %v1076_v17 = vpop.f32.mrb[34].mxu1 }
 0x186   :  { %v1078_v30 = vpop.f32.mrb[35].mxu1 }
 0x189   :  { %v1081_v32 = vpop.f32.mrb[36].mxu1 }
 0x18a   :  { %v1360_v28 = vpop.f32.mrb[56].mxu0  ;;  %v1083_v37 = vpop.f32.mrb[37].mxu1 }
 0x18b   :  { %v1361_v46 = vpop.f32.mrb[57].mxu0 }
 0x18c   :  { %v1362_v3 = vadd.f32 %v1361_v46, %v1360_v28 }
 0x18d   :  { %v1086_v4 = vpop.f32.mrb[38].mxu1 }
 0x18e   :  { %v1062_v23 = vadd.f32 %v1362_v3, %v1061_v53  ;;  %v1363_v9 = vpop.f32.mrb[58].mxu0  ;;  %v1088_v13 = vpop.f32.mrb[39].mxu1 }
 0x18f   :  { %v1364_v22 = vpop.f32.mrb[59].mxu0 }
 0x190   :  { %v1095_v29 = vmax.f32 %v839_v36, %v1062_v23  ;;  %v1365_v31 = vadd.f32 %v1364_v22, %v1363_v9 }
 0x191   :  { %v1091_v27 = vpop.f32.mrb[40].mxu1 }
 0x192   :  { %v1109_v38 = vadd.f32 %v1168_v0, %v1095_v29  ;;  %v1067_v14 = vadd.f32 %v1365_v31, %v1066_v1  ;;  %v1366_v21 = vpop.f32.mrb[60].mxu0  ;;  %v1093_v47 = vpop.f32.mrb[41].mxu1 }
 0x193   :  { %v1367_v50 = vpop.f32.mrb[61].mxu0 }
 0x194   :  { %v1116_v26 = vmax.f32 %v1109_v38, 0.0  ;;  %v1096_v56 = vmax.f32 %v840_v43, %v1067_v14  ;;  %v1368_v57 = vadd.f32 %v1367_v50, %v1366_v21 }
 0x196   :  { %1124 = vst.msk [vmem:[%s2526_s6] sm:$0xff] %vm1123_vm2, %v1116_v26  ;;  %v1110_v42 = vadd.f32 %v1168_v0, %v1096_v56  ;;  %v1072_v60 = vadd.f32 %v1368_v57, %v1071_v8  ;;  %v1369_v5 = vpop.f32.mrb[62].mxu0 }
 0x197   :  { %v1370_v48 = vpop.f32.mrb[63].mxu0 }
 0x198   :  { %v1117_v15 = vmax.f32 %v1110_v42, 0.0  ;;  %v1097_v18 = vmax.f32 %v841_v52, %v1072_v60  ;;  %v1371_v49 = vadd.f32 %v1370_v48, %v1369_v5 }
 0x19a   :  { %1125 = vst.msk [vmem:[%s2526_s6 + $0x8] sm:$0xff] %vm1123_vm2, %v1117_v15  ;;  %v1111_v33 = vadd.f32 %v1168_v0, %v1097_v18  ;;  %v1077_v35 = vadd.f32 %v1371_v49, %v1076_v17  ;;  %v1372_v36 = vpop.f32.mrb[64].mxu0 }
 0x19b   :  { %v1373_v39 = vpop.f32.mrb[65].mxu0 }
 0x19c   :  { %v1118_v41 = vmax.f32 %v1111_v33, 0.0  ;;  %v1098_v40 = vmax.f32 %v2478_v59, %v1077_v35  ;;  %v1374_v43 = vadd.f32 %v1373_v39, %v1372_v36 }
 0x19e   :  { %1126 = vst.msk [vmem:[%s2526_s6 + $0x10] sm:$0xff] %vm1123_vm2, %v1118_v41  ;;  %v1112_v44 = vadd.f32 %v1168_v0, %v1098_v40  ;;  %v1082_v45 = vadd.f32 %v1374_v43, %v1081_v32  ;;  %v1375_v51 = vpop.f32.mrb[66].mxu0 }
 0x19f   :  { %v1376_v52 = vpop.f32.mrb[67].mxu0 }
 0x1a0   :  { %v1119_v54 = vmax.f32 %v1112_v44, 0.0  ;;  %v1099_v55 = vmax.f32 %v2480_v63, %v1082_v45  ;;  %v1377_v34 = vadd.f32 %v1376_v52, %v1375_v51 }
 0x1a2   :  { %1127 = vst.msk [vmem:[%s2526_s6 + $0x18] sm:$0xff] %vm1123_vm2, %v1119_v54  ;;  %v1113_v59 = vadd.f32 %v1168_v0, %v1099_v55  ;;  %v1087_v53 = vadd.f32 %v1377_v34, %v1086_v4  ;;  %v1378_v61 = vpop.f32.mrb[68].mxu0 }
 0x1a3   :  { %v1379_v7 = vpop.f32.mrb[69].mxu0 }
 0x1a4   :  { %v1120_v62 = vmax.f32 %v1113_v59, 0.0  ;;  %v1100_v58 = vmax.f32 %v2482_v12, %v1087_v53  ;;  %v1380_v1 = vadd.f32 %v1379_v7, %v1378_v61 }
 0x1a6   :  { %1128 = vst.msk [vmem:[%s2526_s6 + $0x20] sm:$0xff] %vm1123_vm2, %v1120_v62  ;;  %v1114_v63 = vadd.f32 %v1168_v0, %v1100_v58  ;;  %v1092_v2 = vadd.f32 %v1380_v1, %v1091_v27 }
 0x1a8   :  { %v1121_v6 = vmax.f32 %v1114_v63, 0.0  ;;  %v1101_v10 = vmax.f32 %v2484_v25, %v1092_v2 }
 0x1aa   :  { %1129 = vst.msk [vmem:[%s2526_s6 + $0x28] sm:$0xff] %vm1123_vm2, %v1121_v6  ;;  %v1115_v11 = vadd.f32 %v1168_v0, %v1101_v10 }
 0x1ac   :  { %v1122_v8 = vmax.f32 %v1115_v11, 0.0 }
 0x1ae   :  { %1131 = vst.msk [vmem:[%s2526_s6 + $0x30] sm:$0x3] %vm1130_vm3, %v1122_v8 }

// kernel: ensemble_forward.5
= control target key start
LH: loop header
LB: loop body
LE: loop exit
PB: predicated region body
PF: predicated region fallthrough
CT: control target
= control target key end

     0   :  { %v2208_v4 = vmov 0.0|0.0   ;;  %v2209_v26 = vmov 1983009808   ;;  %v90_v28 = vlaneseq  ;;  %vm106_vm0 = vcmask 130048   ;;  %s3107_s0 = inlined_call_operand.vmem [shape: f32[3,2,400], index: 0, kind: input, shape index: {}]   ;;  %s3108_s1 = inlined_call_operand.vmem [shape: f32[3,400,120], index: 1, kind: input, shape index: {}]   ;;  %s3109_s2 = inlined_call_operand.vmem [shape: f32[3,1,120], index: 2, kind: input, shape index: {}]   ;;  %s3110_s3 = inlined_call_operand.vmem [shape: f32[3,120,84], index: 3, kind: input, shape index: {}]   ;;  %s3111_s4 = inlined_call_operand.vmem [shape: f32[3,1,84], index: 4, kind: input, shape index: {}]   ;;  %s3112_s5 = inlined_call_operand.vmem [shape: f32[3,84,10], index: 5, kind: input, shape index: {}]   ;;  %s3113_s6 = inlined_call_operand.vmem [shape: f32[3,1,10], index: 6, kind: input, shape index: {}]   ;;  %s3114_s7 = inlined_call_operand.hbm [shape: f32[2,10], index: 7, kind: output, shape index: {}]  }
   0x1   :  { %v44_v0 = vld [vmem:[%s3108_s1 + $0x80] sm:$0xff]  ;;  %v45_v1 = vld [vmem:[%s3108_s1 + $0x88] sm:$0xff]  ;;  %1911 = vmatprep.subr.bf16.mxu1 %v2208_v4  ;;  %v46_v10 = vld [vmem:[%s3108_s1 + $0x90] sm:$0xff]  ;;  %v88_v27 = vunpack.c.l.s4 %v2209_v26 }
   0x2   :  { %v28_v2 = vld [vmem:[%s3108_s1] sm:$0xff]  ;;  %v1879_v3 = vpack.c.bf16 %v45_v1, %v44_v0  ;;  %v29_v5 = vld [vmem:[%s3108_s1 + $0x8] sm:$0xff]  ;;  %v47_v11 = vld [vmem:[%s3108_s1 + $0x98] sm:$0xff]  ;;  %v91_v39 = vshrl.u32 %v90_v28, 7 }
   0x3   :  { %v60_v6 = vld [vmem:[%s3108_s1 + $0x100] sm:$0xff]  ;;  %v61_v7 = vld [vmem:[%s3108_s1 + $0x108] sm:$0xff]  ;;  %v1881_v8 = vpack.c.bf16 %v29_v5, %v28_v2  ;;  %v30_v12 = vld [vmem:[%s3108_s1 + $0x10] sm:$0xff]  ;;  %v1883_v13 = vpack.c.bf16 %v47_v11, %v46_v10  ;;  %v89_v38 = vunpack.c.0.s8 %v88_v27 }
   0x4   :  { %v1912_v9 = vpack.c.bf16 %v61_v7, %v60_v6  ;;  %1880 = vmatprep.subr.bf16.mxu0 %v1879_v3  ;;  %v31_v14 = vld [vmem:[%s3108_s1 + $0x18] sm:$0xff]  ;;  %v62_v15 = vld [vmem:[%s3108_s1 + $0x110] sm:$0xff]  ;;  %v48_v19 = vld [vmem:[%s3108_s1 + $0xa0] sm:$0xff] }
   0x5   :  { %v63_v16 = vld [vmem:[%s3108_s1 + $0x118] sm:$0xff]  ;;  %1882 = vmatpush3.bf16.msra.mxu0 %v1881_v8  ;;  %v1885_v17 = vpack.c.bf16 %v31_v14, %v30_v12  ;;  %v49_v20 = vld [vmem:[%s3108_s1 + $0xa8] sm:$0xff]  ;;  %v32_v21 = vld [vmem:[%s3108_s1 + $0x20] sm:$0xff]  ;;  %v2347_v49 = vsub.s32 %v89_v38, %v91_v39 }
   0x6   :  { %1913 = vmatpush1.bf16.msra.mxu1 %v1912_v9  ;;  %v1915_v18 = vpack.c.bf16 %v63_v16, %v62_v15  ;;  %1884 = vmatprep.subr.bf16.mxu0 %v1883_v13  ;;  %v1887_v22 = vpack.c.bf16 %v49_v20, %v48_v19  ;;  %v33_v23 = vld [vmem:[%s3108_s1 + $0x28] sm:$0xff]  ;;  %v64_v24 = vld [vmem:[%s3108_s1 + $0x120] sm:$0xff]  ;;  %v50_v29 = vld [vmem:[%s3108_s1 + $0xb0] sm:$0xff] }
   0x7   :  { %1914 = vmatprep.subr.bf16.mxu1 %v2208_v4  ;;  %v65_v25 = vld [vmem:[%s3108_s1 + $0x128] sm:$0xff]  ;;  %v51_v30 = vld [vmem:[%s3108_s1 + $0xb8] sm:$0xff]  ;;  %v1889_v31 = vpack.c.bf16 %v33_v23, %v32_v21  ;;  %v34_v33 = vld [vmem:[%s3108_s1 + $0x30] sm:$0xff] }
   0x8   :  { %v1918_v32 = vpack.c.bf16 %v65_v25, %v64_v24  ;;  %v1891_v34 = vpack.c.bf16 %v51_v30, %v50_v29  ;;  %v35_v35 = vld [vmem:[%s3108_s1 + $0x38] sm:$0xff]  ;;  %v66_v36 = vld [vmem:[%s3108_s1 + $0x130] sm:$0xff]  ;;  %v52_v40 = vld [vmem:[%s3108_s1 + $0xc0] sm:$0xff] }
   0x9   :  { %1886 = vmatpush3.bf16.msra.mxu0 %v1885_v17  ;;  %v67_v37 = vld [vmem:[%s3108_s1 + $0x138] sm:$0xff]  ;;  %v53_v41 = vld [vmem:[%s3108_s1 + $0xc8] sm:$0xff]  ;;  %v1893_v42 = vpack.c.bf16 %v35_v35, %v34_v33  ;;  %v36_v44 = vld [vmem:[%s3108_s1 + $0x40] sm:$0xff] }
   0xa   :  { %1916 = vmatpush1.bf16.msra.mxu1 %v1915_v18  ;;  %1888 = vmatprep.subr.bf16.mxu0 %v1887_v22  ;;  %v1921_v43 = vpack.c.bf16 %v67_v37, %v66_v36  ;;  %v1895_v45 = vpack.c.bf16 %v53_v41, %v52_v40  ;;  %v37_v46 = vld [vmem:[%s3108_s1 + $0x48] sm:$0xff]  ;;  %v68_v47 = vld [vmem:[%s3108_s1 + $0x140] sm:$0xff]  ;;  %v54_v50 = vld [vmem:[%s3108_s1 + $0xd0] sm:$0xff] }
   0xb   :  { %1917 = vmatprep.subr.bf16.mxu1 %v2208_v4  ;;  %v69_v48 = vld [vmem:[%s3108_s1 + $0x148] sm:$0xff]  ;;  %v55_v51 = vld [vmem:[%s3108_s1 + $0xd8] sm:$0xff]  ;;  %v1897_v52 = vpack.c.bf16 %v37_v46, %v36_v44  ;;  %v38_v54 = vld [vmem:[%s3108_s1 + $0x50] sm:$0xff] }
   0xc   :  { %v1924_v53 = vpack.c.bf16 %v69_v48, %v68_v47  ;;  %v27_v55 = vld [vmem:[%s3107_s0] sm:$0xff]  ;;  %v1899_v56 = vpack.c.bf16 %v55_v51, %v54_v50  ;;  %v39_v57 = vld [vmem:[%s3108_s1 + $0x58] sm:$0xff]  ;;  %v70_v58 = vld [vmem:[%s3108_s1 + $0x150] sm:$0xff] }
   0xd   :  { %1890 = vmatpush3.bf16.msra.mxu0 %v1889_v31  ;;  %v71_v59 = vld [vmem:[%s3108_s1 + $0x158] sm:$0xff]  ;;  %v86_v60 = vcombine.high %v27_v55, %v27_v55  ;;  %v93_v61 = vrot.slane %v27_v55, %v2347_v49  ;;  %v56_v62 = vld [vmem:[%s3108_s1 + $0xe0] sm:$0xff]  ;;  %v57_v63 = vld [vmem:[%s3108_s1 + $0xe8] sm:$0xff]  ;;  %v1901_v2 = vpack.c.bf16 %v39_v57, %v38_v54 }
   0xe   :  { %1919 = vmatpush1.bf16.msra.mxu1 %v1918_v32  ;;  %1892 = vmatprep.subr.bf16.mxu0 %v1891_v34  ;;  %v1927_v3 = vpack.c.bf16 %v71_v59, %v70_v58  ;;  %v40_v5 = vld [vmem:[%s3108_s1 + $0x60] sm:$0xff] }
   0xf   :  { %1920 = vmatprep.subr.bf16.mxu1 %v2208_v4  ;;  %v101_v0 = vcombine.high %v93_v61, %v93_v61  ;;  %v100_v1 = vrot.slane %v86_v60, %v2347_v49 }
  0x11   :  { %1894 = vmatpush3.bf16.msra.mxu0 %v1893_v42 }
  0x12   :  { %1922 = vmatpush1.bf16.msra.mxu1 %v1921_v43  ;;  %1896 = vmatprep.subr.bf16.mxu0 %v1895_v45 }
  0x13   :  { %1923 = vmatprep.subr.bf16.mxu1 %v2208_v4 }
  0x15   :  { %1898 = vmatpush3.bf16.msra.mxu0 %v1897_v52 }
  0x16   :  { %1925 = vmatpush1.bf16.msra.mxu1 %v1924_v53 }
  0x17   :  { %12 = vsyncpa [#allocation3], 0  ;;  %1900 = vmatprep.subr.bf16.mxu0 %v1899_v56  ;;  %1926 = vmatprep.subr.bf16.mxu1 %v2208_v4  ;;  %v1903_v6 = vpack.c.bf16 %v57_v63, %v56_v62  ;;  %v41_v7 = vld [vmem:[%s3108_s1 + $0x68] sm:$0xff]  ;;  %v72_v8 = vld [vmem:[%s3108_s1 + $0x160] sm:$0xff]  ;;  %v102_v10 = vcombine.high %v100_v1, %v100_v1  ;;  %v2210_v46 = vmov 0.0   ;;  %vm2211_vm1 = vmmov 0  }
  0x18   :  { %v73_v9 = vld [vmem:[%s3108_s1 + $0x168] sm:$0xff]  ;;  %v58_v11 = vld [vmem:[%s3108_s1 + $0xf0] sm:$0xff]  ;;  %v59_v12 = vld [vmem:[%s3108_s1 + $0xf8] sm:$0xff]  ;;  %173 = vmatprep.mubr.f32.mxu0 %v101_v0  ;;  %v1905_v13 = vpack.c.bf16 %v41_v7, %v40_v5  ;;  %vm272_vm2 = vcmask 982016   ;;  %vm369_vm3 = vcmask 1043456   ;;  %vm365_vm4 = vcmask 687104  }
  0x19   :  { %1336 = vmatprep.mubr.msk.f32.mxu1 %vm106_vm0, %v102_v10  ;;  %1902 = vmatpush3.bf16.msra.mxu0 %v1901_v2  ;;  %v1930_v14 = vpack.c.bf16 %v73_v9, %v72_v8  ;;  %v42_v15 = vld [vmem:[%s3108_s1 + $0x70] sm:$0xff]  ;;  %v1907_v16 = vpack.c.bf16 %v59_v12, %v58_v11  ;;  %v43_v17 = vld [vmem:[%s3108_s1 + $0x78] sm:$0xff]  ;;  %v76_v22 = vld [vmem:[%s3108_s1 + $0x180] sm:$0xff]  ;;  %vm443_vm5 = vcmask 74752  }
  0x1a   :  { %1928 = vmatpush1.bf16.msra.mxu1 %v1927_v3  ;;  %1904 = vmatprep.subr.bf16.mxu0 %v1903_v6  ;;  %v74_v18 = vld [vmem:[%s3108_s1 + $0x170] sm:$0xff]  ;;  %v75_v19 = vld [vmem:[%s3108_s1 + $0x178] sm:$0xff]  ;;  %v1909_v20 = vpack.c.bf16 %v43_v17, %v42_v15  ;;  %v77_v23 = vld [vmem:[%s3108_s1 + $0x188] sm:$0xff] }
  0x1b   :  { %1929 = vmatprep.subr.bf16.mxu1 %v2208_v4  ;;  %v1933_v21 = vpack.c.bf16 %v75_v19, %v74_v18  ;;  %v250_v24 = vld [vmem:[%s3110_s3] sm:$0xff]  ;;  %v251_v25 = vld [vmem:[%s3110_s3 + $0x8] sm:$0xff]  ;;  %v1936_v26 = vpack.c.bf16 %v77_v23, %v76_v22  ;;  %v252_v28 = vld [vmem:[%s3110_s3 + $0x10] sm:$0xff] }
  0x1c   :  { %v1939_v27 = vpack.c.bf16 %v251_v25, %v250_v24  ;;  %v253_v29 = vld [vmem:[%s3110_s3 + $0x18] sm:$0xff]  ;;  %v254_v31 = vld [vmem:[%s3110_s3 + $0x20] sm:$0xff]  ;;  %v255_v32 = vld [vmem:[%s3110_s3 + $0x28] sm:$0xff] }
  0x1d   :  { %1906 = vmatpush3.bf16.msra.mxu0 %v1905_v13  ;;  %v1942_v30 = vpack.c.bf16 %v253_v29, %v252_v28  ;;  %v1945_v33 = vpack.c.bf16 %v255_v32, %v254_v31  ;;  %v256_v34 = vld [vmem:[%s3110_s3 + $0x30] sm:$0xff]  ;;  %v257_v35 = vld [vmem:[%s3110_s3 + $0x38] sm:$0xff]  ;;  %v258_v37 = vld [vmem:[%s3110_s3 + $0x40] sm:$0xff] }
  0x1e   :  { %1931 = vmatpush1.bf16.msra.mxu1 %v1930_v14  ;;  %1908 = vmatprep.subr.bf16.mxu0 %v1907_v16  ;;  %v1948_v36 = vpack.c.bf16 %v257_v35, %v256_v34  ;;  %v259_v38 = vld [vmem:[%s3110_s3 + $0x48] sm:$0xff]  ;;  %v260_v40 = vld [vmem:[%s3110_s3 + $0x50] sm:$0xff]  ;;  %v261_v41 = vld [vmem:[%s3110_s3 + $0x58] sm:$0xff] }
  0x1f   :  { %1932 = vmatprep.subr.bf16.mxu1 %v2208_v4  ;;  %v1951_v39 = vpack.c.bf16 %v259_v38, %v258_v37  ;;  %v1954_v42 = vpack.c.bf16 %v261_v41, %v260_v40  ;;  %v262_v43 = vld [vmem:[%s3110_s3 + $0x60] sm:$0xff]  ;;  %v263_v44 = vld [vmem:[%s3110_s3 + $0x68] sm:$0xff]  ;;  %v264_v47 = vld [vmem:[%s3110_s3 + $0x70] sm:$0xff] }
  0x20   :  { %v1957_v45 = vpack.c.bf16 %v263_v44, %v262_v43  ;;  %v347_v48 = vld [vmem:[%s3112_s5] sm:$0xff]  ;;  %v348_v50 = vld [vmem:[%s3112_s5 + $0x8] sm:$0xff]  ;;  %v349_v51 = vld [vmem:[%s3112_s5 + $0x10] sm:$0xff] }
  0x21   :  { %1910 = vmatpush3.bf16.msra.mxu0 %v1909_v20  ;;  %v1960_v52 = vpack.c.bf16 %v348_v50, %v347_v48  ;;  %v350_v53 = vld [vmem:[%s3112_s5 + $0x18] sm:$0xff]  ;;  %v351_v55 = vld [vmem:[%s3112_s5 + $0x20] sm:$0xff]  ;;  %v352_v56 = vld [vmem:[%s3112_s5 + $0x28] sm:$0xff] }
  0x22   :  { %1934 = vmatpush1.bf16.msra.mxu1 %v1933_v21  ;;  %1938 = vmatprep.subr.bf16.mxu0 %v2208_v4  ;;  %v1963_v54 = vpack.c.bf16 %v350_v53, %v349_v51  ;;  %v1966_v57 = vpack.c.bf16 %v352_v56, %v351_v55  ;;  %v353_v58 = vld [vmem:[%s3112_s5 + $0x30] sm:$0xff]  ;;  %v354_v59 = vld [vmem:[%s3112_s5 + $0x38] sm:$0xff]  ;;  %v356_v62 = vld [vmem:[%s3112_s5 + $0x48] sm:$0xff] }
  0x23   :  { %1935 = vmatprep.subr.bf16.mxu1 %v2208_v4  ;;  %v1969_v60 = vpack.c.bf16 %v354_v59, %v353_v58  ;;  %v1335_v2 = vld [vmem:[%s3109_s2] ss:$0 sm:$0xff]  ;;  %v1359_v10 = vld [vmem:[%s3108_s1 + $0x210] sm:$0xff]  ;;  %v1360_v11 = vld [vmem:[%s3108_s1 + $0x218] sm:$0xff] }
  0x24   :  { %174 = vmatmul.mubr.f32.vlgmr.msra.gmra.mrb[0].mxu0 %v93_v61  ;;  %v355_v61 = vld [vmem:[%s3112_s5 + $0x40] sm:$0xff]  ;;  %v357_v12 = vld [vmem:[%s3112_s5 + $0x50] sm:$0xf]  ;;  %v1974_v13 = vpack.c.bf16 %v1360_v11, %v1359_v10  ;;  %v1376_v15 = vld [vmem:[%s3108_s1 + $0x298] sm:$0xff] }
  0x25   :  { %1940 = vmatpush3.bf16.msra.mxu0 %v1939_v27  ;;  %1735 = vmatprep.mubr.msk.f32.mxu0 %vm2211_vm1, %v2210_v46  ;;  %v1972_v63 = vpack.c.bf16 %v356_v62, %v355_v61  ;;  %v1375_v14 = vld [vmem:[%s3108_s1 + $0x290] sm:$0xff]  ;;  %v1377_v17 = vld [vmem:[%s3108_s1 + $0x2a0] sm:$0xff]  ;;  %v1378_v18 = vld [vmem:[%s3108_s1 + $0x2a8] sm:$0xff] }
  0x26   :  { %1937 = vmatpush1.bf16.msra.mxu1 %v1936_v26  ;;  %1941 = vmatprep.subr.bf16.mxu0 %v2208_v4  ;;  %v2007_v16 = vpack.c.bf16 %v1376_v15, %v1375_v14  ;;  %v2010_v19 = vpack.c.bf16 %v1378_v18, %v1377_v17  ;;  %v1379_v20 = vld [vmem:[%s3108_s1 + $0x2b0] sm:$0xff]  ;;  %v1380_v21 = vld [vmem:[%s3108_s1 + $0x2b8] sm:$0xff]  ;;  %v1381_v23 = vld [vmem:[%s3108_s1 + $0x2c0] sm:$0xff] }
  0x27   :  { %1959 = vmatprep.subr.bf16.mxu1 %v2208_v4  ;;  %v2013_v22 = vpack.c.bf16 %v1380_v21, %v1379_v20  ;;  %v1382_v24 = vld [vmem:[%s3108_s1 + $0x2c8] sm:$0xff]  ;;  %v1383_v26 = vld [vmem:[%s3108_s1 + $0x2d0] sm:$0xff]  ;;  %v1384_v27 = vld [vmem:[%s3108_s1 + $0x2d8] sm:$0xff] }
  0x28   :  { %v2016_v25 = vpack.c.bf16 %v1382_v24, %v1381_v23  ;;  %v2019_v28 = vpack.c.bf16 %v1384_v27, %v1383_v26  ;;  %v1385_v29 = vld [vmem:[%s3108_s1 + $0x2e0] sm:$0xff]  ;;  %v1387_v32 = vld [vmem:[%s3108_s1 + $0x2f0] sm:$0xff]  ;;  %v1342_v38 = vld [vmem:[%s3107_s0 + $0x8] sm:$0xff] }
  0x29   :  { %244 = vmatmul.mubr.f32.vlgmr.msra.gmra.mrb[0].mxu1 %v100_v1  ;;  %1943 = vmatpush3.bf16.msra.mxu0 %v1942_v30  ;;  %v1386_v30 = vld [vmem:[%s3108_s1 + $0x2e8] sm:$0xff]  ;;  %v1389_v35 = vld [vmem:[%s3108_s1 + $0x300] sm:$0xff]  ;;  %v1391_v40 = vld [vmem:[%s3108_s1 + $0x310] sm:$0xff] }
  0x2a   :  { %1944 = vmatprep.subr.bf16.mxu0 %v2208_v4  ;;  %1760 = vmatprep.mubr.msk.f32.mxu1 %vm2211_vm1, %v2210_v46  ;;  %v2022_v31 = vpack.c.bf16 %v1386_v30, %v1385_v29  ;;  %v1392_v41 = vld [vmem:[%s3108_s1 + $0x318] sm:$0xff]  ;;  %v1343_v48 = vld [vmem:[%s3108_s1 + $0x190] sm:$0xff]  ;;  %v1362_v53 = vld [vmem:[%s3108_s1 + $0x228] sm:$0xff] }
  0x2b   :  { %1961 = vmatpush3.bf16.msra.mxu1 %v1960_v52  ;;  %v1344_v50 = vld [vmem:[%s3108_s1 + $0x198] sm:$0xff]  ;;  %v1361_v52 = vld [vmem:[%s3108_s1 + $0x220] sm:$0xff]  ;;  %v1346_v61 = vld [vmem:[%s3108_s1 + $0x1a8] sm:$0xff] }
  0x2c   :  { %1962 = vmatprep.subr.bf16.mxu1 %v2208_v4  ;;  %v1976_v56 = vpack.c.bf16 %v1344_v50, %v1343_v48  ;;  %v1978_v59 = vpack.c.bf16 %v1362_v53, %v1361_v52  ;;  %v1363_v62 = vld [vmem:[%s3108_s1 + $0x230] sm:$0xff]  ;;  %v1350_v10 = vld [vmem:[%s3108_s1 + $0x1c8] sm:$0xff]  ;;  %v1369_v17 = vld [vmem:[%s3108_s1 + $0x260] sm:$0xff] }
  0x2d   :  { %1946 = vmatpush3.bf16.msra.mxu0 %v1945_v33  ;;  %v1388_v33 = vld [vmem:[%s3108_s1 + $0x2f8] sm:$0xff]  ;;  %v1367_v11 = vld [vmem:[%s3108_s1 + $0x250] sm:$0xff]  ;;  %v1370_v18 = vld [vmem:[%s3108_s1 + $0x268] sm:$0xff] }
  0x2e   :  { %1947 = vmatprep.subr.bf16.mxu0 %v2208_v4  ;;  %v2025_v34 = vpack.c.bf16 %v1388_v33, %v1387_v32  ;;  %v1351_v15 = vld [vmem:[%s3108_s1 + $0x1d0] sm:$0xff]  ;;  %v1994_v20 = vpack.c.bf16 %v1370_v18, %v1369_v17  ;;  %v1353_v21 = vld [vmem:[%s3108_s1 + $0x1e0] sm:$0xff]  ;;  %v1372_v24 = vld [vmem:[%s3108_s1 + $0x278] sm:$0xff] }
  0x2f   :  { %1964 = vmatpush3.bf16.msra.mxu1 %v1963_v54  ;;  %v1371_v23 = vld [vmem:[%s3108_s1 + $0x270] sm:$0xff]  ;;  %v1373_v29 = vld [vmem:[%s3108_s1 + $0x280] sm:$0xff]  ;;  %v1374_v30 = vld [vmem:[%s3108_s1 + $0x288] sm:$0xff] }
  0x30   :  { %1965 = vmatprep.subr.bf16.mxu1 %v2208_v4  ;;  %v1998_v26 = vpack.c.bf16 %v1372_v24, %v1371_v23  ;;  %v1355_v27 = vld [vmem:[%s3108_s1 + $0x1f0] sm:$0xff]  ;;  %v2002_v32 = vpack.c.bf16 %v1374_v30, %v1373_v29  ;;  %v1357_v33 = vld [vmem:[%s3108_s1 + $0x200] sm:$0xff]  ;;  %v1404_v50 = vld [vmem:[%s3110_s3 + $0xb8] sm:$0xff] }
  0x31   :  { %1949 = vmatpush3.bf16.msra.mxu0 %v1948_v36  ;;  %v1390_v36 = vld [vmem:[%s3108_s1 + $0x308] sm:$0xff]  ;;  %v1394_v17 = vld [vmem:[%s3109_s2 + $0x1] ss:$0 sm:$0xff] }
  0x32   :  { %1950 = vmatprep.subr.bf16.mxu0 %v2208_v4  ;;  %v2028_v37 = vpack.c.bf16 %v1390_v36, %v1389_v35  ;;  %v1396_v36 = vld [vmem:[%s3110_s3 + $0x78] sm:$0xff]  ;;  %v1406_v53 = vld [vmem:[%s3110_s3 + $0xc8] sm:$0xff]  ;;  %v1462_v30 = vld [vmem:[%s3108_s1 + $0x420] sm:$0xff] }
  0x33   :  { %1967 = vmatpush3.bf16.msra.mxu1 %v1966_v57 }
  0x34   :  { %1968 = vmatprep.subr.bf16.mxu1 %v2208_v4 }
  0x35   :  { %1952 = vmatpush3.bf16.msra.mxu0 %v1951_v39  ;;  %v518_v39 = vcombine.high %v1342_v38, %v1342_v38 }
  0x36   :  { %1953 = vmatprep.subr.bf16.mxu0 %v2208_v4 }
  0x37   :  { %1970 = vmatpush3.bf16.msra.mxu1 %v1969_v60  ;;  %v532_v43 = vrot.slane %v518_v39, %v2347_v49  ;;  %v1345_v60 = vld [vmem:[%s3108_s1 + $0x1a0] sm:$0xff] }
  0x38   :  { %1971 = vmatprep.subr.bf16.mxu1 %v2208_v4 }
  0x39   :  { %1955 = vmatpush3.bf16.msra.mxu0 %v1954_v42  ;;  %v2031_v42 = vpack.c.bf16 %v1392_v41, %v1391_v40  ;;  %v534_v44 = vcombine.high %v532_v43, %v532_v43  ;;  %v1399_v40 = vld [vmem:[%s3110_s3 + $0x90] sm:$0xff] }
  0x3a   :  { %1956 = vmatprep.subr.bf16.mxu0 %v2208_v4 }
  0x3b   :  { %1973 = vmatpush3.bf16.msra.mxu1 %v1972_v63  ;;  %v1364_v63 = vld [vmem:[%s3108_s1 + $0x238] sm:$0xff] }
  0x3c   :  { %1758 = vmatprep.subr.mxu1 %v2210_v46 }
  0x3d   :  { %1958 = vmatpush3.bf16.msra.mxu0 %v1957_v45  ;;  %v1337_v45 = vld [vmem:[%s3111_s4] ss:$0 sm:$0xff] }
  0x3e   :  { %1733 = vmatprep.subr.mxu0 %v2210_v46 }
  0x3f   :  { %1759 = vmatpush3.msk.msra.mxu1 %vm369_vm3, %v357_v12  ;;  %v1368_v12 = vld [vmem:[%s3108_s1 + $0x258] sm:$0xff] }
  0x40   :  { %1975 = vmatprep.subr.bf16.mxu1 %v1974_v13  ;;  %v1990_v14 = vpack.c.bf16 %v1368_v12, %v1367_v11  ;;  %v1419_v11 = vld [vmem:[%s3112_s5 + $0x80] sm:$0xff] }
  0x41   :  { %1734 = vmatpush3.msra.mxu0 %v264_v47  ;;  %v2602_v47 = vrot.slane %v1342_v38, %v2347_v49  ;;  %v1398_v38 = vld [vmem:[%s3110_s3 + $0x88] sm:$0xff] }
  0x42   :  { %2006 = vmatprep.subr.bf16.mxu0 %v2208_v4  ;;  %v2037_v41 = vpack.c.bf16 %v1399_v40, %v1398_v38  ;;  %v1469_v40 = vld [vmem:[%s3108_s1 + $0x458] sm:$0xff] }
  0x43   :  { %v533_v57 = vcombine.high %v2602_v47, %v2602_v47 }
  0xf7   :  { %v1548_v0 = vpop.f32.mrb[0].mxu0 }
  0xf8   :  { %v1549_v1 = vpop.f32.mrb[1].mxu0 }
  0xf9   :  { %v1550_v3 = vadd.f32 %v1549_v1, %v1548_v0  ;;  %v1980_v0 = vpack.c.bf16 %v1346_v61, %v1345_v60  ;;  %v1982_v1 = vpack.c.bf16 %v1364_v63, %v1363_v62  ;;  %v1410_v61 = vld [vmem:[%s3110_s3 + $0xe8] sm:$0xff]  ;;  %v1339_v62 = vld [vmem:[%s3113_s6] ss:$0 sm:$0xff] }
  0xfb   :  { %v176_v5 = vadd.f32 %v1550_v3, %v1335_v2  ;;  %v1347_v2 = vld [vmem:[%s3108_s1 + $0x1b0] sm:$0xff]  ;;  %v1348_v3 = vld [vmem:[%s3108_s1 + $0x1b8] sm:$0xff] }
  0xfc   :  { %v245_v6 = vpop.f32.mrb[0].mxu1 }
  0xfd   :  { %v247_v7 = vpop.f32.mrb[1].mxu1  ;;  %v246_v8 = vadd.f32 %v245_v6, %v176_v5  ;;  %v1365_v5 = vld [vmem:[%s3108_s1 + $0x240] sm:$0xff]  ;;  %v1366_v6 = vld [vmem:[%s3108_s1 + $0x248] sm:$0xff] }
  0xfe   :  { %v1984_v7 = vpack.c.bf16 %v1348_v3, %v1347_v2  ;;  %v1414_v3 = vld [vmem:[%s3112_s5 + $0x58] sm:$0xff] }
  0xff   :  { %v249_v9 = vmax.f32 %v246_v8, 0.0  ;;  %v1986_v8 = vpack.c.bf16 %v1366_v6, %v1365_v5  ;;  %v1415_v5 = vld [vmem:[%s3112_s5 + $0x60] sm:$0xff]  ;;  %v1416_v6 = vld [vmem:[%s3112_s5 + $0x68] sm:$0xff] }
 0x101   :  { %1736 = vmatmul.mubr.msk.f32.vlgmr.msra.gmra.mrb[2].mxu0 %vm272_vm2, %v249_v9  ;;  %v1349_v9 = vld [vmem:[%s3108_s1 + $0x1c0] sm:$0xff] }
 0x102   :  { %2008 = vmatpush1.bf16.msra.mxu0 %v2007_v16  ;;  %1395 = vmatprep.mubr.msk.f32.mxu0 %vm106_vm0, %v534_v44  ;;  %v1988_v13 = vpack.c.bf16 %v1350_v10, %v1349_v9  ;;  %v1352_v16 = vld [vmem:[%s3108_s1 + $0x1d8] sm:$0xff] }
 0x103   :  { %2009 = vmatprep.subr.bf16.mxu0 %v2208_v4  ;;  %v1418_v10 = vld [vmem:[%s3112_s5 + $0x78] sm:$0xff] }
 0x104   :  { %v2061_v12 = vpack.c.bf16 %v1419_v11, %v1418_v10 }
 0x106   :  { %2011 = vmatpush1.bf16.msra.mxu0 %v2010_v19  ;;  %v1992_v19 = vpack.c.bf16 %v1352_v16, %v1351_v15 }
 0x107   :  { %2012 = vmatprep.subr.bf16.mxu0 %v2208_v4 }
 0x10a   :  { %2014 = vmatpush1.bf16.msra.mxu0 %v2013_v22  ;;  %v1354_v22 = vld [vmem:[%s3108_s1 + $0x1e8] sm:$0xff] }
 0x10b   :  { %2015 = vmatprep.subr.bf16.mxu0 %v2208_v4 }
 0x10e   :  { %2017 = vmatpush1.bf16.msra.mxu0 %v2016_v25  ;;  %v1996_v25 = vpack.c.bf16 %v1354_v22, %v1353_v21  ;;  %v1423_v21 = vld [vmem:[%s3112_s5 + $0xa0] sm:$0xff] }
 0x10f   :  { %2018 = vmatprep.subr.bf16.mxu0 %v2208_v4 }
 0x112   :  { %2020 = vmatpush1.bf16.msra.mxu0 %v2019_v28  ;;  %v1356_v28 = vld [vmem:[%s3108_s1 + $0x1f8] sm:$0xff] }
 0x113   :  { %2021 = vmatprep.subr.bf16.mxu0 %v2208_v4 }
 0x116   :  { %2023 = vmatpush1.bf16.msra.mxu0 %v2022_v31  ;;  %v2000_v31 = vpack.c.bf16 %v1356_v28, %v1355_v27  ;;  %v1447_v27 = vld [vmem:[%s3108_s1 + $0x3a8] sm:$0xff] }
 0x117   :  { %2024 = vmatprep.subr.bf16.mxu0 %v2208_v4  ;;  %v1424_v28 = vld [vmem:[%s3112_s5 + $0xa8] sm:$0xf] }
 0x11a   :  { %2026 = vmatpush1.bf16.msra.mxu0 %v2025_v34  ;;  %v1358_v34 = vld [vmem:[%s3108_s1 + $0x208] sm:$0xff] }
 0x11b   :  { %2027 = vmatprep.subr.bf16.mxu0 %v2208_v4  ;;  %v2004_v35 = vpack.c.bf16 %v1358_v34, %v1357_v33  ;;  %v1464_v33 = vld [vmem:[%s3108_s1 + $0x430] sm:$0xff]  ;;  %v1465_v34 = vld [vmem:[%s3108_s1 + $0x438] sm:$0xff] }
 0x11e   :  { %2029 = vmatpush1.bf16.msra.mxu0 %v2028_v37  ;;  %v1397_v37 = vld [vmem:[%s3110_s3 + $0x80] sm:$0xff] }
 0x11f   :  { %2030 = vmatprep.subr.bf16.mxu0 %v2208_v4  ;;  %v2034_v39 = vpack.c.bf16 %v1397_v37, %v1396_v36  ;;  %v1466_v36 = vld [vmem:[%s3108_s1 + $0x440] sm:$0xff]  ;;  %v1467_v37 = vld [vmem:[%s3108_s1 + $0x448] sm:$0xff] }
 0x120   :  { %v2108_v38 = vpack.c.bf16 %v1467_v37, %v1466_v36  ;;  %v1440_v37 = vld [vmem:[%s3108_s1 + $0x370] sm:$0xff] }
 0x122   :  { %2032 = vmatpush1.bf16.msra.mxu0 %v2031_v42  ;;  %v1400_v42 = vld [vmem:[%s3110_s3 + $0x98] sm:$0xff] }
 0x123   :  { %2054 = vmatprep.subr.bf16.mxu0 %v2208_v4 }
 0x125   :  { %675 = vmatmul.mubr.f32.vlgmr.msra.gmra.mrb[4].mxu0 %v532_v43  ;;  %v1401_v43 = vld [vmem:[%s3110_s3 + $0xa0] sm:$0xff] }
 0x126   :  { %1818 = vmatprep.mubr.msk.f32.mxu0 %vm2211_vm1, %v2210_v46  ;;  %v2040_v44 = vpack.c.bf16 %v1401_v43, %v1400_v42  ;;  %v1470_v42 = vld [vmem:[%s3108_s1 + $0x460] sm:$0xff]  ;;  %v1471_v43 = vld [vmem:[%s3108_s1 + $0x468] sm:$0xff] }
 0x1d4   :  { %v342_v51 = vpop.f32.mrb[2].mxu0 }
 0x1d5   :  { %v343_v54 = vadd.f32 %v1337_v45, %v342_v51  ;;  %v1737_v55 = vpop.f32.mrb[3].mxu0  ;;  %v1402_v45 = vld [vmem:[%s3110_s3 + $0xa8] sm:$0xff]  ;;  %v1405_v51 = vld [vmem:[%s3110_s3 + $0xc0] sm:$0xff] }
 0x1d6   :  { %v2046_v52 = vpack.c.bf16 %v1405_v51, %v1404_v50  ;;  %v1474_v50 = vld [vmem:[%s3108_s1 + $0x480] sm:$0xff]  ;;  %v1475_v51 = vld [vmem:[%s3108_s1 + $0x488] sm:$0xff] }
 0x1d7   :  { %v346_v58 = vmax.f32 %v343_v54, 0.0  ;;  %v1407_v54 = vld [vmem:[%s3110_s3 + $0xd0] sm:$0xff] }
 0x1d8   :  { %v2049_v55 = vpack.c.bf16 %v1407_v54, %v1406_v53  ;;  %v1476_v53 = vld [vmem:[%s3108_s1 + $0x490] sm:$0xff]  ;;  %v1477_v54 = vld [vmem:[%s3108_s1 + $0x498] sm:$0xff] }
 0x1d9   :  { %1761 = vmatmul.mubr.msk.f32.vlgmr.msra.gmra.mrb[2].mxu1 %vm365_vm4, %v346_v58 }
 0x1da   :  { %1977 = vmatpush3.bf16.msra.mxu1 %v1976_v56  ;;  %604 = vmatprep.mubr.f32.mxu1 %v533_v57  ;;  %v1408_v56 = vld [vmem:[%s3110_s3 + $0xd8] sm:$0xff]  ;;  %v1409_v57 = vld [vmem:[%s3110_s3 + $0xe0] sm:$0xff] }
 0x1db   :  { %1979 = vmatprep.subr.bf16.mxu1 %v1978_v59  ;;  %v2052_v58 = vpack.c.bf16 %v1409_v57, %v1408_v56  ;;  %v1429_v56 = vld [vmem:[%s3107_s0 + $0x10] sm:$0xff] }
 0x1dc   :  { %v949_v57 = vcombine.high %v1429_v56, %v1429_v56 }
 0x1de   :  { %1981 = vmatpush3.bf16.msra.mxu1 %v1980_v0 }
 0x1df   :  { %1983 = vmatprep.subr.bf16.mxu1 %v1982_v1 }
 0x1e2   :  { %1985 = vmatpush3.bf16.msra.mxu1 %v1984_v7  ;;  %v2055_v7 = vpack.c.bf16 %v1415_v5, %v1414_v3  ;;  %v1431_v3 = vld [vmem:[%s3108_s1 + $0x328] sm:$0xff] }
 0x1e3   :  { %1987 = vmatprep.subr.bf16.mxu1 %v1986_v8  ;;  %v1417_v8 = vld [vmem:[%s3112_s5 + $0x70] sm:$0xff] }
 0x1e4   :  { %2056 = vmatpush3.bf16.msra.mxu0 %v2055_v7  ;;  %v2058_v9 = vpack.c.bf16 %v1417_v8, %v1416_v6  ;;  %v1448_v6 = vld [vmem:[%s3108_s1 + $0x3b0] sm:$0xff]  ;;  %v1449_v7 = vld [vmem:[%s3108_s1 + $0x3b8] sm:$0xff] }
 0x1e5   :  { %2057 = vmatprep.subr.bf16.mxu0 %v2208_v4 }
 0x1e6   :  { %1989 = vmatpush3.bf16.msra.mxu1 %v1988_v13  ;;  %v1420_v13 = vld [vmem:[%s3112_s5 + $0x88] sm:$0xff] }
 0x1e7   :  { %1991 = vmatprep.subr.bf16.mxu1 %v1990_v14  ;;  %v1421_v14 = vld [vmem:[%s3112_s5 + $0x90] sm:$0xff] }
 0x1e8   :  { %2059 = vmatpush3.bf16.msra.mxu0 %v2058_v9  ;;  %v2064_v18 = vpack.c.bf16 %v1421_v14, %v1420_v13  ;;  %v1432_v13 = vld [vmem:[%s3108_s1 + $0x330] sm:$0xff]  ;;  %v1433_v14 = vld [vmem:[%s3108_s1 + $0x338] sm:$0xff] }
 0x1e9   :  { %2060 = vmatprep.subr.bf16.mxu0 %v2208_v4 }
 0x1ea   :  { %1993 = vmatpush3.bf16.msra.mxu1 %v1992_v19 }
 0x1eb   :  { %1995 = vmatprep.subr.bf16.mxu1 %v1994_v20  ;;  %v1422_v20 = vld [vmem:[%s3112_s5 + $0x98] sm:$0xff] }
 0x1ec   :  { %2062 = vmatpush3.bf16.msra.mxu0 %v2061_v12  ;;  %v2067_v23 = vpack.c.bf16 %v1423_v21, %v1422_v20  ;;  %v2073_v12 = vpack.c.bf16 %v1449_v7, %v1448_v6  ;;  %v1435_v20 = vld [vmem:[%s3108_s1 + $0x348] sm:$0xff]  ;;  %v1452_v21 = vld [vmem:[%s3108_s1 + $0x3d0] sm:$0xff]  ;;  %v1493_v7 = vld [vmem:[%s3110_s3 + $0x140] sm:$0xff] }
 0x1ed   :  { %2063 = vmatprep.subr.bf16.mxu0 %v2208_v4 }
 0x1ee   :  { %1997 = vmatpush3.bf16.msra.mxu1 %v1996_v25 }
 0x1ef   :  { %1999 = vmatprep.subr.bf16.mxu1 %v1998_v26  ;;  %v1446_v26 = vld [vmem:[%s3108_s1 + $0x3a0] sm:$0xff] }
 0x1f0   :  { %2065 = vmatpush3.bf16.msra.mxu0 %v2064_v18  ;;  %v2069_v29 = vpack.c.bf16 %v1447_v27, %v1446_v26  ;;  %v1437_v26 = vld [vmem:[%s3108_s1 + $0x358] sm:$0xff]  ;;  %v1454_v27 = vld [vmem:[%s3108_s1 + $0x3e0] sm:$0xff] }
 0x1f1   :  { %2066 = vmatprep.subr.bf16.mxu0 %v2208_v4 }
 0x1f2   :  { %2001 = vmatpush3.bf16.msra.mxu1 %v2000_v31  ;;  %v1463_v31 = vld [vmem:[%s3108_s1 + $0x428] sm:$0xff] }
 0x1f3   :  { %2003 = vmatprep.subr.bf16.mxu1 %v2002_v32  ;;  %v2102_v32 = vpack.c.bf16 %v1463_v31, %v1462_v30  ;;  %v1438_v31 = vld [vmem:[%s3108_s1 + $0x360] sm:$0xff] }
 0x1f4   :  { %2068 = vmatpush3.bf16.msra.mxu0 %v2067_v23 }
 0x1f5   :  { %1816 = vmatprep.subr.mxu0 %v2210_v46 }
 0x1f6   :  { %2005 = vmatpush3.bf16.msra.mxu1 %v2004_v35  ;;  %v2105_v35 = vpack.c.bf16 %v1465_v34, %v1464_v33  ;;  %v1456_v33 = vld [vmem:[%s3108_s1 + $0x3f0] sm:$0xff]  ;;  %v1457_v34 = vld [vmem:[%s3108_s1 + $0x3f8] sm:$0xff] }
 0x1f7   :  { %2033 = vmatprep.subr.bf16.mxu1 %v2208_v4  ;;  %v2089_v36 = vpack.c.bf16 %v1457_v34, %v1456_v33  ;;  %v1506_v33 = vld [vmem:[%s3112_s5 + $0xd8] sm:$0xff] }
 0x1f8   :  { %v676_v59 = vpop.f32.mrb[4].mxu0  ;;  %1817 = vmatpush3.msk.msra.mxu0 %vm369_vm3, %v1424_v28  ;;  %v1455_v28 = vld [vmem:[%s3108_s1 + $0x3e8] sm:$0xff] }
 0x1f9   :  { %605 = vmatmul.mubr.f32.vlgmr.msra.gmra.mrb[4].mxu1 %v2602_v47  ;;  %v1403_v47 = vld [vmem:[%s3110_s3 + $0xb0] sm:$0xff]  ;;  %v678_v60 = vpop.f32.mrb[5].mxu0  ;;  %2070 = vmatprep.subr.bf16.mxu0 %v2069_v29  ;;  %v2085_v30 = vpack.c.bf16 %v1455_v28, %v1454_v27  ;;  %v1504_v28 = vld [vmem:[%s3112_s5 + $0xc8] sm:$0xff] }
 0x1fa   :  { %1793 = vmatprep.mubr.msk.f32.mxu1 %vm2211_vm1, %v2210_v46  ;;  %2035 = vmatpush3.bf16.msra.mxu1 %v2034_v39  ;;  %v2043_v48 = vpack.c.bf16 %v1403_v47, %v1402_v45  ;;  %v1468_v39 = vld [vmem:[%s3108_s1 + $0x450] sm:$0xff]  ;;  %v1473_v47 = vld [vmem:[%s3108_s1 + $0x478] sm:$0xff] }
 0x1fb   :  { %2036 = vmatprep.subr.bf16.mxu1 %v2208_v4  ;;  %v1472_v45 = vld [vmem:[%s3108_s1 + $0x470] sm:$0xff] }
 0x1fe   :  { %2038 = vmatpush3.bf16.msra.mxu1 %v2037_v41  ;;  %v2111_v41 = vpack.c.bf16 %v1469_v40, %v1468_v39  ;;  %v1458_v39 = vld [vmem:[%s3108_s1 + $0x400] sm:$0xff]  ;;  %v1459_v40 = vld [vmem:[%s3108_s1 + $0x408] sm:$0xff] }
 0x1ff   :  { %2039 = vmatprep.subr.bf16.mxu1 %v2208_v4 }
 0x202   :  { %2041 = vmatpush3.bf16.msra.mxu1 %v2040_v44  ;;  %v2114_v44 = vpack.c.bf16 %v1471_v43, %v1470_v42  ;;  %v2093_v42 = vpack.c.bf16 %v1459_v40, %v1458_v39  ;;  %v1442_v43 = vld [vmem:[%s3108_s1 + $0x380] sm:$0xff]  ;;  %v1509_v39 = vld [vmem:[%s3112_s5 + $0xf0] sm:$0xff]  ;;  %v1510_v40 = vld [vmem:[%s3112_s5 + $0xf8] sm:$0xff] }
 0x203   :  { %2042 = vmatprep.subr.bf16.mxu1 %v2208_v4 }
 0x206   :  { %2044 = vmatpush3.bf16.msra.mxu1 %v2043_v48  ;;  %v2117_v48 = vpack.c.bf16 %v1473_v47, %v1472_v45  ;;  %v1460_v45 = vld [vmem:[%s3108_s1 + $0x410] sm:$0xff]  ;;  %v1461_v47 = vld [vmem:[%s3108_s1 + $0x418] sm:$0xff] }
 0x207   :  { %2045 = vmatprep.subr.bf16.mxu1 %v2208_v4 }
 0x20a   :  { %2047 = vmatpush3.bf16.msra.mxu1 %v2046_v52  ;;  %v2120_v52 = vpack.c.bf16 %v1475_v51, %v1474_v50  ;;  %v2097_v50 = vpack.c.bf16 %v1461_v47, %v1460_v45  ;;  %v1444_v51 = vld [vmem:[%s3108_s1 + $0x390] sm:$0xff] }
 0x20b   :  { %2048 = vmatprep.subr.bf16.mxu1 %v2208_v4 }
 0x20e   :  { %2050 = vmatpush3.bf16.msra.mxu1 %v2049_v55  ;;  %v2123_v55 = vpack.c.bf16 %v1477_v54, %v1476_v53  ;;  %v1483_v54 = vld [vmem:[%s3110_s3 + $0xf0] sm:$0xff] }
 0x20f   :  { %2051 = vmatprep.subr.bf16.mxu1 %v2208_v4 }
 0x212   :  { %2053 = vmatpush3.bf16.msra.mxu1 %v2052_v58  ;;  %v1478_v58 = vld [vmem:[%s3108_s1 + $0x4a0] sm:$0xff] }
 0x213   :  { %1791 = vmatprep.subr.mxu1 %v2210_v46 }
 0x216   :  { %1792 = vmatpush3.msra.mxu1 %v1410_v61  ;;  %v963_v61 = vrot.slane %v949_v57, %v2347_v49 }
 0x217   :  { %2101 = vmatprep.subr.bf16.mxu1 %v2208_v4 }
 0x2ac   :  { %v439_v63 = vpop.f32.mrb[2].mxu1 }
 0x2ad   :  { %v2757_v0 = vadd.f32 %v1339_v62, %v439_v63  ;;  %v1762_v1 = vpop.f32.mrb[3].mxu1  ;;  %v965_v62 = vcombine.high %v963_v61, %v963_v61  ;;  %v1412_v63 = vld [vmem:[%s3111_s4 + $0x1] ss:$0 sm:$0xff] }
 0x2ae   :  { %v2884_v1 = vrot.slane %v1429_v56, %v2347_v49  ;;  %v1485_v56 = vld [vmem:[%s3110_s3 + $0x100] sm:$0xff] }
 0x2af   :  { %v444_v2 = vsel %vm443_vm5, %v2757_v0, -inf }
 0x2b0   :  { %445 = vmax.xlane.f32.xlu0 %v444_v2  ;;  %v1430_v2 = vld [vmem:[%s3108_s1 + $0x320] sm:$0xff]  ;;  %v964_v10 = vcombine.high %v2884_v1, %v2884_v1 }
 0x2b1   :  { %v2071_v9 = vpack.c.bf16 %v1431_v3, %v1430_v2  ;;  %v1491_v3 = vld [vmem:[%s3110_s3 + $0x130] sm:$0xff] }
 0x2cc   :  { %v1611_v15 = vpop.f32.mrb[4].mxu1 }
 0x2cd   :  { %v1612_v16 = vpop.f32.mrb[5].mxu1 }
 0x2ce   :  { %v1613_v19 = vadd.f32 %v1612_v16, %v1611_v15  ;;  %v1450_v15 = vld [vmem:[%s3108_s1 + $0x3c0] sm:$0xff]  ;;  %v1451_v16 = vld [vmem:[%s3108_s1 + $0x3c8] sm:$0xff] }
 0x2cf   :  { %v2077_v18 = vpack.c.bf16 %v1451_v16, %v1450_v15  ;;  %v1426_v15 = vld [vmem:[%s3113_s6 + $0x1] ss:$0 sm:$0xff] }
 0x2d0   :  { %v607_v22 = vadd.f32 %v1613_v19, %v1394_v17  ;;  %v2075_v17 = vpack.c.bf16 %v1433_v14, %v1432_v13  ;;  %v1434_v19 = vld [vmem:[%s3108_s1 + $0x340] sm:$0xff] }
 0x2d1   :  { %v2079_v23 = vpack.c.bf16 %v1435_v20, %v1434_v19  ;;  %v1497_v14 = vld [vmem:[%s3110_s3 + $0x160] sm:$0xff] }
 0x2d2   :  { %v677_v24 = vadd.f32 %v676_v59, %v607_v22  ;;  %v1479_v59 = vld [vmem:[%s3108_s1 + $0x4a8] sm:$0xff]  ;;  %v1453_v22 = vld [vmem:[%s3108_s1 + $0x3d8] sm:$0xff] }
 0x2d3   :  { %v2126_v60 = vpack.c.bf16 %v1479_v59, %v1478_v58  ;;  %v1486_v58 = vld [vmem:[%s3110_s3 + $0x108] sm:$0xff] }
 0x2d4   :  { %v680_v25 = vmax.f32 %v677_v24, 0.0  ;;  %v2081_v24 = vpack.c.bf16 %v1453_v22, %v1452_v21  ;;  %v2132_v59 = vpack.c.bf16 %v1486_v58, %v1485_v56  ;;  %v1481_v22 = vld [vmem:[%s3109_s2 + $0x2] ss:$0 sm:$0xff] }
 0x2d5   :  { %v1513_v56 = vld [vmem:[%s3113_s6 + $0x2] ss:$0 sm:$0xff] }
 0x2d6   :  { %1794 = vmatmul.mubr.msk.f32.vlgmr.msra.gmra.mrb[6].mxu1 %vm272_vm2, %v680_v25  ;;  %v1436_v25 = vld [vmem:[%s3108_s1 + $0x350] sm:$0xff] }
 0x2d7   :  { %2103 = vmatpush1.bf16.msra.mxu1 %v2102_v32  ;;  %1482 = vmatprep.mubr.msk.f32.mxu1 %vm106_vm0, %v965_v62  ;;  %v2083_v29 = vpack.c.bf16 %v1437_v26, %v1436_v25  ;;  %v1439_v32 = vld [vmem:[%s3108_s1 + $0x368] sm:$0xff]  ;;  %v1502_v25 = vld [vmem:[%s3112_s5 + $0xb8] sm:$0xff]  ;;  %v1503_v26 = vld [vmem:[%s3112_s5 + $0xc0] sm:$0xff] }
 0x2d8   :  { %2104 = vmatprep.subr.bf16.mxu1 %v2208_v4 }
 0x2db   :  { %2106 = vmatpush1.bf16.msra.mxu1 %v2105_v35  ;;  %v2087_v35 = vpack.c.bf16 %v1439_v32, %v1438_v31  ;;  %v1505_v32 = vld [vmem:[%s3112_s5 + $0xd0] sm:$0xff] }
 0x2dc   :  { %2107 = vmatprep.subr.bf16.mxu1 %v2208_v4 }
 0x2df   :  { %2109 = vmatpush1.bf16.msra.mxu1 %v2108_v38  ;;  %v1441_v38 = vld [vmem:[%s3108_s1 + $0x378] sm:$0xff] }
 0x2e0   :  { %2110 = vmatprep.subr.bf16.mxu1 %v2208_v4 }
 0x2e3   :  { %2112 = vmatpush1.bf16.msra.mxu1 %v2111_v41  ;;  %v2091_v41 = vpack.c.bf16 %v1441_v38, %v1440_v37  ;;  %v1508_v37 = vld [vmem:[%s3112_s5 + $0xe8] sm:$0xff] }
 0x2e4   :  { %2113 = vmatprep.subr.bf16.mxu1 %v2208_v4 }
 0x2e7   :  { %2115 = vmatpush1.bf16.msra.mxu1 %v2114_v44  ;;  %v1443_v44 = vld [vmem:[%s3108_s1 + $0x388] sm:$0xff] }
 0x2e8   :  { %2116 = vmatprep.subr.bf16.mxu1 %v2208_v4 }
 0x2eb   :  { %2118 = vmatpush1.bf16.msra.mxu1 %v2117_v48  ;;  %v2095_v48 = vpack.c.bf16 %v1443_v44, %v1442_v43 }
 0x2ec   :  { %2119 = vmatprep.subr.bf16.mxu1 %v2208_v4 }
 0x2ef   :  { %2121 = vmatpush1.bf16.msra.mxu1 %v2120_v52  ;;  %v1445_v52 = vld [vmem:[%s3108_s1 + $0x398] sm:$0xff] }
 0x2f0   :  { %2122 = vmatprep.subr.bf16.mxu1 %v2208_v4  ;;  %v2099_v53 = vpack.c.bf16 %v1445_v52, %v1444_v51 }
 0x2f3   :  { %2124 = vmatpush1.bf16.msra.mxu1 %v2123_v55  ;;  %v1484_v55 = vld [vmem:[%s3110_s3 + $0xf8] sm:$0xff] }
 0x2f4   :  { %2125 = vmatprep.subr.bf16.mxu1 %v2208_v4  ;;  %v2129_v57 = vpack.c.bf16 %v1484_v55, %v1483_v54 }
 0x2f7   :  { %2127 = vmatpush1.bf16.msra.mxu1 %v2126_v60  ;;  %v1487_v60 = vld [vmem:[%s3110_s3 + $0x110] sm:$0xff] }
 0x2f8   :  { %2149 = vmatprep.subr.bf16.mxu1 %v2208_v4 }
 0x2fa   :  { %1106 = vmatmul.mubr.f32.vlgmr.msra.gmra.mrb[8].mxu1 %v963_v61  ;;  %v1488_v61 = vld [vmem:[%s3110_s3 + $0x118] sm:$0xff] }
 0x2fb   :  { %1876 = vmatprep.mubr.msk.f32.mxu1 %vm2211_vm1, %v2210_v46  ;;  %v2135_v62 = vpack.c.bf16 %v1488_v61, %v1487_v60 }
 0x33d   :  { %v446_v43 = vpop.xlane.xlu0 %445 }
 0x33e   :  { %v447_v54 = vsub.f32 %v2757_v0, %v446_v43 }
 0x340   :  { %v448_v55 = vmul.f32 1.442695, %v447_v54 }
 0x3a9   :  { %v774_v5 = vpop.f32.mrb[6].mxu1 }
 0x3aa   :  { %v775_v8 = vadd.f32 %v1412_v63, %v774_v5  ;;  %v1795_v49 = vpop.f32.mrb[7].mxu1  ;;  %v1489_v63 = vld [vmem:[%s3110_s3 + $0x120] sm:$0xff]  ;;  %v1492_v5 = vld [vmem:[%s3110_s3 + $0x138] sm:$0xff] }
 0x3ab   :  { %v2141_v6 = vpack.c.bf16 %v1492_v5, %v1491_v3 }
 0x3ac   :  { %v778_v11 = vmax.f32 %v775_v8, 0.0  ;;  %v1494_v8 = vld [vmem:[%s3110_s3 + $0x148] sm:$0xff] }
 0x3ad   :  { %v2144_v49 = vpack.c.bf16 %v1494_v8, %v1493_v7 }
 0x3ae   :  { %1819 = vmatmul.mubr.msk.f32.vlgmr.msra.gmra.mrb[6].mxu0 %vm365_vm4, %v778_v11 }
 0x3af   :  { %2072 = vmatpush3.bf16.msra.mxu0 %v2071_v9  ;;  %1035 = vmatprep.mubr.f32.mxu0 %v964_v10  ;;  %v1495_v9 = vld [vmem:[%s3110_s3 + $0x150] sm:$0xff]  ;;  %v1496_v10 = vld [vmem:[%s3110_s3 + $0x158] sm:$0xff] }
 0x3b0   :  { %2074 = vmatprep.subr.bf16.mxu0 %v2073_v12  ;;  %v2147_v11 = vpack.c.bf16 %v1496_v10, %v1495_v9 }
 0x3b3   :  { %2076 = vmatpush3.bf16.msra.mxu0 %v2075_v17 }
 0x3b4   :  { %2078 = vmatprep.subr.bf16.mxu0 %v2077_v18 }
 0x3b7   :  { %2080 = vmatpush3.bf16.msra.mxu0 %v2079_v23 }
 0x3b8   :  { %2082 = vmatprep.subr.bf16.mxu0 %v2081_v24  ;;  %v1501_v24 = vld [vmem:[%s3112_s5 + $0xb0] sm:$0xff] }
 0x3b9   :  { %v2150_v27 = vpack.c.bf16 %v1502_v25, %v1501_v24 }
 0x3bb   :  { %2084 = vmatpush3.bf16.msra.mxu0 %v2083_v29  ;;  %2151 = vmatpush3.bf16.msra.mxu1 %v2150_v27 }
 0x3bc   :  { %2086 = vmatprep.subr.bf16.mxu0 %v2085_v30  ;;  %v2153_v30 = vpack.c.bf16 %v1504_v28, %v1503_v26  ;;  %2152 = vmatprep.subr.bf16.mxu1 %v2208_v4 }
 0x3bf   :  { %2088 = vmatpush3.bf16.msra.mxu0 %v2087_v35  ;;  %2154 = vmatpush3.bf16.msra.mxu1 %v2153_v30  ;;  %v2156_v35 = vpack.c.bf16 %v1506_v33, %v1505_v32 }
 0x3c0   :  { %2090 = vmatprep.subr.bf16.mxu0 %v2089_v36  ;;  %2155 = vmatprep.subr.bf16.mxu1 %v2208_v4  ;;  %v1507_v36 = vld [vmem:[%s3112_s5 + $0xe0] sm:$0xff] }
 0x3c1   :  { %v2159_v38 = vpack.c.bf16 %v1508_v37, %v1507_v36 }
 0x3c3   :  { %2092 = vmatpush3.bf16.msra.mxu0 %v2091_v41  ;;  %2157 = vmatpush3.bf16.msra.mxu1 %v2156_v35  ;;  %v2162_v41 = vpack.c.bf16 %v1510_v40, %v1509_v39 }
 0x3c4   :  { %2094 = vmatprep.subr.bf16.mxu0 %v2093_v42  ;;  %2158 = vmatprep.subr.bf16.mxu1 %v2208_v4  ;;  %v1511_v42 = vld [vmem:[%s3112_s5 + $0x100] sm:$0xf] }
 0x3c7   :  { %2096 = vmatpush3.bf16.msra.mxu0 %v2095_v48  ;;  %2160 = vmatpush3.bf16.msra.mxu1 %v2159_v38 }
 0x3c8   :  { %2098 = vmatprep.subr.bf16.mxu0 %v2097_v50  ;;  %2161 = vmatprep.subr.bf16.mxu1 %v2208_v4  ;;  %v1499_v50 = vld [vmem:[%s3111_s4 + $0x2] ss:$0 sm:$0xff]  ;;  %s2212_s4 = smov [#allocation2]  }
 0x3c9   :  { %s1327_s6 = sshll.u32 %s2212_s4, 4  ;;  %s1328_s6 = int_to_ptr.vmem [resolvable:$true] %s1327_s6 }
 0x3ca   :  { %s2184_s10 = scalar_lea.vmem %s1328_s6, 32  ;;  %p2189_p1 = scmp.lt.s32.totalorder %s1328_s6, %s1328_s6 }
 0x3cb   :  { %2100 = vmatpush3.bf16.msra.mxu0 %v2099_v53  ;;  %2163 = vmatpush3.bf16.msra.mxu1 %v2162_v41  ;;  %p2185_p0 = scmp.ne.s32.totalorder %s1328_s6, %s2184_s10  ;;  %p2190_p2 = scmp.lt.s32.totalorder %s2184_s10, %s2184_s10 }
 0x3cc   :  { %2128 = vmatprep.subr.bf16.mxu0 %v2208_v4  ;;  %1874 = vmatprep.subr.mxu1 %v2210_v46 }
 0x3cd   :  { %v1107_v12 = vpop.f32.mrb[8].mxu1  ;;  %p2191_p3 = por %p2190_p2, %p2189_p1 }
 0x3ce   :  { %1036 = vmatmul.mubr.f32.vlgmr.msra.gmra.mrb[8].mxu0 %v2884_v1  ;;  %v1490_v1 = vld [vmem:[%s3110_s3 + $0x128] sm:$0xff]  ;;  %v1109_v13 = vpop.f32.mrb[9].mxu1 }
 0x3cf   :  { %1851 = vmatprep.mubr.msk.f32.mxu0 %vm2211_vm1, %v2210_v46  ;;  %2130 = vmatpush3.bf16.msra.mxu0 %v2129_v57  ;;  %v2138_v2 = vpack.c.bf16 %v1490_v1, %v1489_v63  ;;  %p2192_p4 = pnand %p2191_p3, %p2185_p0 }
 0x3d0   :  { %2131 = vmatprep.subr.bf16.mxu0 %v2208_v4  ;;  %1875 = vmatpush3.msk.msra.mxu1 %vm369_vm3, %v1511_v42 }
 0x3d3   :  { %2133 = vmatpush3.bf16.msra.mxu0 %v2132_v59 }
 0x3d4   :  { %2134 = vmatprep.subr.bf16.mxu0 %v2208_v4 }
 0x3d7   :  { %2136 = vmatpush3.bf16.msra.mxu0 %v2135_v62 }
 0x3d8   :  { %2137 = vmatprep.subr.bf16.mxu0 %v2208_v4 }
 0x3db   :  { %2139 = vmatpush3.bf16.msra.mxu0 %v2138_v2 }
 0x3dc   :  { %2140 = vmatprep.subr.bf16.mxu0 %v2208_v4 }
 0x3df   :  { %2142 = vmatpush3.bf16.msra.mxu0 %v2141_v6 }
 0x3e0   :  { %2143 = vmatprep.subr.bf16.mxu0 %v2208_v4 }
 0x3e3   :  { %2145 = vmatpush3.bf16.msra.mxu0 %v2144_v49 }
 0x3e4   :  { %2146 = vmatprep.subr.bf16.mxu0 %v2208_v4 }
 0x3e7   :  { %2148 = vmatpush3.bf16.msra.mxu0 %v2147_v11 }
 0x3e8   :  { %1849 = vmatprep.subr.mxu0 %v2210_v46 }
 0x3eb   :  { %1850 = vmatpush3.msra.mxu0 %v1497_v14 }
 0x481   :  { %v871_v16 = vpop.f32.mrb[6].mxu0 }
 0x482   :  { %v872_v17 = vadd.f32 %v1426_v15, %v871_v16  ;;  %v1820_v18 = vpop.f32.mrb[7].mxu0 }
 0x484   :  { %v875_v19 = vsel %vm443_vm5, %v872_v17, -inf }
 0x485   :  { %876 = vmax.xlane.f32.xlu0 %v875_v19 }
 0x4a1   :  { %v1674_v20 = vpop.f32.mrb[8].mxu0 }
 0x4a2   :  { %v1675_v21 = vpop.f32.mrb[9].mxu0 }
 0x4a3   :  { %v1676_v23 = vadd.f32 %v1675_v21, %v1674_v20 }
 0x4a5   :  { %v1038_v29 = vadd.f32 %v1676_v23, %v1481_v22 }
 0x4a7   :  { %v1108_v31 = vadd.f32 %v1107_v12, %v1038_v29 }
 0x4a9   :  { %v1111_v34 = vmax.f32 %v1108_v31, 0.0 }
 0x4ab   :  { %1852 = vmatmul.mubr.msk.f32.vlgmr.msra.gmra.mrb[10].mxu0 %vm272_vm2, %v1111_v34 }
 0x512   :  { %v877_v4 = vpop.xlane.xlu0 %876 }
 0x513   :  { %v878_v44 = vsub.f32 %v872_v17, %v877_v4 }
 0x515   :  { %v879_v45 = vmul.f32 1.442695, %v878_v44 }
 0x517   :  { %2172 = vpow2.f32 %v879_v45 }
 0x518   :  { %2174 = vpow2.f32 %v448_v55 }
 0x521   :  { %v2173_v47 = vpop.eup %2172 }
 0x522   :  { %v881_v48 = vsel %vm443_vm5, %v2173_v47, 0.0  ;;  %v2175_v61 = vpop.eup %2174 }
 0x523   :  { %882 = vadd.xlane.f32.xlu0 %v881_v48  ;;  %v450_v62 = vsel %vm443_vm5, %v2175_v61, 0.0 }
 0x57e   :  { %v1205_v46 = vpop.f32.mrb[10].mxu0 }
 0x57f   :  { %v1206_v51 = vadd.f32 %v1499_v50, %v1205_v46  ;;  %v1853_v52 = vpop.f32.mrb[11].mxu0 }
 0x581   :  { %v1209_v53 = vmax.f32 %v1206_v51, 0.0 }
 0x583   :  { %1877 = vmatmul.mubr.msk.f32.vlgmr.msra.gmra.mrb[10].mxu1 %vm365_vm4, %v1209_v53 }
 0x5b0   :  { %v883_v6 = vpop.xlane.xlu0 %882 }
 0x656   :  { %v1302_v57 = vpop.f32.mrb[10].mxu1 }
 0x657   :  { %v1303_v58 = vadd.f32 %v1513_v56, %v1302_v57  ;;  %v1878_v59 = vpop.f32.mrb[11].mxu1 }
 0x659   :  { %v1306_v60 = vsel %vm443_vm5, %v1303_v58, -inf }
 0x65a   :  { %1307 = vmax.xlane.f32.xlu1 %v1306_v60 }
 0x65e   :  { %451 = vadd.xlane.f32.xlu1 %v450_v62 }
 0x6e7   :  { %v1308_v63 = vpop.xlane.xlu1 %1307 }
 0x6e8   :  { %v1309_v1 = vsub.f32 %v1303_v58, %v1308_v63 }
 0x6ea   :  { %v1310_v2 = vmul.f32 1.442695, %v1309_v1 }
 0x6eb   :  { %v452_v5 = vpop.xlane.xlu1 %451 }
 0x6ec   :  { %2176 = vpow2.f32 %v1310_v2 }
 0x6ed   :  { %2178 = vrcp.f32 %v452_v5 }
 0x6ee   :  { %2180 = vrcp.f32 %v883_v6 }
 0x6f6   :  { %v2177_v0 = vpop.eup %2176 }
 0x6f7   :  { %v1312_v3 = vsel %vm443_vm5, %v2177_v0, 0.0  ;;  %v2179_v8 = vpop.eup %2178 }
 0x6f8   :  { %1313 = vadd.xlane.f32.xlu1 %v1312_v3  ;;  %v2181_v49 = vpop.eup %2180  ;;  %v454_v9 = vmul.f32 %v2179_v8, %v2175_v61 }
 0x6f9   :  { %v885_v10 = vmul.f32 %v2181_v49, %v2173_v47 }
 0x6fb   :  { %v886_v12 = vadd.f32 %v885_v10, %v454_v9 }
 0x785   :  { %v1314_v7 = vpop.xlane.xlu1 %1313 }
 0x786   :  { %2182 = vrcp.f32 %v1314_v7 }
 0x790   :  { %v2183_v11 = vpop.eup %2182 }
 0x791   :  { %v1316_v13 = vmul.f32 %v2183_v11, %v2177_v0 }
 0x793   :  { %v1317_v14 = vadd.f32 %v1316_v13, %v886_v12 }
 0x795   :  { %v1319_v15 = vmul.f32 0.33333334, %v1317_v14 }
 0x797   :  { %1320 = vst.msk [vmem:[#allocation2] sm:$0x3] %vm443_vm5, %v1319_v15 }
 0x798   :  { %2195 = shalt.err (!%p2192_p4)
}
 0x799   :  { %s2196_s3 = scalar_lea.hbm %s3114_s7, 32 }
 0x79a   :  { %p2197_p5 = scmp.ne.s32.totalorder %s3114_s7, %s2196_s3  ;;  %p2200_p6 = scmp.lt.u32.totalorder %s2196_s3, %s3114_s7 }
 0x79c   :  { %p2202_p7 = pnand %p2200_p6, %p2197_p5 }
 0x79e   :  { %2205 = shalt.err (!%p2202_p7)
}
 0x79f   :  { %1330 = dma.vmem_to_hbm [thread:$0]  %s1328_s6, 32, %s3114_s7, [#allocation3]  }
 0x7a0   :  { %2206 = dma.done.wait [#allocation3], 32  }
 0x7a1   :  { %2207 = vsyncadd [#allocation3], 4294967264 }
 0x7a2   :  { %1334 = vsyncpa [#allocation3], 1 }

</bundles_post_ra>
